<compile_context>
chip_gen: v7x
topology: tpu7x:2x2x1
jax: 0.10.0
libtpu: 0.0.40
codegen_flags: <defaults>
</compile_context>

<pallas_src>
import numpy as np
import jax
import jax.numpy as jnp
from jax.experimental import pallas as pl
from jax.experimental.pallas import tpu as pltpu


# (kernel_size, stride, padding) of the nine Downsampler layers in Downsampler_GRU.
_LAYER_CFG = (
    (5, 1, 2),  # enc1
    (3, 2, 1),  # enc2
    (3, 1, 1),  # enc3
    (3, 2, 1),  # enc4
    (3, 1, 1),  # enc5
    (3, 2, 1),  # enc6
    (3, 1, 1),  # enc7
    (3, 2, 1),  # enc8
    (3, 1, 1),  # enc9
)
_TAP_LAYERS = (0, 2, 4, 6, 8)  # -> x1, x3, x5, x7, x9
_N_LAYERS = len(_LAYER_CFG)


def _out_size(n, k, s, p):
    return (n + 2 * p - k) // s + 1


# --------------------------------------------------------------------------- #
# Host-side packing: fold each conv layer into per-kernel-row matmul operands  #
# --------------------------------------------------------------------------- #
def _pack_layer(w, b, h_in, w_in, k, s, p):
    """w: (Cout, Cin, k, k), b: (Cout,)  ->  (S, G, brow, h_out, w_out).

    With the layer input laid out as A[h, ci*Win + w_] the conv output is
        Out[y, co*Wout + x] = sum_i ((S[i] @ A) @ G[i])[y, co*Wout + x] + brow.
    """
    cout, cin = w.shape[0], w.shape[1]
    h_out = _out_size(h_in, k, s, p)
    w_out = _out_size(w_in, k, s, p)

    # S[i, y, h] = 1  iff  h == s*y + i - p   (rows outside [0, h_in) -> zero pad)
    S = np.zeros((k, h_out, h_in), np.float32)
    for i in range(k):
        for y in range(h_out):
            h = s * y + i - p
            if 0 <= h < h_in:
                S[i, y, h] = 1.0

    # G[i, ci*Win + w_, co*Wout + x] = w[co, ci, i, j]  with  j = w_ - (s*x - p)
    G = np.zeros((k, cin * w_in, cout * w_out), np.float32)
    rows_ci = np.arange(cin) * w_in
    cols_co = np.arange(cout) * w_out
    for i in range(k):
        for x in range(w_out):
            for j in range(k):
                w_ = s * x + j - p
                if 0 <= w_ < w_in:
                    G[i][np.ix_(rows_ci + w_, cols_co + x)] = w[:, :, i, j].T

    brow = np.repeat(b, w_out)[None, :].astype(np.float32)  # (1, Cout*Wout)
    return S, G, brow, h_out, w_out


# ------------------------------- Pallas kernel ------------------------------ #
def _fused_kernel(*refs):
    """refs = (x, S1,G1,b1, ..., S9,G9,b9, o1,o3,o5,o7,o9).  One batch element."""
    a = refs[0][...]                                   # (H0, C0*W0) f32
    out_refs = refs[1 + 3 * _N_LAYERS:]
    tap = 0
    for l in range(_N_LAYERS):
        s_ref = refs[1 + 3 * l]
        g_ref = refs[2 + 3 * l]
        b_ref = refs[3 + 3 * l]
        acc = None
        for i in range(s_ref.shape[0]):                # kernel rows (3 or 5)
            t = jnp.dot(s_ref[i], a, preferred_element_type=jnp.float32)
            u = jnp.dot(t, g_ref[i], preferred_element_type=jnp.float32)
            acc = u if acc is None else acc + u
        z = acc + b_ref[...]                           # bias (broadcast over rows)
        a = jnp.where(z > 0, z, 0.2 * z)               # LeakyReLU(0.2)
        if l in _TAP_LAYERS:
            out_refs[tap][...] = a
            tap += 1


# ------------------------------ jitted forward ------------------------------ #
def _forward(packed, x):
    """packed: per-layer (S, G, brow) arrays.  x: (N, C, H, W) f32."""
    N, C, H, W = x.shape
    # NCHW -> per-image 2-D slabs: rows = H, lanes = (C, W) pairs.
    a0 = jnp.transpose(x, (0, 2, 1, 3)).reshape(N, H, C * W)

    inputs = [a0]
    in_specs = [pl.BlockSpec((None, H, C * W), lambda n: (n, 0, 0))]
    out_shapes, out_specs, tap_meta = [], [], []

    h_cur, w_cur = H, W
    for li, ((S, G, brow), (k, s, p)) in enumerate(zip(packed, _LAYER_CFG)):
        inputs.extend((S, G, brow))
        for arr in (S, G, brow):
            # whole-array block, constant index_map -> stays resident in VMEM
            in_specs.append(
                pl.BlockSpec(arr.shape, lambda n, nd=arr.ndim: (0,) * nd))
        h_out = _out_size(h_cur, k, s, p)
        w_out = _out_size(w_cur, k, s, p)
        c_out = G.shape[2] // w_out
        if li in _TAP_LAYERS:
            out_shapes.append(
                jax.ShapeDtypeStruct((N, h_out, c_out * w_out), jnp.float32))
            out_specs.append(
                pl.BlockSpec((None, h_out, c_out * w_out), lambda n: (n, 0, 0)))
            tap_meta.append((c_out, h_out, w_out))
        h_cur, w_cur = h_out, w_out

    outs = pl.pallas_call(
        _fused_kernel,
        out_shape=tuple(out_shapes),
        grid_spec=pltpu.PrefetchScalarGridSpec(
            num_scalar_prefetch=0,
            grid=(N,),
            in_specs=in_specs,
            out_specs=out_specs,
        ),
        compiler_params=pltpu.CompilerParams(
            dimension_semantics=("parallel",)),   # batch -> v7x second TensorCore
    )(*inputs)

    results = []
    for o, (c_out, h_out, w_out) in zip(outs, tap_meta):
        o = o.reshape(N, h_out, c_out, w_out)     # (N, H, C, W)
        o = jnp.transpose(o, (0, 2, 1, 3))        # (N, C, H, W)
        results.append(o[:, None])                # unsqueeze(1) -> (N, 1, C, H, W)
    return tuple(results)


_forward_jit = jax.jit(_forward)


# ------------------------------ module wrapper ------------------------------ #
class DownsamplerStackNoEmbed:
    """JAX/Pallas version of Downsampler_GRU's conv encoder (GRU cells omitted)."""

    def __init__(self, input_nc, enc_nc, key):
        self.specs = []
        cin = input_nc
        for (k, s, p), cout in zip(_LAYER_CFG, enc_nc):
            self.specs.append((cin, cout, k, s, p))
            cin = cout
        self.params = []
        for idx, (ci, co, k, s, p) in enumerate(self.specs):
            kw_key, kb_key = jax.random.split(jax.random.fold_in(key, idx))
            fan_in = ci * k * k
            bound = 1.0 / (fan_in ** 0.5)         # PyTorch-style uniform init
            w = jax.random.uniform(kw_key, (co, ci, k, k), jnp.float32, -bound, bound)
            b = jax.random.uniform(kb_key, (co,), jnp.float32, -bound, bound)
            self.params.append((w, b))
        self._pack_cache = {}

    def _packed(self, H, W):
        if (H, W) not in self._pack_cache:
            packed, h, w = [], H, W
            for (wt, bs), (k, s, p) in zip(self.params, _LAYER_CFG):
                S, G, brow, h, w = _pack_layer(np.asarray(wt), np.asarray(bs),
                                               h, w, k, s, p)
                packed.append((jnp.asarray(S), jnp.asarray(G), jnp.asarray(brow)))
            self._pack_cache[(H, W)] = packed
        return self._pack_cache[(H, W)]

    def __call__(self, x):
        _, _, H, W = x.shape
        return _forward_jit(self._packed(H, W), x)


# -------------------------------- reference --------------------------------- #
def _ref_conv_lrelu(x, w, b, stride, pad):
    y = jax.lax.conv_general_dilated(
        x, w, window_strides=(stride, stride),
        padding=[(pad, pad), (pad, pad)],
        dimension_numbers=("NCHW", "OIHW", "NCHW"))
    y = y + b[None, :, None, None]
    return jnp.where(y > 0, y, 0.2 * y)


def _ref_forward(model, x):
    feats = []
    for (w, b), (_, _, _, s, p) in zip(model.params, model.specs):
        x = _ref_conv_lrelu(x, w, b, s, p)
        feats.append(x)
    return tuple(jnp.expand_dims(feats[i], 1) for i in _TAP_LAYERS)


# ---------------------------------- main ------------------------------------ #
if __name__ == "__main__":
    key = jax.random.PRNGKey(0)
    k_x, k_p = jax.random.split(key)

    # Small shapes consistent with the module: real channel config, 16x16 spatial.
    input_nc = 3
    enc_nc = [12, 24, 24, 24, 24, 48, 48, 96, 96]
    N, H, W = 2, 16, 16
    x = jax.random.normal(k_x, (N, input_nc, H, W), jnp.float32)

    model = DownsamplerStackNoEmbed(input_nc, enc_nc, k_p)

    outs = jax.block_until_ready(model(x))

    expected_shapes = [
        (N, 1, enc_nc[0], 16, 16),
        (N, 1, enc_nc[2], 8, 8),
        (N, 1, enc_nc[4], 4, 4),
        (N, 1, enc_nc[6], 2, 2),
        (N, 1, enc_nc[8], 1, 1),
    ]
    for o, es in zip(outs, expected_shapes):
        assert o.shape == es, (o.shape, es)

    # numeric check against the XLA conv reference
    refs = jax.block_until_ready(_ref_forward(model, x))
    for o, r in zip(outs, refs):
        err = float(jnp.max(jnp.abs(o - r)))
        assert jnp.allclose(o, r, atol=1e-2, rtol=1e-2), err

    print("KERNEL_OK")
</pallas_src>

<mosaic_0001>
module attributes {stable_mosaic.version = 11 : i64} {
  func.func @_fused_kernel(%arg0: i32, %arg1: memref<1x16x48xf32, #tpu.memory_space<vmem>>, %arg2: memref<5x16x16xf32, #tpu.memory_space<vmem>>, %arg3: memref<5x48x192xf32, #tpu.memory_space<vmem>>, %arg4: memref<1x192xf32, #tpu.memory_space<vmem>>, %arg5: memref<3x8x16xf32, #tpu.memory_space<vmem>>, %arg6: memref<3x192x192xf32, #tpu.memory_space<vmem>>, %arg7: memref<1x192xf32, #tpu.memory_space<vmem>>, %arg8: memref<3x8x8xf32, #tpu.memory_space<vmem>>, %arg9: memref<3x192x192xf32, #tpu.memory_space<vmem>>, %arg10: memref<1x192xf32, #tpu.memory_space<vmem>>, %arg11: memref<3x4x8xf32, #tpu.memory_space<vmem>>, %arg12: memref<3x192x96xf32, #tpu.memory_space<vmem>>, %arg13: memref<1x96xf32, #tpu.memory_space<vmem>>, %arg14: memref<3x4x4xf32, #tpu.memory_space<vmem>>, %arg15: memref<3x96x96xf32, #tpu.memory_space<vmem>>, %arg16: memref<1x96xf32, #tpu.memory_space<vmem>>, %arg17: memref<3x2x4xf32, #tpu.memory_space<vmem>>, %arg18: memref<3x96x96xf32, #tpu.memory_space<vmem>>, %arg19: memref<1x96xf32, #tpu.memory_space<vmem>>, %arg20: memref<3x2x2xf32, #tpu.memory_space<vmem>>, %arg21: memref<3x96x96xf32, #tpu.memory_space<vmem>>, %arg22: memref<1x96xf32, #tpu.memory_space<vmem>>, %arg23: memref<3x1x2xf32, #tpu.memory_space<vmem>>, %arg24: memref<3x96x96xf32, #tpu.memory_space<vmem>>, %arg25: memref<1x96xf32, #tpu.memory_space<vmem>>, %arg26: memref<3x1x1xf32, #tpu.memory_space<vmem>>, %arg27: memref<3x96x96xf32, #tpu.memory_space<vmem>>, %arg28: memref<1x96xf32, #tpu.memory_space<vmem>>, %arg29: memref<1x16x192xf32, #tpu.memory_space<vmem>>, %arg30: memref<1x8x192xf32, #tpu.memory_space<vmem>>, %arg31: memref<1x4x96xf32, #tpu.memory_space<vmem>>, %arg32: memref<1x2x96xf32, #tpu.memory_space<vmem>>, %arg33: memref<1x1x96xf32, #tpu.memory_space<vmem>>) attributes {dimension_semantics = [#tpu.dimension_semantics<parallel>], iteration_bounds = array<i64: 2>, scalar_prefetch = 0 : i64, scratch_operands = 0 : i64, tpu.core_type = #tpu.core_type<tc>, window_params = [{transform_indices = @transform_0, window_bounds = array<i64: 1, 16, 48>}, {pipeline_mode = #tpu.pipeline_mode<synchronous>, transform_indices = @transform_1, window_bounds = array<i64: 5, 16, 16>}, {pipeline_mode = #tpu.pipeline_mode<synchronous>, transform_indices = @transform_2, window_bounds = array<i64: 5, 48, 192>}, {pipeline_mode = #tpu.pipeline_mode<synchronous>, transform_indices = @transform_3, window_bounds = array<i64: 1, 192>}, {pipeline_mode = #tpu.pipeline_mode<synchronous>, transform_indices = @transform_4, window_bounds = array<i64: 3, 8, 16>}, {pipeline_mode = #tpu.pipeline_mode<synchronous>, transform_indices = @transform_5, window_bounds = array<i64: 3, 192, 192>}, {pipeline_mode = #tpu.pipeline_mode<synchronous>, transform_indices = @transform_6, window_bounds = array<i64: 1, 192>}, {pipeline_mode = #tpu.pipeline_mode<synchronous>, transform_indices = @transform_7, window_bounds = array<i64: 3, 8, 8>}, {pipeline_mode = #tpu.pipeline_mode<synchronous>, transform_indices = @transform_8, window_bounds = array<i64: 3, 192, 192>}, {pipeline_mode = #tpu.pipeline_mode<synchronous>, transform_indices = @transform_9, window_bounds = array<i64: 1, 192>}, {pipeline_mode = #tpu.pipeline_mode<synchronous>, transform_indices = @transform_10, window_bounds = array<i64: 3, 4, 8>}, {pipeline_mode = #tpu.pipeline_mode<synchronous>, transform_indices = @transform_11, window_bounds = array<i64: 3, 192, 96>}, {pipeline_mode = #tpu.pipeline_mode<synchronous>, transform_indices = @transform_12, window_bounds = array<i64: 1, 96>}, {pipeline_mode = #tpu.pipeline_mode<synchronous>, transform_indices = @transform_13, window_bounds = array<i64: 3, 4, 4>}, {pipeline_mode = #tpu.pipeline_mode<synchronous>, transform_indices = @transform_14, window_bounds = array<i64: 3, 96, 96>}, {pipeline_mode = #tpu.pipeline_mode<synchronous>, transform_indices = @transform_15, window_bounds = array<i64: 1, 96>}, {pipeline_mode = #tpu.pipeline_mode<synchronous>, transform_indices = @transform_16, window_bounds = array<i64: 3, 2, 4>}, {pipeline_mode = #tpu.pipeline_mode<synchronous>, transform_indices = @transform_17, window_bounds = array<i64: 3, 96, 96>}, {pipeline_mode = #tpu.pipeline_mode<synchronous>, transform_indices = @transform_18, window_bounds = array<i64: 1, 96>}, {pipeline_mode = #tpu.pipeline_mode<synchronous>, transform_indices = @transform_19, window_bounds = array<i64: 3, 2, 2>}, {pipeline_mode = #tpu.pipeline_mode<synchronous>, transform_indices = @transform_20, window_bounds = array<i64: 3, 96, 96>}, {pipeline_mode = #tpu.pipeline_mode<synchronous>, transform_indices = @transform_21, window_bounds = array<i64: 1, 96>}, {pipeline_mode = #tpu.pipeline_mode<synchronous>, transform_indices = @transform_22, window_bounds = array<i64: 3, 1, 2>}, {pipeline_mode = #tpu.pipeline_mode<synchronous>, transform_indices = @transform_23, window_bounds = array<i64: 3, 96, 96>}, {pipeline_mode = #tpu.pipeline_mode<synchronous>, transform_indices = @transform_24, window_bounds = array<i64: 1, 96>}, {pipeline_mode = #tpu.pipeline_mode<synchronous>, transform_indices = @transform_25, window_bounds = array<i64: 3, 1, 1>}, {pipeline_mode = #tpu.pipeline_mode<synchronous>, transform_indices = @transform_26, window_bounds = array<i64: 3, 96, 96>}, {pipeline_mode = #tpu.pipeline_mode<synchronous>, transform_indices = @transform_27, window_bounds = array<i64: 1, 96>}, {transform_indices = @transform_28, window_bounds = array<i64: 1, 16, 192>}, {transform_indices = @transform_29, window_bounds = array<i64: 1, 8, 192>}, {transform_indices = @transform_30, window_bounds = array<i64: 1, 4, 96>}, {transform_indices = @transform_31, window_bounds = array<i64: 1, 2, 96>}, {transform_indices = @transform_32, window_bounds = array<i64: 1, 1, 96>}]} {
    %c0 = arith.constant 0 : index
    %c0_0 = arith.constant 0 : index
    %c0_1 = arith.constant 0 : index
    %0 = vector.load %arg1[%c0, %c0_0, %c0_1] : memref<1x16x48xf32, #tpu.memory_space<vmem>>, vector<1x16x48xf32>
    %1 = vector.shape_cast %0 : vector<1x16x48xf32> to vector<16x48xf32>
    %c0_2 = arith.constant 0 : index
    %c0_3 = arith.constant 0 : index
    %c0_4 = arith.constant 0 : index
    %2 = vector.load %arg2[%c0_2, %c0_3, %c0_4] : memref<5x16x16xf32, #tpu.memory_space<vmem>>, vector<1x16x16xf32>
    %3 = vector.shape_cast %2 : vector<1x16x16xf32> to vector<16x16xf32>
    %cst = arith.constant dense<0.000000e+00> : vector<16x48xf32>
    %4 = tpu.matmul %3, %1, %cst {dimension_numbers = #tpu.dot_dimension_numbers<[1], [0], [0], [1], [0, 0, 1, 1], [], []>} : vector<16x16xf32>, vector<16x48xf32>, vector<16x48xf32> -> vector<16x48xf32>
    %c0_5 = arith.constant 0 : index
    %c0_6 = arith.constant 0 : index
    %c0_7 = arith.constant 0 : index
    %5 = vector.load %arg3[%c0_5, %c0_6, %c0_7] : memref<5x48x192xf32, #tpu.memory_space<vmem>>, vector<1x48x192xf32>
    %6 = vector.shape_cast %5 : vector<1x48x192xf32> to vector<48x192xf32>
    %cst_8 = arith.constant dense<0.000000e+00> : vector<16x192xf32>
    %7 = tpu.matmul %4, %6, %cst_8 {dimension_numbers = #tpu.dot_dimension_numbers<[1], [0], [0], [1], [0, 0, 1, 1], [], []>} : vector<16x48xf32>, vector<48x192xf32>, vector<16x192xf32> -> vector<16x192xf32>
    %c1 = arith.constant 1 : index
    %c0_9 = arith.constant 0 : index
    %c0_10 = arith.constant 0 : index
    %8 = vector.load %arg2[%c1, %c0_9, %c0_10] : memref<5x16x16xf32, #tpu.memory_space<vmem>>, vector<1x16x16xf32>
    %9 = vector.shape_cast %8 : vector<1x16x16xf32> to vector<16x16xf32>
    %cst_11 = arith.constant dense<0.000000e+00> : vector<16x48xf32>
    %10 = tpu.matmul %9, %1, %cst_11 {dimension_numbers = #tpu.dot_dimension_numbers<[1], [0], [0], [1], [0, 0, 1, 1], [], []>} : vector<16x16xf32>, vector<16x48xf32>, vector<16x48xf32> -> vector<16x48xf32>
    %c1_12 = arith.constant 1 : index
    %c0_13 = arith.constant 0 : index
    %c0_14 = arith.constant 0 : index
    %11 = vector.load %arg3[%c1_12, %c0_13, %c0_14] : memref<5x48x192xf32, #tpu.memory_space<vmem>>, vector<1x48x192xf32>
    %12 = vector.shape_cast %11 : vector<1x48x192xf32> to vector<48x192xf32>
    %cst_15 = arith.constant dense<0.000000e+00> : vector<16x192xf32>
    %13 = tpu.matmul %10, %12, %cst_15 {dimension_numbers = #tpu.dot_dimension_numbers<[1], [0], [0], [1], [0, 0, 1, 1], [], []>} : vector<16x48xf32>, vector<48x192xf32>, vector<16x192xf32> -> vector<16x192xf32>
    %14 = arith.addf %7, %13 : vector<16x192xf32>
    %c2 = arith.constant 2 : index
    %c0_16 = arith.constant 0 : index
    %c0_17 = arith.constant 0 : index
    %15 = vector.load %arg2[%c2, %c0_16, %c0_17] : memref<5x16x16xf32, #tpu.memory_space<vmem>>, vector<1x16x16xf32>
    %16 = vector.shape_cast %15 : vector<1x16x16xf32> to vector<16x16xf32>
    %cst_18 = arith.constant dense<0.000000e+00> : vector<16x48xf32>
    %17 = tpu.matmul %16, %1, %cst_18 {dimension_numbers = #tpu.dot_dimension_numbers<[1], [0], [0], [1], [0, 0, 1, 1], [], []>} : vector<16x16xf32>, vector<16x48xf32>, vector<16x48xf32> -> vector<16x48xf32>
    %c2_19 = arith.constant 2 : index
    %c0_20 = arith.constant 0 : index
    %c0_21 = arith.constant 0 : index
    %18 = vector.load %arg3[%c2_19, %c0_20, %c0_21] : memref<5x48x192xf32, #tpu.memory_space<vmem>>, vector<1x48x192xf32>
    %19 = vector.shape_cast %18 : vector<1x48x192xf32> to vector<48x192xf32>
    %cst_22 = arith.constant dense<0.000000e+00> : vector<16x192xf32>
    %20 = tpu.matmul %17, %19, %cst_22 {dimension_numbers = #tpu.dot_dimension_numbers<[1], [0], [0], [1], [0, 0, 1, 1], [], []>} : vector<16x48xf32>, vector<48x192xf32>, vector<16x192xf32> -> vector<16x192xf32>
    %21 = arith.addf %14, %20 : vector<16x192xf32>
    %c3 = arith.constant 3 : index
    %c0_23 = arith.constant 0 : index
    %c0_24 = arith.constant 0 : index
    %22 = vector.load %arg2[%c3, %c0_23, %c0_24] : memref<5x16x16xf32, #tpu.memory_space<vmem>>, vector<1x16x16xf32>
    %23 = vector.shape_cast %22 : vector<1x16x16xf32> to vector<16x16xf32>
    %cst_25 = arith.constant dense<0.000000e+00> : vector<16x48xf32>
    %24 = tpu.matmul %23, %1, %cst_25 {dimension_numbers = #tpu.dot_dimension_numbers<[1], [0], [0], [1], [0, 0, 1, 1], [], []>} : vector<16x16xf32>, vector<16x48xf32>, vector<16x48xf32> -> vector<16x48xf32>
    %c3_26 = arith.constant 3 : index
    %c0_27 = arith.constant 0 : index
    %c0_28 = arith.constant 0 : index
    %25 = vector.load %arg3[%c3_26, %c0_27, %c0_28] : memref<5x48x192xf32, #tpu.memory_space<vmem>>, vector<1x48x192xf32>
    %26 = vector.shape_cast %25 : vector<1x48x192xf32> to vector<48x192xf32>
    %cst_29 = arith.constant dense<0.000000e+00> : vector<16x192xf32>
    %27 = tpu.matmul %24, %26, %cst_29 {dimension_numbers = #tpu.dot_dimension_numbers<[1], [0], [0], [1], [0, 0, 1, 1], [], []>} : vector<16x48xf32>, vector<48x192xf32>, vector<16x192xf32> -> vector<16x192xf32>
    %28 = arith.addf %21, %27 : vector<16x192xf32>
    %c4 = arith.constant 4 : index
    %c0_30 = arith.constant 0 : index
    %c0_31 = arith.constant 0 : index
    %29 = vector.load %arg2[%c4, %c0_30, %c0_31] : memref<5x16x16xf32, #tpu.memory_space<vmem>>, vector<1x16x16xf32>
    %30 = vector.shape_cast %29 : vector<1x16x16xf32> to vector<16x16xf32>
    %cst_32 = arith.constant dense<0.000000e+00> : vector<16x48xf32>
    %31 = tpu.matmul %30, %1, %cst_32 {dimension_numbers = #tpu.dot_dimension_numbers<[1], [0], [0], [1], [0, 0, 1, 1], [], []>} : vector<16x16xf32>, vector<16x48xf32>, vector<16x48xf32> -> vector<16x48xf32>
    %c4_33 = arith.constant 4 : index
    %c0_34 = arith.constant 0 : index
    %c0_35 = arith.constant 0 : index
    %32 = vector.load %arg3[%c4_33, %c0_34, %c0_35] : memref<5x48x192xf32, #tpu.memory_space<vmem>>, vector<1x48x192xf32>
    %33 = vector.shape_cast %32 : vector<1x48x192xf32> to vector<48x192xf32>
    %cst_36 = arith.constant dense<0.000000e+00> : vector<16x192xf32>
    %34 = tpu.matmul %31, %33, %cst_36 {dimension_numbers = #tpu.dot_dimension_numbers<[1], [0], [0], [1], [0, 0, 1, 1], [], []>} : vector<16x48xf32>, vector<48x192xf32>, vector<16x192xf32> -> vector<16x192xf32>
    %35 = arith.addf %28, %34 : vector<16x192xf32>
    %c0_37 = arith.constant 0 : index
    %c0_38 = arith.constant 0 : index
    %36 = vector.load %arg4[%c0_37, %c0_38] : memref<1x192xf32, #tpu.memory_space<vmem>>, vector<1x192xf32>
    %37 = vector.broadcast %36 : vector<1x192xf32> to vector<16x192xf32>
    %38 = arith.addf %35, %37 : vector<16x192xf32>
    %cst_39 = arith.constant 0.000000e+00 : f32
    %39 = vector.broadcast %cst_39 : f32 to vector<16x192xf32>
    %40 = arith.cmpf ogt, %38, %39 : vector<16x192xf32>
    %cst_40 = arith.constant 2.000000e-01 : f32
    %41 = vector.broadcast %cst_40 : f32 to vector<16x192xf32>
    %42 = arith.mulf %41, %38 : vector<16x192xf32>
    %43 = arith.select %40, %38, %42 : vector<16x192xi1>, vector<16x192xf32>
    %c0_41 = arith.constant 0 : index
    %c0_42 = arith.constant 0 : index
    %c0_43 = arith.constant 0 : index
    %44 = vector.load %arg29[%c0_41, %c0_42, %c0_43] : memref<1x16x192xf32, #tpu.memory_space<vmem>>, vector<1x16x192xf32>
    %45 = vector.shape_cast %44 : vector<1x16x192xf32> to vector<16x192xf32>
    %46 = vector.shape_cast %43 : vector<16x192xf32> to vector<1x16x192xf32>
    tpu.vector_store %arg29[%c0_41, %c0_42, %c0_43], %46 {strides = array<i32>} : memref<1x16x192xf32, #tpu.memory_space<vmem>>, vector<1x16x192xf32>,
    %c0_44 = arith.constant 0 : index
    %c0_45 = arith.constant 0 : index
    %c0_46 = arith.constant 0 : index
    %47 = vector.load %arg5[%c0_44, %c0_45, %c0_46] : memref<3x8x16xf32, #tpu.memory_space<vmem>>, vector<1x8x16xf32>
    %48 = vector.shape_cast %47 : vector<1x8x16xf32> to vector<8x16xf32>
    %cst_47 = arith.constant dense<0.000000e+00> : vector<8x192xf32>
    %49 = tpu.matmul %48, %43, %cst_47 {dimension_numbers = #tpu.dot_dimension_numbers<[1], [0], [0], [1], [0, 0, 1, 1], [], []>} : vector<8x16xf32>, vector<16x192xf32>, vector<8x192xf32> -> vector<8x192xf32>
    %c0_48 = arith.constant 0 : index
    %c0_49 = arith.constant 0 : index
    %c0_50 = arith.constant 0 : index
    %50 = vector.load %arg6[%c0_48, %c0_49, %c0_50] : memref<3x192x192xf32, #tpu.memory_space<vmem>>, vector<1x192x192xf32>
    %51 = vector.shape_cast %50 : vector<1x192x192xf32> to vector<192x192xf32>
    %cst_51 = arith.constant dense<0.000000e+00> : vector<8x192xf32>
    %52 = tpu.matmul %49, %51, %cst_51 {dimension_numbers = #tpu.dot_dimension_numbers<[1], [0], [0], [1], [0, 0, 1, 1], [], []>} : vector<8x192xf32>, vector<192x192xf32>, vector<8x192xf32> -> vector<8x192xf32>
    %c1_52 = arith.constant 1 : index
    %c0_53 = arith.constant 0 : index
    %c0_54 = arith.constant 0 : index
    %53 = vector.load %arg5[%c1_52, %c0_53, %c0_54] : memref<3x8x16xf32, #tpu.memory_space<vmem>>, vector<1x8x16xf32>
    %54 = vector.shape_cast %53 : vector<1x8x16xf32> to vector<8x16xf32>
    %cst_55 = arith.constant dense<0.000000e+00> : vector<8x192xf32>
    %55 = tpu.matmul %54, %43, %cst_55 {dimension_numbers = #tpu.dot_dimension_numbers<[1], [0], [0], [1], [0, 0, 1, 1], [], []>} : vector<8x16xf32>, vector<16x192xf32>, vector<8x192xf32> -> vector<8x192xf32>
    %c1_56 = arith.constant 1 : index
    %c0_57 = arith.constant 0 : index
    %c0_58 = arith.constant 0 : index
    %56 = vector.load %arg6[%c1_56, %c0_57, %c0_58] : memref<3x192x192xf32, #tpu.memory_space<vmem>>, vector<1x192x192xf32>
    %57 = vector.shape_cast %56 : vector<1x192x192xf32> to vector<192x192xf32>
    %cst_59 = arith.constant dense<0.000000e+00> : vector<8x192xf32>
    %58 = tpu.matmul %55, %57, %cst_59 {dimension_numbers = #tpu.dot_dimension_numbers<[1], [0], [0], [1], [0, 0, 1, 1], [], []>} : vector<8x192xf32>, vector<192x192xf32>, vector<8x192xf32> -> vector<8x192xf32>
    %59 = arith.addf %52, %58 : vector<8x192xf32>
    %c2_60 = arith.constant 2 : index
    %c0_61 = arith.constant 0 : index
    %c0_62 = arith.constant 0 : index
    %60 = vector.load %arg5[%c2_60, %c0_61, %c0_62] : memref<3x8x16xf32, #tpu.memory_space<vmem>>, vector<1x8x16xf32>
    %61 = vector.shape_cast %60 : vector<1x8x16xf32> to vector<8x16xf32>
    %cst_63 = arith.constant dense<0.000000e+00> : vector<8x192xf32>
    %62 = tpu.matmul %61, %43, %cst_63 {dimension_numbers = #tpu.dot_dimension_numbers<[1], [0], [0], [1], [0, 0, 1, 1], [], []>} : vector<8x16xf32>, vector<16x192xf32>, vector<8x192xf32> -> vector<8x192xf32>
    %c2_64 = arith.constant 2 : index
    %c0_65 = arith.constant 0 : index
    %c0_66 = arith.constant 0 : index
    %63 = vector.load %arg6[%c2_64, %c0_65, %c0_66] : memref<3x192x192xf32, #tpu.memory_space<vmem>>, vector<1x192x192xf32>
    %64 = vector.shape_cast %63 : vector<1x192x192xf32> to vector<192x192xf32>
    %cst_67 = arith.constant dense<0.000000e+00> : vector<8x192xf32>
    %65 = tpu.matmul %62, %64, %cst_67 {dimension_numbers = #tpu.dot_dimension_numbers<[1], [0], [0], [1], [0, 0, 1, 1], [], []>} : vector<8x192xf32>, vector<192x192xf32>, vector<8x192xf32> -> vector<8x192xf32>
    %66 = arith.addf %59, %65 : vector<8x192xf32>
    %c0_68 = arith.constant 0 : index
    %c0_69 = arith.constant 0 : index
    %67 = vector.load %arg7[%c0_68, %c0_69] : memref<1x192xf32, #tpu.memory_space<vmem>>, vector<1x192xf32>
    %68 = vector.broadcast %67 : vector<1x192xf32> to vector<8x192xf32>
    %69 = arith.addf %66, %68 : vector<8x192xf32>
    %cst_70 = arith.constant 0.000000e+00 : f32
    %70 = vector.broadcast %cst_70 : f32 to vector<8x192xf32>
    %71 = arith.cmpf ogt, %69, %70 : vector<8x192xf32>
    %cst_71 = arith.constant 2.000000e-01 : f32
    %72 = vector.broadcast %cst_71 : f32 to vector<8x192xf32>
    %73 = arith.mulf %72, %69 : vector<8x192xf32>
    %74 = arith.select %71, %69, %73 : vector<8x192xi1>, vector<8x192xf32>
    %c0_72 = arith.constant 0 : index
    %c0_73 = arith.constant 0 : index
    %c0_74 = arith.constant 0 : index
    %75 = vector.load %arg8[%c0_72, %c0_73, %c0_74] : memref<3x8x8xf32, #tpu.memory_space<vmem>>, vector<1x8x8xf32>
    %76 = vector.shape_cast %75 : vector<1x8x8xf32> to vector<8x8xf32>
    %cst_75 = arith.constant dense<0.000000e+00> : vector<8x192xf32>
    %77 = tpu.matmul %76, %74, %cst_75 {dimension_numbers = #tpu.dot_dimension_numbers<[1], [0], [0], [1], [0, 0, 1, 1], [], []>} : vector<8x8xf32>, vector<8x192xf32>, vector<8x192xf32> -> vector<8x192xf32>
    %c0_76 = arith.constant 0 : index
    %c0_77 = arith.constant 0 : index
    %c0_78 = arith.constant 0 : index
    %78 = vector.load %arg9[%c0_76, %c0_77, %c0_78] : memref<3x192x192xf32, #tpu.memory_space<vmem>>, vector<1x192x192xf32>
    %79 = vector.shape_cast %78 : vector<1x192x192xf32> to vector<192x192xf32>
    %cst_79 = arith.constant dense<0.000000e+00> : vector<8x192xf32>
    %80 = tpu.matmul %77, %79, %cst_79 {dimension_numbers = #tpu.dot_dimension_numbers<[1], [0], [0], [1], [0, 0, 1, 1], [], []>} : vector<8x192xf32>, vector<192x192xf32>, vector<8x192xf32> -> vector<8x192xf32>
    %c1_80 = arith.constant 1 : index
    %c0_81 = arith.constant 0 : index
    %c0_82 = arith.constant 0 : index
    %81 = vector.load %arg8[%c1_80, %c0_81, %c0_82] : memref<3x8x8xf32, #tpu.memory_space<vmem>>, vector<1x8x8xf32>
    %82 = vector.shape_cast %81 : vector<1x8x8xf32> to vector<8x8xf32>
    %cst_83 = arith.constant dense<0.000000e+00> : vector<8x192xf32>
    %83 = tpu.matmul %82, %74, %cst_83 {dimension_numbers = #tpu.dot_dimension_numbers<[1], [0], [0], [1], [0, 0, 1, 1], [], []>} : vector<8x8xf32>, vector<8x192xf32>, vector<8x192xf32> -> vector<8x192xf32>
    %c1_84 = arith.constant 1 : index
    %c0_85 = arith.constant 0 : index
    %c0_86 = arith.constant 0 : index
    %84 = vector.load %arg9[%c1_84, %c0_85, %c0_86] : memref<3x192x192xf32, #tpu.memory_space<vmem>>, vector<1x192x192xf32>
    %85 = vector.shape_cast %84 : vector<1x192x192xf32> to vector<192x192xf32>
    %cst_87 = arith.constant dense<0.000000e+00> : vector<8x192xf32>
    %86 = tpu.matmul %83, %85, %cst_87 {dimension_numbers = #tpu.dot_dimension_numbers<[1], [0], [0], [1], [0, 0, 1, 1], [], []>} : vector<8x192xf32>, vector<192x192xf32>, vector<8x192xf32> -> vector<8x192xf32>
    %87 = arith.addf %80, %86 : vector<8x192xf32>
    %c2_88 = arith.constant 2 : index
    %c0_89 = arith.constant 0 : index
    %c0_90 = arith.constant 0 : index
    %88 = vector.load %arg8[%c2_88, %c0_89, %c0_90] : memref<3x8x8xf32, #tpu.memory_space<vmem>>, vector<1x8x8xf32>
    %89 = vector.shape_cast %88 : vector<1x8x8xf32> to vector<8x8xf32>
    %cst_91 = arith.constant dense<0.000000e+00> : vector<8x192xf32>
    %90 = tpu.matmul %89, %74, %cst_91 {dimension_numbers = #tpu.dot_dimension_numbers<[1], [0], [0], [1], [0, 0, 1, 1], [], []>} : vector<8x8xf32>, vector<8x192xf32>, vector<8x192xf32> -> vector<8x192xf32>
    %c2_92 = arith.constant 2 : index
    %c0_93 = arith.constant 0 : index
    %c0_94 = arith.constant 0 : index
    %91 = vector.load %arg9[%c2_92, %c0_93, %c0_94] : memref<3x192x192xf32, #tpu.memory_space<vmem>>, vector<1x192x192xf32>
    %92 = vector.shape_cast %91 : vector<1x192x192xf32> to vector<192x192xf32>
    %cst_95 = arith.constant dense<0.000000e+00> : vector<8x192xf32>
    %93 = tpu.matmul %90, %92, %cst_95 {dimension_numbers = #tpu.dot_dimension_numbers<[1], [0], [0], [1], [0, 0, 1, 1], [], []>} : vector<8x192xf32>, vector<192x192xf32>, vector<8x192xf32> -> vector<8x192xf32>
    %94 = arith.addf %87, %93 : vector<8x192xf32>
    %c0_96 = arith.constant 0 : index
    %c0_97 = arith.constant 0 : index
    %95 = vector.load %arg10[%c0_96, %c0_97] : memref<1x192xf32, #tpu.memory_space<vmem>>, vector<1x192xf32>
    %96 = vector.broadcast %95 : vector<1x192xf32> to vector<8x192xf32>
    %97 = arith.addf %94, %96 : vector<8x192xf32>
    %cst_98 = arith.constant 0.000000e+00 : f32
    %98 = vector.broadcast %cst_98 : f32 to vector<8x192xf32>
    %99 = arith.cmpf ogt, %97, %98 : vector<8x192xf32>
    %cst_99 = arith.constant 2.000000e-01 : f32
    %100 = vector.broadcast %cst_99 : f32 to vector<8x192xf32>
    %101 = arith.mulf %100, %97 : vector<8x192xf32>
    %102 = arith.select %99, %97, %101 : vector<8x192xi1>, vector<8x192xf32>
    %c0_100 = arith.constant 0 : index
    %c0_101 = arith.constant 0 : index
    %c0_102 = arith.constant 0 : index
    %103 = vector.load %arg30[%c0_100, %c0_101, %c0_102] : memref<1x8x192xf32, #tpu.memory_space<vmem>>, vector<1x8x192xf32>
    %104 = vector.shape_cast %103 : vector<1x8x192xf32> to vector<8x192xf32>
    %105 = vector.shape_cast %102 : vector<8x192xf32> to vector<1x8x192xf32>
    tpu.vector_store %arg30[%c0_100, %c0_101, %c0_102], %105 {strides = array<i32>} : memref<1x8x192xf32, #tpu.memory_space<vmem>>, vector<1x8x192xf32>,
    %c0_103 = arith.constant 0 : index
    %c0_104 = arith.constant 0 : index
    %c0_105 = arith.constant 0 : index
    %106 = vector.load %arg11[%c0_103, %c0_104, %c0_105] : memref<3x4x8xf32, #tpu.memory_space<vmem>>, vector<1x4x8xf32>
    %107 = vector.shape_cast %106 : vector<1x4x8xf32> to vector<4x8xf32>
    %cst_106 = arith.constant dense<0.000000e+00> : vector<4x192xf32>
    %108 = tpu.matmul %107, %102, %cst_106 {dimension_numbers = #tpu.dot_dimension_numbers<[1], [0], [0], [1], [0, 0, 1, 1], [], []>} : vector<4x8xf32>, vector<8x192xf32>, vector<4x192xf32> -> vector<4x192xf32>
    %c0_107 = arith.constant 0 : index
    %c0_108 = arith.constant 0 : index
    %c0_109 = arith.constant 0 : index
    %109 = vector.load %arg12[%c0_107, %c0_108, %c0_109] : memref<3x192x96xf32, #tpu.memory_space<vmem>>, vector<1x192x96xf32>
    %110 = vector.shape_cast %109 : vector<1x192x96xf32> to vector<192x96xf32>
    %cst_110 = arith.constant dense<0.000000e+00> : vector<4x96xf32>
    %111 = tpu.matmul %108, %110, %cst_110 {dimension_numbers = #tpu.dot_dimension_numbers<[1], [0], [0], [1], [0, 0, 1, 1], [], []>} : vector<4x192xf32>, vector<192x96xf32>, vector<4x96xf32> -> vector<4x96xf32>
    %c1_111 = arith.constant 1 : index
    %c0_112 = arith.constant 0 : index
    %c0_113 = arith.constant 0 : index
    %112 = vector.load %arg11[%c1_111, %c0_112, %c0_113] : memref<3x4x8xf32, #tpu.memory_space<vmem>>, vector<1x4x8xf32>
    %113 = vector.shape_cast %112 : vector<1x4x8xf32> to vector<4x8xf32>
    %cst_114 = arith.constant dense<0.000000e+00> : vector<4x192xf32>
    %114 = tpu.matmul %113, %102, %cst_114 {dimension_numbers = #tpu.dot_dimension_numbers<[1], [0], [0], [1], [0, 0, 1, 1], [], []>} : vector<4x8xf32>, vector<8x192xf32>, vector<4x192xf32> -> vector<4x192xf32>
    %c1_115 = arith.constant 1 : index
    %c0_116 = arith.constant 0 : index
    %c0_117 = arith.constant 0 : index
    %115 = vector.load %arg12[%c1_115, %c0_116, %c0_117] : memref<3x192x96xf32, #tpu.memory_space<vmem>>, vector<1x192x96xf32>
    %116 = vector.shape_cast %115 : vector<1x192x96xf32> to vector<192x96xf32>
    %cst_118 = arith.constant dense<0.000000e+00> : vector<4x96xf32>
    %117 = tpu.matmul %114, %116, %cst_118 {dimension_numbers = #tpu.dot_dimension_numbers<[1], [0], [0], [1], [0, 0, 1, 1], [], []>} : vector<4x192xf32>, vector<192x96xf32>, vector<4x96xf32> -> vector<4x96xf32>
    %118 = arith.addf %111, %117 : vector<4x96xf32>
    %c2_119 = arith.constant 2 : index
    %c0_120 = arith.constant 0 : index
    %c0_121 = arith.constant 0 : index
    %119 = vector.load %arg11[%c2_119, %c0_120, %c0_121] : memref<3x4x8xf32, #tpu.memory_space<vmem>>, vector<1x4x8xf32>
    %120 = vector.shape_cast %119 : vector<1x4x8xf32> to vector<4x8xf32>
    %cst_122 = arith.constant dense<0.000000e+00> : vector<4x192xf32>
    %121 = tpu.matmul %120, %102, %cst_122 {dimension_numbers = #tpu.dot_dimension_numbers<[1], [0], [0], [1], [0, 0, 1, 1], [], []>} : vector<4x8xf32>, vector<8x192xf32>, vector<4x192xf32> -> vector<4x192xf32>
    %c2_123 = arith.constant 2 : index
    %c0_124 = arith.constant 0 : index
    %c0_125 = arith.constant 0 : index
    %122 = vector.load %arg12[%c2_123, %c0_124, %c0_125] : memref<3x192x96xf32, #tpu.memory_space<vmem>>, vector<1x192x96xf32>
    %123 = vector.shape_cast %122 : vector<1x192x96xf32> to vector<192x96xf32>
    %cst_126 = arith.constant dense<0.000000e+00> : vector<4x96xf32>
    %124 = tpu.matmul %121, %123, %cst_126 {dimension_numbers = #tpu.dot_dimension_numbers<[1], [0], [0], [1], [0, 0, 1, 1], [], []>} : vector<4x192xf32>, vector<192x96xf32>, vector<4x96xf32> -> vector<4x96xf32>
    %125 = arith.addf %118, %124 : vector<4x96xf32>
    %c0_127 = arith.constant 0 : index
    %c0_128 = arith.constant 0 : index
    %126 = vector.load %arg13[%c0_127, %c0_128] : memref<1x96xf32, #tpu.memory_space<vmem>>, vector<1x96xf32>
    %127 = vector.broadcast %126 : vector<1x96xf32> to vector<4x96xf32>
    %128 = arith.addf %125, %127 : vector<4x96xf32>
    %cst_129 = arith.constant 0.000000e+00 : f32
    %129 = vector.broadcast %cst_129 : f32 to vector<4x96xf32>
    %130 = arith.cmpf ogt, %128, %129 : vector<4x96xf32>
    %cst_130 = arith.constant 2.000000e-01 : f32
    %131 = vector.broadcast %cst_130 : f32 to vector<4x96xf32>
    %132 = arith.mulf %131, %128 : vector<4x96xf32>
    %133 = arith.select %130, %128, %132 : vector<4x96xi1>, vector<4x96xf32>
    %c0_131 = arith.constant 0 : index
    %c0_132 = arith.constant 0 : index
    %c0_133 = arith.constant 0 : index
    %134 = vector.load %arg14[%c0_131, %c0_132, %c0_133] : memref<3x4x4xf32, #tpu.memory_space<vmem>>, vector<1x4x4xf32>
    %135 = vector.shape_cast %134 : vector<1x4x4xf32> to vector<4x4xf32>
    %cst_134 = arith.constant dense<0.000000e+00> : vector<4x96xf32>
    %136 = tpu.matmul %135, %133, %cst_134 {dimension_numbers = #tpu.dot_dimension_numbers<[1], [0], [0], [1], [0, 0, 1, 1], [], []>} : vector<4x4xf32>, vector<4x96xf32>, vector<4x96xf32> -> vector<4x96xf32>
    %c0_135 = arith.constant 0 : index
    %c0_136 = arith.constant 0 : index
    %c0_137 = arith.constant 0 : index
    %137 = vector.load %arg15[%c0_135, %c0_136, %c0_137] : memref<3x96x96xf32, #tpu.memory_space<vmem>>, vector<1x96x96xf32>
    %138 = vector.shape_cast %137 : vector<1x96x96xf32> to vector<96x96xf32>
    %cst_138 = arith.constant dense<0.000000e+00> : vector<4x96xf32>
    %139 = tpu.matmul %136, %138, %cst_138 {dimension_numbers = #tpu.dot_dimension_numbers<[1], [0], [0], [1], [0, 0, 1, 1], [], []>} : vector<4x96xf32>, vector<96x96xf32>, vector<4x96xf32> -> vector<4x96xf32>
    %c1_139 = arith.constant 1 : index
    %c0_140 = arith.constant 0 : index
    %c0_141 = arith.constant 0 : index
    %140 = vector.load %arg14[%c1_139, %c0_140, %c0_141] : memref<3x4x4xf32, #tpu.memory_space<vmem>>, vector<1x4x4xf32>
    %141 = vector.shape_cast %140 : vector<1x4x4xf32> to vector<4x4xf32>
    %cst_142 = arith.constant dense<0.000000e+00> : vector<4x96xf32>
    %142 = tpu.matmul %141, %133, %cst_142 {dimension_numbers = #tpu.dot_dimension_numbers<[1], [0], [0], [1], [0, 0, 1, 1], [], []>} : vector<4x4xf32>, vector<4x96xf32>, vector<4x96xf32> -> vector<4x96xf32>
    %c1_143 = arith.constant 1 : index
    %c0_144 = arith.constant 0 : index
    %c0_145 = arith.constant 0 : index
    %143 = vector.load %arg15[%c1_143, %c0_144, %c0_145] : memref<3x96x96xf32, #tpu.memory_space<vmem>>, vector<1x96x96xf32>
    %144 = vector.shape_cast %143 : vector<1x96x96xf32> to vector<96x96xf32>
    %cst_146 = arith.constant dense<0.000000e+00> : vector<4x96xf32>
    %145 = tpu.matmul %142, %144, %cst_146 {dimension_numbers = #tpu.dot_dimension_numbers<[1], [0], [0], [1], [0, 0, 1, 1], [], []>} : vector<4x96xf32>, vector<96x96xf32>, vector<4x96xf32> -> vector<4x96xf32>
    %146 = arith.addf %139, %145 : vector<4x96xf32>
    %c2_147 = arith.constant 2 : index
    %c0_148 = arith.constant 0 : index
    %c0_149 = arith.constant 0 : index
    %147 = vector.load %arg14[%c2_147, %c0_148, %c0_149] : memref<3x4x4xf32, #tpu.memory_space<vmem>>, vector<1x4x4xf32>
    %148 = vector.shape_cast %147 : vector<1x4x4xf32> to vector<4x4xf32>
    %cst_150 = arith.constant dense<0.000000e+00> : vector<4x96xf32>
    %149 = tpu.matmul %148, %133, %cst_150 {dimension_numbers = #tpu.dot_dimension_numbers<[1], [0], [0], [1], [0, 0, 1, 1], [], []>} : vector<4x4xf32>, vector<4x96xf32>, vector<4x96xf32> -> vector<4x96xf32>
    %c2_151 = arith.constant 2 : index
    %c0_152 = arith.constant 0 : index
    %c0_153 = arith.constant 0 : index
    %150 = vector.load %arg15[%c2_151, %c0_152, %c0_153] : memref<3x96x96xf32, #tpu.memory_space<vmem>>, vector<1x96x96xf32>
    %151 = vector.shape_cast %150 : vector<1x96x96xf32> to vector<96x96xf32>
    %cst_154 = arith.constant dense<0.000000e+00> : vector<4x96xf32>
    %152 = tpu.matmul %149, %151, %cst_154 {dimension_numbers = #tpu.dot_dimension_numbers<[1], [0], [0], [1], [0, 0, 1, 1], [], []>} : vector<4x96xf32>, vector<96x96xf32>, vector<4x96xf32> -> vector<4x96xf32>
    %153 = arith.addf %146, %152 : vector<4x96xf32>
    %c0_155 = arith.constant 0 : index
    %c0_156 = arith.constant 0 : index
    %154 = vector.load %arg16[%c0_155, %c0_156] : memref<1x96xf32, #tpu.memory_space<vmem>>, vector<1x96xf32>
    %155 = vector.broadcast %154 : vector<1x96xf32> to vector<4x96xf32>
    %156 = arith.addf %153, %155 : vector<4x96xf32>
    %cst_157 = arith.constant 0.000000e+00 : f32
    %157 = vector.broadcast %cst_157 : f32 to vector<4x96xf32>
    %158 = arith.cmpf ogt, %156, %157 : vector<4x96xf32>
    %cst_158 = arith.constant 2.000000e-01 : f32
    %159 = vector.broadcast %cst_158 : f32 to vector<4x96xf32>
    %160 = arith.mulf %159, %156 : vector<4x96xf32>
    %161 = arith.select %158, %156, %160 : vector<4x96xi1>, vector<4x96xf32>
    %c0_159 = arith.constant 0 : index
    %c0_160 = arith.constant 0 : index
    %c0_161 = arith.constant 0 : index
    %162 = vector.load %arg31[%c0_159, %c0_160, %c0_161] : memref<1x4x96xf32, #tpu.memory_space<vmem>>, vector<1x4x96xf32>
    %163 = vector.shape_cast %162 : vector<1x4x96xf32> to vector<4x96xf32>
    %164 = vector.shape_cast %161 : vector<4x96xf32> to vector<1x4x96xf32>
    tpu.vector_store %arg31[%c0_159, %c0_160, %c0_161], %164 {strides = array<i32>} : memref<1x4x96xf32, #tpu.memory_space<vmem>>, vector<1x4x96xf32>,
    %c0_162 = arith.constant 0 : index
    %c0_163 = arith.constant 0 : index
    %c0_164 = arith.constant 0 : index
    %165 = vector.load %arg17[%c0_162, %c0_163, %c0_164] : memref<3x2x4xf32, #tpu.memory_space<vmem>>, vector<1x2x4xf32>
    %166 = vector.shape_cast %165 : vector<1x2x4xf32> to vector<2x4xf32>
    %cst_165 = arith.constant dense<0.000000e+00> : vector<2x96xf32>
    %167 = tpu.matmul %166, %161, %cst_165 {dimension_numbers = #tpu.dot_dimension_numbers<[1], [0], [0], [1], [0, 0, 1, 1], [], []>} : vector<2x4xf32>, vector<4x96xf32>, vector<2x96xf32> -> vector<2x96xf32>
    %c0_166 = arith.constant 0 : index
    %c0_167 = arith.constant 0 : index
    %c0_168 = arith.constant 0 : index
    %168 = vector.load %arg18[%c0_166, %c0_167, %c0_168] : memref<3x96x96xf32, #tpu.memory_space<vmem>>, vector<1x96x96xf32>
    %169 = vector.shape_cast %168 : vector<1x96x96xf32> to vector<96x96xf32>
    %cst_169 = arith.constant dense<0.000000e+00> : vector<2x96xf32>
    %170 = tpu.matmul %167, %169, %cst_169 {dimension_numbers = #tpu.dot_dimension_numbers<[1], [0], [0], [1], [0, 0, 1, 1], [], []>} : vector<2x96xf32>, vector<96x96xf32>, vector<2x96xf32> -> vector<2x96xf32>
    %c1_170 = arith.constant 1 : index
    %c0_171 = arith.constant 0 : index
    %c0_172 = arith.constant 0 : index
    %171 = vector.load %arg17[%c1_170, %c0_171, %c0_172] : memref<3x2x4xf32, #tpu.memory_space<vmem>>, vector<1x2x4xf32>
    %172 = vector.shape_cast %171 : vector<1x2x4xf32> to vector<2x4xf32>
    %cst_173 = arith.constant dense<0.000000e+00> : vector<2x96xf32>
    %173 = tpu.matmul %172, %161, %cst_173 {dimension_numbers = #tpu.dot_dimension_numbers<[1], [0], [0], [1], [0, 0, 1, 1], [], []>} : vector<2x4xf32>, vector<4x96xf32>, vector<2x96xf32> -> vector<2x96xf32>
    %c1_174 = arith.constant 1 : index
    %c0_175 = arith.constant 0 : index
    %c0_176 = arith.constant 0 : index
    %174 = vector.load %arg18[%c1_174, %c0_175, %c0_176] : memref<3x96x96xf32, #tpu.memory_space<vmem>>, vector<1x96x96xf32>
    %175 = vector.shape_cast %174 : vector<1x96x96xf32> to vector<96x96xf32>
    %cst_177 = arith.constant dense<0.000000e+00> : vector<2x96xf32>
    %176 = tpu.matmul %173, %175, %cst_177 {dimension_numbers = #tpu.dot_dimension_numbers<[1], [0], [0], [1], [0, 0, 1, 1], [], []>} : vector<2x96xf32>, vector<96x96xf32>, vector<2x96xf32> -> vector<2x96xf32>
    %177 = arith.addf %170, %176 : vector<2x96xf32>
    %c2_178 = arith.constant 2 : index
    %c0_179 = arith.constant 0 : index
    %c0_180 = arith.constant 0 : index
    %178 = vector.load %arg17[%c2_178, %c0_179, %c0_180] : memref<3x2x4xf32, #tpu.memory_space<vmem>>, vector<1x2x4xf32>
    %179 = vector.shape_cast %178 : vector<1x2x4xf32> to vector<2x4xf32>
    %cst_181 = arith.constant dense<0.000000e+00> : vector<2x96xf32>
    %180 = tpu.matmul %179, %161, %cst_181 {dimension_numbers = #tpu.dot_dimension_numbers<[1], [0], [0], [1], [0, 0, 1, 1], [], []>} : vector<2x4xf32>, vector<4x96xf32>, vector<2x96xf32> -> vector<2x96xf32>
    %c2_182 = arith.constant 2 : index
    %c0_183 = arith.constant 0 : index
    %c0_184 = arith.constant 0 : index
    %181 = vector.load %arg18[%c2_182, %c0_183, %c0_184] : memref<3x96x96xf32, #tpu.memory_space<vmem>>, vector<1x96x96xf32>
    %182 = vector.shape_cast %181 : vector<1x96x96xf32> to vector<96x96xf32>
    %cst_185 = arith.constant dense<0.000000e+00> : vector<2x96xf32>
    %183 = tpu.matmul %180, %182, %cst_185 {dimension_numbers = #tpu.dot_dimension_numbers<[1], [0], [0], [1], [0, 0, 1, 1], [], []>} : vector<2x96xf32>, vector<96x96xf32>, vector<2x96xf32> -> vector<2x96xf32>
    %184 = arith.addf %177, %183 : vector<2x96xf32>
    %c0_186 = arith.constant 0 : index
    %c0_187 = arith.constant 0 : index
    %185 = vector.load %arg19[%c0_186, %c0_187] : memref<1x96xf32, #tpu.memory_space<vmem>>, vector<1x96xf32>
    %186 = vector.broadcast %185 : vector<1x96xf32> to vector<2x96xf32>
    %187 = arith.addf %184, %186 : vector<2x96xf32>
    %cst_188 = arith.constant 0.000000e+00 : f32
    %188 = vector.broadcast %cst_188 : f32 to vector<2x96xf32>
    %189 = arith.cmpf ogt, %187, %188 : vector<2x96xf32>
    %cst_189 = arith.constant 2.000000e-01 : f32
    %190 = vector.broadcast %cst_189 : f32 to vector<2x96xf32>
    %191 = arith.mulf %190, %187 : vector<2x96xf32>
    %192 = arith.select %189, %187, %191 : vector<2x96xi1>, vector<2x96xf32>
    %c0_190 = arith.constant 0 : index
    %c0_191 = arith.constant 0 : index
    %c0_192 = arith.constant 0 : index
    %193 = vector.load %arg20[%c0_190, %c0_191, %c0_192] : memref<3x2x2xf32, #tpu.memory_space<vmem>>, vector<1x2x2xf32>
    %194 = vector.shape_cast %193 : vector<1x2x2xf32> to vector<2x2xf32>
    %cst_193 = arith.constant dense<0.000000e+00> : vector<2x96xf32>
    %195 = tpu.matmul %194, %192, %cst_193 {dimension_numbers = #tpu.dot_dimension_numbers<[1], [0], [0], [1], [0, 0, 1, 1], [], []>} : vector<2x2xf32>, vector<2x96xf32>, vector<2x96xf32> -> vector<2x96xf32>
    %c0_194 = arith.constant 0 : index
    %c0_195 = arith.constant 0 : index
    %c0_196 = arith.constant 0 : index
    %196 = vector.load %arg21[%c0_194, %c0_195, %c0_196] : memref<3x96x96xf32, #tpu.memory_space<vmem>>, vector<1x96x96xf32>
    %197 = vector.shape_cast %196 : vector<1x96x96xf32> to vector<96x96xf32>
    %cst_197 = arith.constant dense<0.000000e+00> : vector<2x96xf32>
    %198 = tpu.matmul %195, %197, %cst_197 {dimension_numbers = #tpu.dot_dimension_numbers<[1], [0], [0], [1], [0, 0, 1, 1], [], []>} : vector<2x96xf32>, vector<96x96xf32>, vector<2x96xf32> -> vector<2x96xf32>
    %c1_198 = arith.constant 1 : index
    %c0_199 = arith.constant 0 : index
    %c0_200 = arith.constant 0 : index
    %199 = vector.load %arg20[%c1_198, %c0_199, %c0_200] : memref<3x2x2xf32, #tpu.memory_space<vmem>>, vector<1x2x2xf32>
    %200 = vector.shape_cast %199 : vector<1x2x2xf32> to vector<2x2xf32>
    %cst_201 = arith.constant dense<0.000000e+00> : vector<2x96xf32>
    %201 = tpu.matmul %200, %192, %cst_201 {dimension_numbers = #tpu.dot_dimension_numbers<[1], [0], [0], [1], [0, 0, 1, 1], [], []>} : vector<2x2xf32>, vector<2x96xf32>, vector<2x96xf32> -> vector<2x96xf32>
    %c1_202 = arith.constant 1 : index
    %c0_203 = arith.constant 0 : index
    %c0_204 = arith.constant 0 : index
    %202 = vector.load %arg21[%c1_202, %c0_203, %c0_204] : memref<3x96x96xf32, #tpu.memory_space<vmem>>, vector<1x96x96xf32>
    %203 = vector.shape_cast %202 : vector<1x96x96xf32> to vector<96x96xf32>
    %cst_205 = arith.constant dense<0.000000e+00> : vector<2x96xf32>
    %204 = tpu.matmul %201, %203, %cst_205 {dimension_numbers = #tpu.dot_dimension_numbers<[1], [0], [0], [1], [0, 0, 1, 1], [], []>} : vector<2x96xf32>, vector<96x96xf32>, vector<2x96xf32> -> vector<2x96xf32>
    %205 = arith.addf %198, %204 : vector<2x96xf32>
    %c2_206 = arith.constant 2 : index
    %c0_207 = arith.constant 0 : index
    %c0_208 = arith.constant 0 : index
    %206 = vector.load %arg20[%c2_206, %c0_207, %c0_208] : memref<3x2x2xf32, #tpu.memory_space<vmem>>, vector<1x2x2xf32>
    %207 = vector.shape_cast %206 : vector<1x2x2xf32> to vector<2x2xf32>
    %cst_209 = arith.constant dense<0.000000e+00> : vector<2x96xf32>
    %208 = tpu.matmul %207, %192, %cst_209 {dimension_numbers = #tpu.dot_dimension_numbers<[1], [0], [0], [1], [0, 0, 1, 1], [], []>} : vector<2x2xf32>, vector<2x96xf32>, vector<2x96xf32> -> vector<2x96xf32>
    %c2_210 = arith.constant 2 : index
    %c0_211 = arith.constant 0 : index
    %c0_212 = arith.constant 0 : index
    %209 = vector.load %arg21[%c2_210, %c0_211, %c0_212] : memref<3x96x96xf32, #tpu.memory_space<vmem>>, vector<1x96x96xf32>
    %210 = vector.shape_cast %209 : vector<1x96x96xf32> to vector<96x96xf32>
    %cst_213 = arith.constant dense<0.000000e+00> : vector<2x96xf32>
    %211 = tpu.matmul %208, %210, %cst_213 {dimension_numbers = #tpu.dot_dimension_numbers<[1], [0], [0], [1], [0, 0, 1, 1], [], []>} : vector<2x96xf32>, vector<96x96xf32>, vector<2x96xf32> -> vector<2x96xf32>
    %212 = arith.addf %205, %211 : vector<2x96xf32>
    %c0_214 = arith.constant 0 : index
    %c0_215 = arith.constant 0 : index
    %213 = vector.load %arg22[%c0_214, %c0_215] : memref<1x96xf32, #tpu.memory_space<vmem>>, vector<1x96xf32>
    %214 = vector.broadcast %213 : vector<1x96xf32> to vector<2x96xf32>
    %215 = arith.addf %212, %214 : vector<2x96xf32>
    %cst_216 = arith.constant 0.000000e+00 : f32
    %216 = vector.broadcast %cst_216 : f32 to vector<2x96xf32>
    %217 = arith.cmpf ogt, %215, %216 : vector<2x96xf32>
    %cst_217 = arith.constant 2.000000e-01 : f32
    %218 = vector.broadcast %cst_217 : f32 to vector<2x96xf32>
    %219 = arith.mulf %218, %215 : vector<2x96xf32>
    %220 = arith.select %217, %215, %219 : vector<2x96xi1>, vector<2x96xf32>
    %c0_218 = arith.constant 0 : index
    %c0_219 = arith.constant 0 : index
    %c0_220 = arith.constant 0 : index
    %221 = vector.load %arg32[%c0_218, %c0_219, %c0_220] : memref<1x2x96xf32, #tpu.memory_space<vmem>>, vector<1x2x96xf32>
    %222 = vector.shape_cast %221 : vector<1x2x96xf32> to vector<2x96xf32>
    %223 = vector.shape_cast %220 : vector<2x96xf32> to vector<1x2x96xf32>
    tpu.vector_store %arg32[%c0_218, %c0_219, %c0_220], %223 {strides = array<i32>} : memref<1x2x96xf32, #tpu.memory_space<vmem>>, vector<1x2x96xf32>,
    %c0_221 = arith.constant 0 : index
    %c0_222 = arith.constant 0 : index
    %c0_223 = arith.constant 0 : index
    %224 = vector.load %arg23[%c0_221, %c0_222, %c0_223] : memref<3x1x2xf32, #tpu.memory_space<vmem>>, vector<1x1x2xf32>
    %225 = vector.shape_cast %224 : vector<1x1x2xf32> to vector<1x2xf32>
    %cst_224 = arith.constant dense<0.000000e+00> : vector<1x96xf32>
    %226 = tpu.matmul %225, %220, %cst_224 {dimension_numbers = #tpu.dot_dimension_numbers<[1], [0], [0], [1], [0, 0, 1, 1], [], []>} : vector<1x2xf32>, vector<2x96xf32>, vector<1x96xf32> -> vector<1x96xf32>
    %c0_225 = arith.constant 0 : index
    %c0_226 = arith.constant 0 : index
    %c0_227 = arith.constant 0 : index
    %227 = vector.load %arg24[%c0_225, %c0_226, %c0_227] : memref<3x96x96xf32, #tpu.memory_space<vmem>>, vector<1x96x96xf32>
    %228 = vector.shape_cast %227 : vector<1x96x96xf32> to vector<96x96xf32>
    %cst_228 = arith.constant dense<0.000000e+00> : vector<1x96xf32>
    %229 = tpu.matmul %226, %228, %cst_228 {dimension_numbers = #tpu.dot_dimension_numbers<[1], [0], [0], [1], [0, 0, 1, 1], [], []>} : vector<1x96xf32>, vector<96x96xf32>, vector<1x96xf32> -> vector<1x96xf32>
    %c1_229 = arith.constant 1 : index
    %c0_230 = arith.constant 0 : index
    %c0_231 = arith.constant 0 : index
    %230 = vector.load %arg23[%c1_229, %c0_230, %c0_231] : memref<3x1x2xf32, #tpu.memory_space<vmem>>, vector<1x1x2xf32>
    %231 = vector.shape_cast %230 : vector<1x1x2xf32> to vector<1x2xf32>
    %cst_232 = arith.constant dense<0.000000e+00> : vector<1x96xf32>
    %232 = tpu.matmul %231, %220, %cst_232 {dimension_numbers = #tpu.dot_dimension_numbers<[1], [0], [0], [1], [0, 0, 1, 1], [], []>} : vector<1x2xf32>, vector<2x96xf32>, vector<1x96xf32> -> vector<1x96xf32>
    %c1_233 = arith.constant 1 : index
    %c0_234 = arith.constant 0 : index
    %c0_235 = arith.constant 0 : index
    %233 = vector.load %arg24[%c1_233, %c0_234, %c0_235] : memref<3x96x96xf32, #tpu.memory_space<vmem>>, vector<1x96x96xf32>
    %234 = vector.shape_cast %233 : vector<1x96x96xf32> to vector<96x96xf32>
    %cst_236 = arith.constant dense<0.000000e+00> : vector<1x96xf32>
    %235 = tpu.matmul %232, %234, %cst_236 {dimension_numbers = #tpu.dot_dimension_numbers<[1], [0], [0], [1], [0, 0, 1, 1], [], []>} : vector<1x96xf32>, vector<96x96xf32>, vector<1x96xf32> -> vector<1x96xf32>
    %236 = arith.addf %229, %235 : vector<1x96xf32>
    %c2_237 = arith.constant 2 : index
    %c0_238 = arith.constant 0 : index
    %c0_239 = arith.constant 0 : index
    %237 = vector.load %arg23[%c2_237, %c0_238, %c0_239] : memref<3x1x2xf32, #tpu.memory_space<vmem>>, vector<1x1x2xf32>
    %238 = vector.shape_cast %237 : vector<1x1x2xf32> to vector<1x2xf32>
    %cst_240 = arith.constant dense<0.000000e+00> : vector<1x96xf32>
    %239 = tpu.matmul %238, %220, %cst_240 {dimension_numbers = #tpu.dot_dimension_numbers<[1], [0], [0], [1], [0, 0, 1, 1], [], []>} : vector<1x2xf32>, vector<2x96xf32>, vector<1x96xf32> -> vector<1x96xf32>
    %c2_241 = arith.constant 2 : index
    %c0_242 = arith.constant 0 : index
    %c0_243 = arith.constant 0 : index
    %240 = vector.load %arg24[%c2_241, %c0_242, %c0_243] : memref<3x96x96xf32, #tpu.memory_space<vmem>>, vector<1x96x96xf32>
    %241 = vector.shape_cast %240 : vector<1x96x96xf32> to vector<96x96xf32>
    %cst_244 = arith.constant dense<0.000000e+00> : vector<1x96xf32>
    %242 = tpu.matmul %239, %241, %cst_244 {dimension_numbers = #tpu.dot_dimension_numbers<[1], [0], [0], [1], [0, 0, 1, 1], [], []>} : vector<1x96xf32>, vector<96x96xf32>, vector<1x96xf32> -> vector<1x96xf32>
    %243 = arith.addf %236, %242 : vector<1x96xf32>
    %c0_245 = arith.constant 0 : index
    %c0_246 = arith.constant 0 : index
    %244 = vector.load %arg25[%c0_245, %c0_246] : memref<1x96xf32, #tpu.memory_space<vmem>>, vector<1x96xf32>
    %245 = arith.addf %243, %244 : vector<1x96xf32>
    %cst_247 = arith.constant 0.000000e+00 : f32
    %246 = vector.broadcast %cst_247 : f32 to vector<1x96xf32>
    %247 = arith.cmpf ogt, %245, %246 : vector<1x96xf32>
    %cst_248 = arith.constant 2.000000e-01 : f32
    %248 = vector.broadcast %cst_248 : f32 to vector<1x96xf32>
    %249 = arith.mulf %248, %245 : vector<1x96xf32>
    %250 = arith.select %247, %245, %249 : vector<1x96xi1>, vector<1x96xf32>
    %c0_249 = arith.constant 0 : index
    %c0_250 = arith.constant 0 : index
    %c0_251 = arith.constant 0 : index
    %251 = vector.load %arg26[%c0_249, %c0_250, %c0_251] : memref<3x1x1xf32, #tpu.memory_space<vmem>>, vector<1x1x1xf32>
    %252 = vector.shape_cast %251 : vector<1x1x1xf32> to vector<1x1xf32>
    %cst_252 = arith.constant dense<0.000000e+00> : vector<1x96xf32>
    %253 = tpu.matmul %252, %250, %cst_252 {dimension_numbers = #tpu.dot_dimension_numbers<[1], [0], [0], [1], [0, 0, 1, 1], [], []>} : vector<1x1xf32>, vector<1x96xf32>, vector<1x96xf32> -> vector<1x96xf32>
    %c0_253 = arith.constant 0 : index
    %c0_254 = arith.constant 0 : index
    %c0_255 = arith.constant 0 : index
    %254 = vector.load %arg27[%c0_253, %c0_254, %c0_255] : memref<3x96x96xf32, #tpu.memory_space<vmem>>, vector<1x96x96xf32>
    %255 = vector.shape_cast %254 : vector<1x96x96xf32> to vector<96x96xf32>
    %cst_256 = arith.constant dense<0.000000e+00> : vector<1x96xf32>
    %256 = tpu.matmul %253, %255, %cst_256 {dimension_numbers = #tpu.dot_dimension_numbers<[1], [0], [0], [1], [0, 0, 1, 1], [], []>} : vector<1x96xf32>, vector<96x96xf32>, vector<1x96xf32> -> vector<1x96xf32>
    %c1_257 = arith.constant 1 : index
    %c0_258 = arith.constant 0 : index
    %c0_259 = arith.constant 0 : index
    %257 = vector.load %arg26[%c1_257, %c0_258, %c0_259] : memref<3x1x1xf32, #tpu.memory_space<vmem>>, vector<1x1x1xf32>
    %258 = vector.shape_cast %257 : vector<1x1x1xf32> to vector<1x1xf32>
    %cst_260 = arith.constant dense<0.000000e+00> : vector<1x96xf32>
    %259 = tpu.matmul %258, %250, %cst_260 {dimension_numbers = #tpu.dot_dimension_numbers<[1], [0], [0], [1], [0, 0, 1, 1], [], []>} : vector<1x1xf32>, vector<1x96xf32>, vector<1x96xf32> -> vector<1x96xf32>
    %c1_261 = arith.constant 1 : index
    %c0_262 = arith.constant 0 : index
    %c0_263 = arith.constant 0 : index
    %260 = vector.load %arg27[%c1_261, %c0_262, %c0_263] : memref<3x96x96xf32, #tpu.memory_space<vmem>>, vector<1x96x96xf32>
    %261 = vector.shape_cast %260 : vector<1x96x96xf32> to vector<96x96xf32>
    %cst_264 = arith.constant dense<0.000000e+00> : vector<1x96xf32>
    %262 = tpu.matmul %259, %261, %cst_264 {dimension_numbers = #tpu.dot_dimension_numbers<[1], [0], [0], [1], [0, 0, 1, 1], [], []>} : vector<1x96xf32>, vector<96x96xf32>, vector<1x96xf32> -> vector<1x96xf32>
    %263 = arith.addf %256, %262 : vector<1x96xf32>
    %c2_265 = arith.constant 2 : index
    %c0_266 = arith.constant 0 : index
    %c0_267 = arith.constant 0 : index
    %264 = vector.load %arg26[%c2_265, %c0_266, %c0_267] : memref<3x1x1xf32, #tpu.memory_space<vmem>>, vector<1x1x1xf32>
    %265 = vector.shape_cast %264 : vector<1x1x1xf32> to vector<1x1xf32>
    %cst_268 = arith.constant dense<0.000000e+00> : vector<1x96xf32>
    %266 = tpu.matmul %265, %250, %cst_268 {dimension_numbers = #tpu.dot_dimension_numbers<[1], [0], [0], [1], [0, 0, 1, 1], [], []>} : vector<1x1xf32>, vector<1x96xf32>, vector<1x96xf32> -> vector<1x96xf32>
    %c2_269 = arith.constant 2 : index
    %c0_270 = arith.constant 0 : index
    %c0_271 = arith.constant 0 : index
    %267 = vector.load %arg27[%c2_269, %c0_270, %c0_271] : memref<3x96x96xf32, #tpu.memory_space<vmem>>, vector<1x96x96xf32>
    %268 = vector.shape_cast %267 : vector<1x96x96xf32> to vector<96x96xf32>
    %cst_272 = arith.constant dense<0.000000e+00> : vector<1x96xf32>
    %269 = tpu.matmul %266, %268, %cst_272 {dimension_numbers = #tpu.dot_dimension_numbers<[1], [0], [0], [1], [0, 0, 1, 1], [], []>} : vector<1x96xf32>, vector<96x96xf32>, vector<1x96xf32> -> vector<1x96xf32>
    %270 = arith.addf %263, %269 : vector<1x96xf32>
    %c0_273 = arith.constant 0 : index
    %c0_274 = arith.constant 0 : index
    %271 = vector.load %arg28[%c0_273, %c0_274] : memref<1x96xf32, #tpu.memory_space<vmem>>, vector<1x96xf32>
    %272 = arith.addf %270, %271 : vector<1x96xf32>
    %cst_275 = arith.constant 0.000000e+00 : f32
    %273 = vector.broadcast %cst_275 : f32 to vector<1x96xf32>
    %274 = arith.cmpf ogt, %272, %273 : vector<1x96xf32>
    %cst_276 = arith.constant 2.000000e-01 : f32
    %275 = vector.broadcast %cst_276 : f32 to vector<1x96xf32>
    %276 = arith.mulf %275, %272 : vector<1x96xf32>
    %277 = arith.select %274, %272, %276 : vector<1x96xi1>, vector<1x96xf32>
    %c0_277 = arith.constant 0 : index
    %c0_278 = arith.constant 0 : index
    %c0_279 = arith.constant 0 : index
    %278 = vector.load %arg33[%c0_277, %c0_278, %c0_279] : memref<1x1x96xf32, #tpu.memory_space<vmem>>, vector<1x1x96xf32>
    %279 = vector.shape_cast %278 : vector<1x1x96xf32> to vector<1x96xf32>
    %280 = vector.shape_cast %277 : vector<1x96xf32> to vector<1x1x96xf32>
    tpu.vector_store %arg33[%c0_277, %c0_278, %c0_279], %280 {strides = array<i32>} : memref<1x1x96xf32, #tpu.memory_space<vmem>>, vector<1x1x96xf32>,
    return
  }
  func.func @transform_0(%arg0: i32) -> (i32, i32, i32) {
    %c0_i32 = arith.constant 0 : i32
    %c0_i32_0 = arith.constant 0 : i32
    %c0_i32_1 = arith.constant 0 : i32
    return %arg0, %c0_i32, %c0_i32_0 : i32, i32, i32
  }
  func.func @transform_1(%arg0: i32) -> (i32, i32, i32) {
    %c0_i32 = arith.constant 0 : i32
    %c0_i32_0 = arith.constant 0 : i32
    %c0_i32_1 = arith.constant 0 : i32
    %c0_i32_2 = arith.constant 0 : i32
    return %c0_i32, %c0_i32_0, %c0_i32_1 : i32, i32, i32
  }
  func.func @transform_2(%arg0: i32) -> (i32, i32, i32) {
    %c0_i32 = arith.constant 0 : i32
    %c0_i32_0 = arith.constant 0 : i32
    %c0_i32_1 = arith.constant 0 : i32
    %c0_i32_2 = arith.constant 0 : i32
    return %c0_i32, %c0_i32_0, %c0_i32_1 : i32, i32, i32
  }
  func.func @transform_3(%arg0: i32) -> (i32, i32) {
    %c0_i32 = arith.constant 0 : i32
    %c0_i32_0 = arith.constant 0 : i32
    %c0_i32_1 = arith.constant 0 : i32
    return %c0_i32, %c0_i32_0 : i32, i32
  }
  func.func @transform_4(%arg0: i32) -> (i32, i32, i32) {
    %c0_i32 = arith.constant 0 : i32
    %c0_i32_0 = arith.constant 0 : i32
    %c0_i32_1 = arith.constant 0 : i32
    %c0_i32_2 = arith.constant 0 : i32
    return %c0_i32, %c0_i32_0, %c0_i32_1 : i32, i32, i32
  }
  func.func @transform_5(%arg0: i32) -> (i32, i32, i32) {
    %c0_i32 = arith.constant 0 : i32
    %c0_i32_0 = arith.constant 0 : i32
    %c0_i32_1 = arith.constant 0 : i32
    %c0_i32_2 = arith.constant 0 : i32
    return %c0_i32, %c0_i32_0, %c0_i32_1 : i32, i32, i32
  }
  func.func @transform_6(%arg0: i32) -> (i32, i32) {
    %c0_i32 = arith.constant 0 : i32
    %c0_i32_0 = arith.constant 0 : i32
    %c0_i32_1 = arith.constant 0 : i32
    return %c0_i32, %c0_i32_0 : i32, i32
  }
  func.func @transform_7(%arg0: i32) -> (i32, i32, i32) {
    %c0_i32 = arith.constant 0 : i32
    %c0_i32_0 = arith.constant 0 : i32
    %c0_i32_1 = arith.constant 0 : i32
    %c0_i32_2 = arith.constant 0 : i32
    return %c0_i32, %c0_i32_0, %c0_i32_1 : i32, i32, i32
  }
  func.func @transform_8(%arg0: i32) -> (i32, i32, i32) {
    %c0_i32 = arith.constant 0 : i32
    %c0_i32_0 = arith.constant 0 : i32
    %c0_i32_1 = arith.constant 0 : i32
    %c0_i32_2 = arith.constant 0 : i32
    return %c0_i32, %c0_i32_0, %c0_i32_1 : i32, i32, i32
  }
  func.func @transform_9(%arg0: i32) -> (i32, i32) {
    %c0_i32 = arith.constant 0 : i32
    %c0_i32_0 = arith.constant 0 : i32
    %c0_i32_1 = arith.constant 0 : i32
    return %c0_i32, %c0_i32_0 : i32, i32
  }
  func.func @transform_10(%arg0: i32) -> (i32, i32, i32) {
    %c0_i32 = arith.constant 0 : i32
    %c0_i32_0 = arith.constant 0 : i32
    %c0_i32_1 = arith.constant 0 : i32
    %c0_i32_2 = arith.constant 0 : i32
    return %c0_i32, %c0_i32_0, %c0_i32_1 : i32, i32, i32
  }
  func.func @transform_11(%arg0: i32) -> (i32, i32, i32) {
    %c0_i32 = arith.constant 0 : i32
    %c0_i32_0 = arith.constant 0 : i32
    %c0_i32_1 = arith.constant 0 : i32
    %c0_i32_2 = arith.constant 0 : i32
    return %c0_i32, %c0_i32_0, %c0_i32_1 : i32, i32, i32
  }
  func.func @transform_12(%arg0: i32) -> (i32, i32) {
    %c0_i32 = arith.constant 0 : i32
    %c0_i32_0 = arith.constant 0 : i32
    %c0_i32_1 = arith.constant 0 : i32
    return %c0_i32, %c0_i32_0 : i32, i32
  }
  func.func @transform_13(%arg0: i32) -> (i32, i32, i32) {
    %c0_i32 = arith.constant 0 : i32
    %c0_i32_0 = arith.constant 0 : i32
    %c0_i32_1 = arith.constant 0 : i32
    %c0_i32_2 = arith.constant 0 : i32
    return %c0_i32, %c0_i32_0, %c0_i32_1 : i32, i32, i32
  }
  func.func @transform_14(%arg0: i32) -> (i32, i32, i32) {
    %c0_i32 = arith.constant 0 : i32
    %c0_i32_0 = arith.constant 0 : i32
    %c0_i32_1 = arith.constant 0 : i32
    %c0_i32_2 = arith.constant 0 : i32
    return %c0_i32, %c0_i32_0, %c0_i32_1 : i32, i32, i32
  }
  func.func @transform_15(%arg0: i32) -> (i32, i32) {
    %c0_i32 = arith.constant 0 : i32
    %c0_i32_0 = arith.constant 0 : i32
    %c0_i32_1 = arith.constant 0 : i32
    return %c0_i32, %c0_i32_0 : i32, i32
  }
  func.func @transform_16(%arg0: i32) -> (i32, i32, i32) {
    %c0_i32 = arith.constant 0 : i32
    %c0_i32_0 = arith.constant 0 : i32
    %c0_i32_1 = arith.constant 0 : i32
    %c0_i32_2 = arith.constant 0 : i32
    return %c0_i32, %c0_i32_0, %c0_i32_1 : i32, i32, i32
  }
  func.func @transform_17(%arg0: i32) -> (i32, i32, i32) {
    %c0_i32 = arith.constant 0 : i32
    %c0_i32_0 = arith.constant 0 : i32
    %c0_i32_1 = arith.constant 0 : i32
    %c0_i32_2 = arith.constant 0 : i32
    return %c0_i32, %c0_i32_0, %c0_i32_1 : i32, i32, i32
  }
  func.func @transform_18(%arg0: i32) -> (i32, i32) {
    %c0_i32 = arith.constant 0 : i32
    %c0_i32_0 = arith.constant 0 : i32
    %c0_i32_1 = arith.constant 0 : i32
    return %c0_i32, %c0_i32_0 : i32, i32
  }
  func.func @transform_19(%arg0: i32) -> (i32, i32, i32) {
    %c0_i32 = arith.constant 0 : i32
    %c0_i32_0 = arith.constant 0 : i32
    %c0_i32_1 = arith.constant 0 : i32
    %c0_i32_2 = arith.constant 0 : i32
    return %c0_i32, %c0_i32_0, %c0_i32_1 : i32, i32, i32
  }
  func.func @transform_20(%arg0: i32) -> (i32, i32, i32) {
    %c0_i32 = arith.constant 0 : i32
    %c0_i32_0 = arith.constant 0 : i32
    %c0_i32_1 = arith.constant 0 : i32
    %c0_i32_2 = arith.constant 0 : i32
    return %c0_i32, %c0_i32_0, %c0_i32_1 : i32, i32, i32
  }
  func.func @transform_21(%arg0: i32) -> (i32, i32) {
    %c0_i32 = arith.constant 0 : i32
    %c0_i32_0 = arith.constant 0 : i32
    %c0_i32_1 = arith.constant 0 : i32
    return %c0_i32, %c0_i32_0 : i32, i32
  }
  func.func @transform_22(%arg0: i32) -> (i32, i32, i32) {
    %c0_i32 = arith.constant 0 : i32
    %c0_i32_0 = arith.constant 0 : i32
    %c0_i32_1 = arith.constant 0 : i32
    %c0_i32_2 = arith.constant 0 : i32
    return %c0_i32, %c0_i32_0, %c0_i32_1 : i32, i32, i32
  }
  func.func @transform_23(%arg0: i32) -> (i32, i32, i32) {
    %c0_i32 = arith.constant 0 : i32
    %c0_i32_0 = arith.constant 0 : i32
    %c0_i32_1 = arith.constant 0 : i32
    %c0_i32_2 = arith.constant 0 : i32
    return %c0_i32, %c0_i32_0, %c0_i32_1 : i32, i32, i32
  }
  func.func @transform_24(%arg0: i32) -> (i32, i32) {
    %c0_i32 = arith.constant 0 : i32
    %c0_i32_0 = arith.constant 0 : i32
    %c0_i32_1 = arith.constant 0 : i32
    return %c0_i32, %c0_i32_0 : i32, i32
  }
  func.func @transform_25(%arg0: i32) -> (i32, i32, i32) {
    %c0_i32 = arith.constant 0 : i32
    %c0_i32_0 = arith.constant 0 : i32
    %c0_i32_1 = arith.constant 0 : i32
    %c0_i32_2 = arith.constant 0 : i32
    return %c0_i32, %c0_i32_0, %c0_i32_1 : i32, i32, i32
  }
  func.func @transform_26(%arg0: i32) -> (i32, i32, i32) {
    %c0_i32 = arith.constant 0 : i32
    %c0_i32_0 = arith.constant 0 : i32
    %c0_i32_1 = arith.constant 0 : i32
    %c0_i32_2 = arith.constant 0 : i32
    return %c0_i32, %c0_i32_0, %c0_i32_1 : i32, i32, i32
  }
  func.func @transform_27(%arg0: i32) -> (i32, i32) {
    %c0_i32 = arith.constant 0 : i32
    %c0_i32_0 = arith.constant 0 : i32
    %c0_i32_1 = arith.constant 0 : i32
    return %c0_i32, %c0_i32_0 : i32, i32
  }
  func.func @transform_28(%arg0: i32) -> (i32, i32, i32) {
    %c0_i32 = arith.constant 0 : i32
    %c0_i32_0 = arith.constant 0 : i32
    %c0_i32_1 = arith.constant 0 : i32
    return %arg0, %c0_i32, %c0_i32_0 : i32, i32, i32
  }
  func.func @transform_29(%arg0: i32) -> (i32, i32, i32) {
    %c0_i32 = arith.constant 0 : i32
    %c0_i32_0 = arith.constant 0 : i32
    %c0_i32_1 = arith.constant 0 : i32
    return %arg0, %c0_i32, %c0_i32_0 : i32, i32, i32
  }
  func.func @transform_30(%arg0: i32) -> (i32, i32, i32) {
    %c0_i32 = arith.constant 0 : i32
    %c0_i32_0 = arith.constant 0 : i32
    %c0_i32_1 = arith.constant 0 : i32
    return %arg0, %c0_i32, %c0_i32_0 : i32, i32, i32
  }
  func.func @transform_31(%arg0: i32) -> (i32, i32, i32) {
    %c0_i32 = arith.constant 0 : i32
    %c0_i32_0 = arith.constant 0 : i32
    %c0_i32_1 = arith.constant 0 : i32
    return %arg0, %c0_i32, %c0_i32_0 : i32, i32, i32
  }
  func.func @transform_32(%arg0: i32) -> (i32, i32, i32) {
    %c0_i32 = arith.constant 0 : i32
    %c0_i32_0 = arith.constant 0 : i32
    %c0_i32_1 = arith.constant 0 : i32
    return %arg0, %c0_i32, %c0_i32_0 : i32, i32, i32
  }
}

</mosaic_0001>

<bundles_post_ra>
// kernel: _forward.1
= control target key start
LH: loop header
LB: loop body
LE: loop exit
PB: predicated region body
PF: predicated region fallthrough
CT: control target
= control target key end

     0   :  { %s9677_s6 = smov 1   ;;  %s9678_s10 = smov 2   ;;  %s10833_s0 = inlined_call_operand.smem [shape: u32[33], index: -1, kind: input, shape index: {}] }
   0x1   :  { %s9748_s5 = sld [smem:[%s10833_s0]]   ;;  %s9679_s14 = smov 3  }
   0x2   :  { %s9753_s9 = sld [smem:[%s10833_s0 + %s9677_s6]]   ;;  %s9680_s18 = smov 4  }
   0x3   :  { %s9758_s13 = sld [smem:[%s10833_s0 + %s9678_s10]]   ;;  %s9681_s22 = smov 5  }
   0x4   :  { %s9763_s17 = sld [smem:[%s10833_s0 + %s9679_s14]]   ;;  %s9682_s26 = smov 6  }
   0x5   :  { %s9768_s21 = sld [smem:[%s10833_s0 + %s9680_s18]]   ;;  %s9683_s30 = smov 7  }
   0x6   :  { %s9773_s25 = sld [smem:[%s10833_s0 + %s9681_s22]]   ;;  %s9684_s4 = smov 8  }
   0x7   :  { %10872 = sst [smem:[#allocation48_spill]] %s9748_s5  ;;  %s9685_s10 = smov 9  }
   0x8   :  { %10873 = sst [smem:[#allocation49_spill]] %s9753_s9  ;;  %s9686_s15 = smov 10  }
   0x9   :  { %10874 = sst [smem:[#allocation50_spill]] %s9758_s13  ;;  %s9687_s20 = smov 11  }
   0xa   :  { %10875 = sst [smem:[#allocation51_spill]] %s9763_s17  ;;  %s9689_s1 = smov 13  }
   0xb   :  { %10876 = sst [smem:[#allocation52_spill]] %s9768_s21  ;;  %s9690_s7 = smov 14  }
   0xc   :  { %s9778_s29 = sld [smem:[%s10833_s0 + %s9682_s26]]   ;;  %s9688_s26 = smov 12  }
   0xd   :  { %s9783_s3 = sld [smem:[%s10833_s0 + %s9683_s30]]   ;;  %s9692_s22 = smov 16  }
   0xe   :  { %s9788_s8 = sld [smem:[%s10833_s0 + %s9684_s4]]   ;;  %s9693_s28 = smov 17  }
   0xf   :  { %s9793_s14 = sld [smem:[%s10833_s0 + %s9685_s10]]  }
  0x10   :  { %s9798_s19 = sld [smem:[%s10833_s0 + %s9686_s15]]   ;;  %s9691_s15 = smov 15  }
  0x11   :  { %s9803_s24 = sld [smem:[%s10833_s0 + %s9687_s20]]  }
  0x12   :  { %10877 = sst [smem:[#allocation53_spill]] %s9778_s29 }
  0x13   :  { %10878 = sst [smem:[#allocation54_spill]] %s9783_s3 }
  0x14   :  { %10879 = sst [smem:[#allocation55_spill]] %s9788_s8 }
  0x15   :  { %s9808_s30 = sld [smem:[%s10833_s0 + %s9688_s26]]  }
  0x16   :  { %s9813_s6 = sld [smem:[%s10833_s0 + %s9689_s1]]  }
  0x17   :  { %10880 = sst [smem:[#allocation56_spill]] %s9803_s24 }
  0x18   :  { %s9818_s12 = sld [smem:[%s10833_s0 + %s9690_s7]]   ;;  %s9694_s7 = smov 18  }
  0x19   :  { %s9823_s20 = sld [smem:[%s10833_s0 + %s9691_s15]]   ;;  %s9695_s15 = smov 19  }
  0x1a   :  { %s9828_s27 = sld [smem:[%s10833_s0 + %s9692_s22]]   ;;  %s9696_s22 = smov 20  }
  0x1b   :  { %s9833_s4 = sld [smem:[%s10833_s0 + %s9693_s28]]   ;;  %s9697_s28 = smov 21  }
  0x1c   :  { %10881 = sst [smem:[#allocation57_spill]] %s9813_s6 }
  0x1d   :  { %s9838_s17 = sld [smem:[%s10833_s0 + %s9694_s7]]   ;;  %s9698_s7 = smov 22  }
  0x1e   :  { %s9843_s13 = sld [smem:[%s10833_s0 + %s9695_s15]]   ;;  %s9699_s15 = smov 23  }
  0x1f   :  { %10882 = sst [smem:[#allocation58_spill]] %s9823_s20 }
  0x20   :  { %10883 = sst [smem:[#allocation59_spill]] %s9828_s27 }
  0x21   :  { %10884 = sst [smem:[#allocation60_spill]] %s9833_s4 }
  0x22   :  { %s9848_s27 = sld [smem:[%s10833_s0 + %s9696_s22]]   ;;  %s9700_s22 = smov 24  }
  0x23   :  { %10885 = sst [smem:[#allocation61_spill]] %s9838_s17 }
  0x24   :  { %10886 = sst [smem:[#allocation62_spill]] %s9843_s13 }
  0x25   :  { %s9853_s5 = sld [smem:[%s10833_s0 + %s9697_s28]]   ;;  %s9701_s28 = smov 25  }
  0x26   :  { %s9858_s17 = sld [smem:[%s10833_s0 + %s9698_s7]]   ;;  %s9702_s7 = smov 26  }
  0x27   :  { %s9863_s13 = sld [smem:[%s10833_s0 + %s9699_s15]]   ;;  %s9703_s15 = smov 27  }
  0x28   :  { %s9868_s20 = sld [smem:[%s10833_s0 + %s9700_s22]]   ;;  %s9704_s22 = smov 28  }
  0x29   :  { %s9883_s6 = sld [smem:[%s10833_s0 + %s9703_s15]]   ;;  %s9707_s15 = smov 31  }
  0x2b   :  { %10887 = sst [smem:[#allocation63_spill]] %s9853_s5 }
  0x2c   :  { %10888 = sst [smem:[#allocation64_spill]] %s9858_s17 }
  0x2d   :  { %s9873_s5 = sld [smem:[%s10833_s0 + %s9701_s28]]   ;;  %s9705_s28 = smov 29  }
  0x2e   :  { %10889 = sst [smem:[#allocation65_spill]] %s9868_s20 }
  0x2f   :  { %s9878_s17 = sld [smem:[%s10833_s0 + %s9702_s7]]   ;;  %s9706_s7 = smov 30  }
  0x30   :  { %10891 = sst [smem:[#allocation67_spill]] %s9883_s6 }
  0x31   :  { %s9888_s20 = sld [smem:[%s10833_s0 + %s9704_s22]]   ;;  %s9708_s22 = smov 32  }
  0x32   :  { %s9898_s24 = sld [smem:[%s10833_s0 + %s9706_s7]]  }
  0x33   :  { %10890 = sst [smem:[#allocation66_spill]] %s9873_s5 }
  0x34   :  { %s9893_s5 = sld [smem:[%s10833_s0 + %s9705_s28]]  }
  0x35   :  { %s9903_s6 = sld [smem:[%s10833_s0 + %s9707_s15]]  }
  0x37   :  { %10892 = sst [smem:[#allocation68_spill]] %s9888_s20 }
  0x38   :  { %s9908_s20 = sld [smem:[%s10833_s0 + %s9708_s22]]  }
  0x3a   :  { %10893 = sst [smem:[#allocation69_spill]] %s9893_s5 }
  0x3b   :  { %10894 = sst [smem:[#allocation70_spill]] %s9903_s6 }
  0x3c   :  { %71 = vsyncpa [#allocation3], 0 }
  0x3d   :  { %72 = vsyncpa [#allocation6], 0 }
  0x3e   :  { %73 = vsyncpa [#allocation9], 0 }
  0x3f   :  { %74 = vsyncpa [#allocation12], 0 }
  0x40   :  { %75 = vsyncpa [#allocation15], 0 }
  0x41   :  { %76 = vsyncpa [#allocation18], 0 }
  0x42   :  { %77 = vsyncpa [#allocation21], 0 }
  0x43   :  { %78 = vsyncpa [#allocation24], 0 }
  0x44   :  { %79 = vsyncpa [#allocation27], 0 }
  0x45   :  { %80 = vsyncpa [#allocation30], 0 }
  0x46   :  { %81 = vsyncpa [#allocation33], 0 }
  0x47   :  { %82 = vsyncpa [#allocation4], 0 }
  0x48   :  { %84 = vsyncpa [#allocation4 + $0x1], 0  ;;  %s9910_s28 = smov 0   ;;  %s9912_s1 = smov 0  }
  0x49   :  { %s9914_s2 = smov 0   ;;  %s9916_s0 = smov 0  }
  0x4a LB: > { %s10895_s3 = sld [smem:[#allocation54_spill]]  ;;  %s10896_s9 = sld [smem:[#allocation49_spill]]  ;;  %s9667_s1 = sphi %s9912_s1, %s10966_s1   ;;  %s9663_s28 = sphi %s9910_s28, %s10965_s28   ;;  %s9675_s0 = sphi %s9916_s0, %s10962_s0   ;;  %s9671_s2 = sphi %s9914_s2, %s10964_s2  }
  0x4b   : > { %s10897_s4 = sld [smem:[#allocation60_spill]]  ;;  %s10898_s29 = sld [smem:[#allocation53_spill]] }
  0x4c   : > { %s10899_s8 = sld [smem:[#allocation55_spill]]  ;;  %s10900_s21 = sld [smem:[#allocation52_spill]] }
  0x4d   : > { %10901 = sst [smem:[#allocation71_spill]] %s9663_s28  ;;  %s9931_s7 = sadd.s32 4294967295, %s9675_s0  }
  0x4e   : > { %10902 = sst [smem:[#allocation72_spill]] %s9671_s2  ;;  %s6945_s10 = sadd.s32 4294967294, %s9675_s0  }
  0x4f   : > { %s9935_s11 = sadd.s32 1, %s9675_s0   ;;  %s794_s15 = sadd.s32 1, %s9671_s2 }
  0x50   : > { %10903 = sst [smem:[#allocation73_spill]] %s9935_s11  ;;  %s791_s16 = ssub.s32 %s9675_s0, %s9935_s11 }
  0x51   : > { %p804_p0 = scmp.ne.s32.totalorder %s9671_s2, %s9667_s1  ;;  %p792_p1 = scmp.eq.s32.totalorder %s791_s16, 0 }
  0x52   : > { %p805_p2 = scmp.eq.s32.totalorder %s9931_s7, 1  ;;  %p810_p3 = scmp.ne.s32.totalorder %s9667_s1, %s9663_s28 }
  0x53   : > { %p811_p4 = scmp.eq.s32.totalorder %s6945_s10, 1  ;;  %p6946_p7 = scmp.ge.s32.totalorder %s9675_s0, 1 }
  0x54   : > { %s9946_s18 = scalar_select %p792_p1, %s9671_s2, %s794_s15  }
  0x55   : > { %p9948_p5 = por %p805_p2, %p804_p0  ;;  %p9952_p6 = por %p811_p4, %p810_p3 }
  0x56   : > { %10904 = sst [smem:[#allocation74_spill]] %s9946_s18  ;;  %p818_p8 = scmp.lt.s32.totalorder %s9675_s0, 3 }
  0x57   : > { %s10905_s22 = scalar_select %p9948_p5, 1, 0 }
  0x58   : > { %s10906_s23 = scalar_select %p9952_p6, 1, 0 }
  0x59   : > { %p10850_p9 = scmp.eq.s32.totalorder %s9931_s7, 0  ;;  %p9959_p10 = pnand %p6946_p7, %p818_p8 }
  0x5a   : > { %10907 = sst [smem:[#allocation75_spill]] %s10906_s23  ;;  %s9709_s10 = smov [#allocation5]  }
  0x5b   : > { %s10908_s26 = scalar_select %p9959_p10, 1, 0 }
  0x5c   : > { %p8776_p11 = pneg %p9959_p10  ;;  %s849_s15 = sshll.u32 %s9709_s10, 4  ;;  %s850_s15 = int_to_ptr.vmem [resolvable:$true] %s849_s15 }
  0x5d   : > { %s9710_s18 = smov [#allocation8]   ;;  %s8981_s11 = scalar_lea.hbm %s10900_s21, 384 }
  0x5e   : > { %p9967_p12 = pnand %p10850_p9, %p8776_p11  ;;  %s876_s2 = sshll.u32 %s9710_s18, 4  ;;  %s9971_s2 = int_to_ptr.vmem [resolvable:$true] %s876_s2 }
  0x5f   : > { %p8982_p13 = scmp.ne.s32.totalorder %s10900_s21, %s8981_s11  ;;  %p8988_p3 = scmp.lt.u32.totalorder %s8981_s11, %s10900_s21 }
  0x60   : > { %p9977_p0 = pneg %p9967_p12 }
  0x62   : > { %p8984_p1 = pnand %p9977_p0, %p8982_p13 }
  0x64   : > { %p8985_p2 = pneg %p8984_p1 }
  0x66   : > { %p8990_p4 = pnand %p8988_p3, %p8985_p2 }
  0x68   : > { %8993 = shalt.err (!%p8990_p4)
}
  0x69   : > { %s8994_s10 = scalar_lea.vmem %s850_s15, 384  ;;  %p9002_p9 = scmp.lt.s32.totalorder %s850_s15, %s850_s15 }
  0x6a   : > { %p8995_p7 = scmp.ne.s32.totalorder %s850_s15, %s8994_s10  ;;  %p9003_p6 = scmp.lt.s32.totalorder %s8994_s10, %s8994_s10 }
  0x6c   : > { %p8997_p8 = pnand %p8995_p7, %p9977_p0  ;;  %p9004_p5 = por %p9003_p6, %p9002_p9 }
  0x6e   : > { %p8998_p11 = pneg %p8997_p8 }
  0x70   : > { %p9005_p10 = pnand %p9004_p5, %p8998_p11 }
  0x72   : > { %9008 = shalt.err (!%p9005_p10)
}
  0x73   : > { %s10854_s18 = smov 128   ;;  %s10856_s11 = smov 8  }
  0x74   : > { %8782 = dma.hbm_to_vmem [thread:$0]  (!%p9967_p12), %s10900_s21, 384, %s850_s15, [#allocation6], %s10854_s18, %s10854_s18, %s10856_s11  }
  0x75   : > { %s9009_s28 = scalar_lea.hbm %s10898_s29, 32 }
  0x76   : > { %p9010_p13 = scmp.ne.s32.totalorder %s10898_s29, %s9009_s28  ;;  %p9016_p5 = scmp.lt.u32.totalorder %s9009_s28, %s10898_s29 }
  0x78   : > { %p9012_p1 = pnand %p9010_p13, %p9977_p0 }
  0x7a   : > { %p9013_p6 = pneg %p9012_p1 }
  0x7c   : > { %p9018_p9 = pnand %p9016_p5, %p9013_p6 }
  0x7e   : > { %9021 = shalt.err (!%p9018_p9)
}
  0x7f   : > { %s9022_s10 = scalar_lea.vmem %s9971_s2, 32  ;;  %p9030_p4 = scmp.lt.s32.totalorder %s9971_s2, %s9971_s2 }
  0x80   : > { %p9023_p10 = scmp.ne.s32.totalorder %s9971_s2, %s9022_s10  ;;  %p9031_p7 = scmp.lt.s32.totalorder %s9022_s10, %s9022_s10 }
  0x82   : > { %p9025_p2 = pnand %p9023_p10, %p9977_p0  ;;  %p9032_p8 = por %p9031_p7, %p9030_p4 }
  0x84   : > { %p9026_p3 = pneg %p9025_p2 }
  0x86   : > { %p9033_p11 = pnand %p9032_p8, %p9026_p3 }
  0x88   : > { %9036 = shalt.err (!%p9033_p11)
}
  0x89   : > { %8788 = dma.hbm_to_vmem [thread:$0]  (!%p9967_p12), %s10898_s29, 32, %s9971_s2, [#allocation9]  }
  0x8a   : > { %s9713_s28 = smov [#allocation11]   ;;  %s9714_s18 = smov [#allocation14]  }
  0x8b   : > { %s899_s15 = sshll.u32 %s9713_s28, 4  ;;  %s923_s11 = sshll.u32 %s9714_s18, 4  ;;  %s900_s15 = int_to_ptr.vmem [resolvable:$true] %s899_s15  ;;  %s10007_s11 = int_to_ptr.vmem [resolvable:$true] %s923_s11 }
  0x8c   : > { %s9037_s10 = scalar_lea.hbm %s10899_s8, 18432 }
  0x8d   : > { %p9038_p13 = scmp.ne.s32.totalorder %s10899_s8, %s9037_s10  ;;  %p9044_p5 = scmp.lt.u32.totalorder %s9037_s10, %s10899_s8 }
  0x8f   : > { %p9040_p1 = pnand %p9038_p13, %p9977_p0 }
  0x91   : > { %p9041_p6 = pneg %p9040_p1 }
  0x93   : > { %p9046_p9 = pnand %p9044_p5, %p9041_p6 }
  0x95   : > { %9049 = shalt.err (!%p9046_p9)
}
  0x96   : > { %s9050_s21 = scalar_lea.vmem %s900_s15, 18432  ;;  %p9058_p4 = scmp.lt.s32.totalorder %s900_s15, %s900_s15 }
  0x97   : > { %p9051_p10 = scmp.ne.s32.totalorder %s900_s15, %s9050_s21  ;;  %p9059_p7 = scmp.lt.s32.totalorder %s9050_s21, %s9050_s21 }
  0x99   : > { %p9053_p2 = pnand %p9051_p10, %p9977_p0  ;;  %p9060_p8 = por %p9059_p7, %p9058_p4 }
  0x9b   : > { %p9054_p3 = pneg %p9053_p2 }
  0x9d   : > { %p9061_p11 = pnand %p9060_p8, %p9054_p3 }
  0x9f   : > { %9064 = shalt.err (!%p9061_p11)
}
  0xa0   : > { %s10859_s2 = smov 256   ;;  %s10860_s18 = smov 16  }
  0xa1   : > { %8794 = dma.hbm_to_vmem [thread:$0]  (!%p9967_p12), %s10899_s8, 18432, %s900_s15, [#allocation12], %s10859_s2, %s10859_s2, %s10860_s18  }
  0xa2   : > { %s9065_s28 = scalar_lea.hbm %s9798_s19, 192 }
  0xa3   : > { %p9066_p13 = scmp.ne.s32.totalorder %s9798_s19, %s9065_s28  ;;  %p9072_p5 = scmp.lt.u32.totalorder %s9065_s28, %s9798_s19 }
  0xa5   : > { %p9068_p1 = pnand %p9066_p13, %p9977_p0 }
  0xa7   : > { %p9069_p6 = pneg %p9068_p1 }
  0xa9   : > { %p9074_p9 = pnand %p9072_p5, %p9069_p6 }
  0xab   : > { %9077 = shalt.err (!%p9074_p9)
}
  0xac   : > { %s9078_s21 = scalar_lea.vmem %s10007_s11, 192  ;;  %p9086_p4 = scmp.lt.s32.totalorder %s10007_s11, %s10007_s11 }
  0xad   : > { %p9079_p10 = scmp.ne.s32.totalorder %s10007_s11, %s9078_s21  ;;  %p9087_p7 = scmp.lt.s32.totalorder %s9078_s21, %s9078_s21 }
  0xaf   : > { %p9081_p2 = pnand %p9079_p10, %p9977_p0  ;;  %p9088_p8 = por %p9087_p7, %p9086_p4 }
  0xb1   : > { %p9082_p3 = pneg %p9081_p2 }
  0xb3   : > { %p9089_p11 = pnand %p9088_p8, %p9082_p3 }
  0xb5   : > { %9092 = shalt.err (!%p9089_p11)
}
  0xb6   : > { %s10863_s15 = smov 64   ;;  %s10864_s10 = smov 4  }
  0xb7   : > { %8800 = dma.hbm_to_vmem [thread:$0]  (!%p9967_p12), %s9798_s19, 192, %s10007_s11, [#allocation15], %s10863_s15, %s10863_s15, %s10864_s10  }
  0xb8   : > { %s9719_s28 = smov [#allocation17]   ;;  %s9720_s21 = smov [#allocation20]  }
  0xb9   : > { %s950_s2 = sshll.u32 %s9719_s28, 4  ;;  %s973_s18 = sshll.u32 %s9720_s21, 4  ;;  %s951_s2 = int_to_ptr.vmem [resolvable:$true] %s950_s2  ;;  %s10040_s18 = int_to_ptr.vmem [resolvable:$true] %s973_s18 }
  0xba   : > { %s9093_s8 = scalar_lea.hbm %s9808_s30, 16 }
  0xbb   : > { %p9094_p13 = scmp.ne.s32.totalorder %s9808_s30, %s9093_s8  ;;  %p9100_p5 = scmp.lt.u32.totalorder %s9093_s8, %s9808_s30 }
  0xbd   : > { %p9096_p1 = pnand %p9094_p13, %p9977_p0 }
  0xbf   : > { %p9097_p6 = pneg %p9096_p1 }
  0xc1   : > { %p9102_p9 = pnand %p9100_p5, %p9097_p6 }
  0xc3   : > { %9105 = shalt.err (!%p9102_p9)
}
  0xc4   : > { %s9106_s29 = scalar_lea.vmem %s951_s2, 16  ;;  %s9113_s11 = scalar_lea.vmem %s951_s2, 32 }
  0xc5   : > { %p9107_p10 = scmp.ne.s32.totalorder %s951_s2, %s9106_s29  ;;  %p9114_p4 = scmp.lt.s32.totalorder %s951_s2, %s951_s2 }
  0xc6   : > { %p9115_p7 = scmp.lt.s32.totalorder %s9113_s11, %s9106_s29 }
  0xc7   : > { %p9109_p2 = pnand %p9107_p10, %p9977_p0 }
  0xc8   : > { %p9116_p8 = por %p9115_p7, %p9114_p4 }
  0xc9   : > { %p9110_p3 = pneg %p9109_p2 }
  0xcb   : > { %p9117_p11 = pnand %p9116_p8, %p9110_p3 }
  0xcd   : > { %9120 = shalt.err (!%p9117_p11)
}
  0xce   : > { %8806 = dma.hbm_to_vmem [thread:$0]  (!%p9967_p12), %s9808_s30, 16, %s951_s2, [#allocation18]  }
  0xcf   : > { %s9121_s8 = scalar_lea.hbm %s9818_s12, 4608 }
  0xd0   : > { %p9122_p13 = scmp.ne.s32.totalorder %s9818_s12, %s9121_s8  ;;  %p9128_p5 = scmp.lt.u32.totalorder %s9121_s8, %s9818_s12 }
  0xd2   : > { %p9124_p1 = pnand %p9122_p13, %p9977_p0 }
  0xd4   : > { %p9125_p6 = pneg %p9124_p1 }
  0xd6   : > { %p9130_p9 = pnand %p9128_p5, %p9125_p6 }
  0xd8   : > { %9133 = shalt.err (!%p9130_p9)
}
  0xd9   : > { %s9134_s29 = scalar_lea.vmem %s10040_s18, 4608  ;;  %p9142_p4 = scmp.lt.s32.totalorder %s10040_s18, %s10040_s18 }
  0xda   : > { %p9135_p10 = scmp.ne.s32.totalorder %s10040_s18, %s9134_s29  ;;  %p9143_p7 = scmp.lt.s32.totalorder %s9134_s29, %s9134_s29 }
  0xdc   : > { %p9137_p2 = pnand %p9135_p10, %p9977_p0  ;;  %p9144_p8 = por %p9143_p7, %p9142_p4 }
  0xde   : > { %p9138_p3 = pneg %p9137_p2 }
  0xe0   : > { %p9145_p11 = pnand %p9144_p8, %p9138_p3 }
  0xe2   : > { %9148 = shalt.err (!%p9145_p11)
}
  0xe3   : > { %s10911_s2 = smov 8   ;;  %s10912_s28 = smov 128  }
  0xe4   : > { %8812 = dma.hbm_to_vmem [thread:$0]  (!%p9967_p12), %s9818_s12, 4608, %s10040_s18, [#allocation21], %s10912_s28, %s10912_s28, %s10911_s2  }
  0xe5   : > { %s9721_s21 = smov [#allocation23]   ;;  %s9722_s8 = smov [#allocation26]  }
  0xe6   : > { %s1000_s11 = sshll.u32 %s9721_s21, 4  ;;  %s1027_s15 = sshll.u32 %s9722_s8, 4  ;;  %s1001_s11 = int_to_ptr.vmem [resolvable:$true] %s1000_s11  ;;  %s10070_s15 = int_to_ptr.vmem [resolvable:$true] %s1027_s15 }
  0xe7   : > { %s9149_s29 = scalar_lea.hbm %s10897_s4, 4608 }
  0xe8   : > { %p9150_p13 = scmp.ne.s32.totalorder %s10897_s4, %s9149_s29  ;;  %p9156_p5 = scmp.lt.u32.totalorder %s9149_s29, %s10897_s4 }
  0xea   : > { %p9152_p1 = pnand %p9150_p13, %p9977_p0 }
  0xec   : > { %p9153_p6 = pneg %p9152_p1 }
  0xee   : > { %p9158_p9 = pnand %p9156_p5, %p9153_p6 }
  0xf0   : > { %9161 = shalt.err (!%p9158_p9)
}
  0xf1   : > { %s9162_s10 = scalar_lea.vmem %s1001_s11, 4608  ;;  %p9170_p4 = scmp.lt.s32.totalorder %s1001_s11, %s1001_s11 }
  0xf2   : > { %p9163_p10 = scmp.ne.s32.totalorder %s1001_s11, %s9162_s10  ;;  %p9171_p7 = scmp.lt.s32.totalorder %s9162_s10, %s9162_s10 }
  0xf4   : > { %p9165_p2 = pnand %p9163_p10, %p9977_p0  ;;  %p9172_p8 = por %p9171_p7, %p9170_p4 }
  0xf6   : > { %p9166_p3 = pneg %p9165_p2 }
  0xf8   : > { %p9173_p11 = pnand %p9172_p8, %p9166_p3 }
  0xfa   : > { %9176 = shalt.err (!%p9173_p11)
}
  0xfb   : > { %8818 = dma.hbm_to_vmem [thread:$0]  (!%p9967_p12), %s10897_s4, 4608, %s1001_s11, [#allocation24], %s10912_s28, %s10912_s28, %s10911_s2  }
  0xfc   : > { %s9177_s18 = scalar_lea.hbm %s9848_s27, 4608 }
  0xfd   : > { %p9178_p13 = scmp.ne.s32.totalorder %s9848_s27, %s9177_s18  ;;  %p9184_p5 = scmp.lt.u32.totalorder %s9177_s18, %s9848_s27 }
  0xff   : > { %p9180_p1 = pnand %p9178_p13, %p9977_p0 }
 0x101   : > { %p9181_p6 = pneg %p9180_p1 }
 0x103   : > { %p9186_p9 = pnand %p9184_p5, %p9181_p6 }
 0x105   : > { %9189 = shalt.err (!%p9186_p9)
}
 0x106   : > { %s9190_s10 = scalar_lea.vmem %s10070_s15, 4608  ;;  %p9198_p4 = scmp.lt.s32.totalorder %s10070_s15, %s10070_s15 }
 0x107   : > { %p9191_p10 = scmp.ne.s32.totalorder %s10070_s15, %s9190_s10  ;;  %p9199_p7 = scmp.lt.s32.totalorder %s9190_s10, %s9190_s10 }
 0x109   : > { %p9193_p2 = pnand %p9191_p10, %p9977_p0  ;;  %p9200_p8 = por %p9199_p7, %p9198_p4 }
 0x10b   : > { %p9194_p3 = pneg %p9193_p2 }
 0x10d   : > { %p9201_p11 = pnand %p9200_p8, %p9194_p3 }
 0x10f   : > { %9204 = shalt.err (!%p9201_p11)
}
 0x110   : > { %8824 = dma.hbm_to_vmem [thread:$0]  (!%p9967_p12), %s9848_s27, 4608, %s10070_s15, [#allocation27], %s10912_s28, %s10912_s28, %s10911_s2  }
 0x111   : > { %s9723_s21 = smov [#allocation29]   ;;  %s9724_s8 = smov [#allocation32]  }
 0x112   : > { %s1054_s11 = sshll.u32 %s9723_s21, 4  ;;  %s1081_s29 = sshll.u32 %s9724_s8, 4  ;;  %s1055_s11 = int_to_ptr.vmem [resolvable:$true] %s1054_s11  ;;  %s10103_s29 = int_to_ptr.vmem [resolvable:$true] %s1081_s29 }
 0x113   : > { %s9205_s18 = scalar_lea.hbm %s9863_s13, 4608 }
 0x114   : > { %p9206_p13 = scmp.ne.s32.totalorder %s9863_s13, %s9205_s18  ;;  %p9212_p5 = scmp.lt.u32.totalorder %s9205_s18, %s9863_s13 }
 0x116   : > { %p9208_p1 = pnand %p9206_p13, %p9977_p0 }
 0x118   : > { %p9209_p6 = pneg %p9208_p1 }
 0x11a   : > { %p9214_p9 = pnand %p9212_p5, %p9209_p6 }
 0x11c   : > { %9217 = shalt.err (!%p9214_p9)
}
 0x11d   : > { %s9218_s10 = scalar_lea.vmem %s1055_s11, 4608  ;;  %p9226_p4 = scmp.lt.s32.totalorder %s1055_s11, %s1055_s11 }
 0x11e   : > { %p9219_p10 = scmp.ne.s32.totalorder %s1055_s11, %s9218_s10  ;;  %p9227_p7 = scmp.lt.s32.totalorder %s9218_s10, %s9218_s10 }
 0x120   : > { %p9221_p2 = pnand %p9219_p10, %p9977_p0  ;;  %p9228_p8 = por %p9227_p7, %p9226_p4 }
 0x122   : > { %p9222_p3 = pneg %p9221_p2 }
 0x124   : > { %p9229_p11 = pnand %p9228_p8, %p9222_p3 }
 0x126   : > { %9232 = shalt.err (!%p9229_p11)
}
 0x127   : > { %8830 = dma.hbm_to_vmem [thread:$0]  (!%p9967_p12), %s9863_s13, 4608, %s1055_s11, [#allocation30], %s10912_s28, %s10912_s28, %s10911_s2  }
 0x128   : > { %s9233_s15 = scalar_lea.hbm %s9878_s17, 4608 }
 0x129   : > { %p9234_p13 = scmp.ne.s32.totalorder %s9878_s17, %s9233_s15  ;;  %p9240_p5 = scmp.lt.u32.totalorder %s9233_s15, %s9878_s17 }
 0x12b   : > { %p9236_p1 = pnand %p9234_p13, %p9977_p0 }
 0x12d   : > { %p9237_p6 = pneg %p9236_p1 }
 0x12f   : > { %p9242_p9 = pnand %p9240_p5, %p9237_p6 }
 0x131   : > { %9245 = shalt.err (!%p9242_p9)
}
 0x132   : > { %s9246_s21 = scalar_lea.vmem %s10103_s29, 4608  ;;  %p9254_p4 = scmp.lt.s32.totalorder %s10103_s29, %s10103_s29 }
 0x133   : > { %p9247_p10 = scmp.ne.s32.totalorder %s10103_s29, %s9246_s21  ;;  %p9255_p7 = scmp.lt.s32.totalorder %s9246_s21, %s9246_s21 }
 0x135   : > { %p9249_p2 = pnand %p9247_p10, %p9977_p0  ;;  %p9256_p8 = por %p9255_p7, %p9254_p4 }
 0x137   : > { %p9250_p3 = pneg %p9249_p2 }
 0x139   : > { %p9257_p11 = pnand %p9256_p8, %p9250_p3 }
 0x13b   : > { %9260 = shalt.err (!%p9257_p11)
}
 0x13c   : > { %8836 = dma.hbm_to_vmem [thread:$0]  (!%p9967_p12), %s9878_s17, 4608, %s10103_s29, [#allocation33], %s10912_s28, %s10912_s28, %s10911_s2  }
 0x13d   : > { %s9725_s11 = smov [#allocation2]   ;;  %s9726_s18 = smov [#allocation7]  }
 0x13e   : > { %s830_s8 = sshll.u32 %s9725_s11, 4  ;;  %s862_s10 = sshll.u32 %s9726_s18, 4  ;;  %s831_s8 = int_to_ptr.vmem [resolvable:$true] %s830_s8  ;;  %s10136_s10 = int_to_ptr.vmem [resolvable:$true] %s862_s10 }
 0x13f   : > { %s9261_s15 = scalar_lea.hbm %s10896_s9, 1280 }
 0x140   : > { %p9262_p13 = scmp.ne.s32.totalorder %s10896_s9, %s9261_s15  ;;  %p9268_p5 = scmp.lt.u32.totalorder %s9261_s15, %s10896_s9 }
 0x142   : > { %p9264_p1 = pnand %p9262_p13, %p9977_p0 }
 0x144   : > { %p9265_p6 = pneg %p9264_p1 }
 0x146   : > { %p9270_p9 = pnand %p9268_p5, %p9265_p6 }
 0x148   : > { %9273 = shalt.err (!%p9270_p9)
}
 0x149   : > { %s9274_s21 = scalar_lea.vmem %s831_s8, 1280  ;;  %p9282_p4 = scmp.lt.s32.totalorder %s831_s8, %s831_s8 }
 0x14a   : > { %p9275_p10 = scmp.ne.s32.totalorder %s831_s8, %s9274_s21  ;;  %p9283_p7 = scmp.lt.s32.totalorder %s9274_s21, %s9274_s21 }
 0x14c   : > { %p9277_p2 = pnand %p9275_p10, %p9977_p0  ;;  %p9284_p8 = por %p9283_p7, %p9282_p4 }
 0x14e   : > { %p9278_p3 = pneg %p9277_p2 }
 0x150   : > { %p9285_p11 = pnand %p9284_p8, %p9278_p3 }
 0x152   : > { %9288 = shalt.err (!%p9285_p11)
}
 0x153   : > { %8779 = dma.hbm_to_vmem [thread:$0]  (!%p9967_p12), %s10896_s9, 1280, %s831_s8, [#allocation3], %s10912_s28, %s10912_s28, %s10911_s2  }
 0x154   : > { %s9289_s29 = scalar_lea.hbm %s9773_s25, 18432 }
 0x155   : > { %p9290_p13 = scmp.ne.s32.totalorder %s9773_s25, %s9289_s29  ;;  %p9296_p5 = scmp.lt.u32.totalorder %s9289_s29, %s9773_s25 }
 0x157   : > { %p9292_p1 = pnand %p9290_p13, %p9977_p0 }
 0x159   : > { %p9293_p6 = pneg %p9292_p1 }
 0x15b   : > { %p9298_p9 = pnand %p9296_p5, %p9293_p6 }
 0x15d   : > { %9301 = shalt.err (!%p9298_p9)
}
 0x15e   : > { %s9302_s11 = scalar_lea.vmem %s10136_s10, 18432  ;;  %p9310_p4 = scmp.lt.s32.totalorder %s10136_s10, %s10136_s10 }
 0x15f   : > { %p9303_p10 = scmp.ne.s32.totalorder %s10136_s10, %s9302_s11  ;;  %p9311_p7 = scmp.lt.s32.totalorder %s9302_s11, %s9302_s11 }
 0x161   : > { %p9305_p2 = pnand %p9303_p10, %p9977_p0  ;;  %p9312_p8 = por %p9311_p7, %p9310_p4 }
 0x163   : > { %p9306_p3 = pneg %p9305_p2 }
 0x165   : > { %p9313_p11 = pnand %p9312_p8, %p9306_p3 }
 0x167   : > { %9316 = shalt.err (!%p9313_p11)
}
 0x168   : > { %s10913_s8 = smov 16   ;;  %s10914_s18 = smov 256  }
 0x169   : > { %8785 = dma.hbm_to_vmem [thread:$0]  (!%p9967_p12), %s9773_s25, 18432, %s10136_s10, [#allocation6], %s10914_s18, %s10914_s18, %s10913_s8  }
 0x16a   : > { %s9727_s15 = smov [#allocation10]   ;;  %s9728_s29 = smov [#allocation13]  }
 0x16b   : > { %s886_s21 = sshll.u32 %s9727_s15, 4  ;;  %s913_s4 = sshll.u32 %s9728_s29, 4  ;;  %s887_s21 = int_to_ptr.vmem [resolvable:$true] %s886_s21  ;;  %s10169_s4 = int_to_ptr.vmem [resolvable:$true] %s913_s4 }
 0x16c   : > { %s9317_s11 = scalar_lea.hbm %s10895_s3, 384 }
 0x16d   : > { %p9318_p13 = scmp.ne.s32.totalorder %s10895_s3, %s9317_s11  ;;  %p9324_p5 = scmp.lt.u32.totalorder %s9317_s11, %s10895_s3 }
 0x16f   : > { %p9320_p1 = pnand %p9318_p13, %p9977_p0 }
 0x171   : > { %p9321_p6 = pneg %p9320_p1 }
 0x173   : > { %p9326_p9 = pnand %p9324_p5, %p9321_p6 }
 0x175   : > { %9329 = shalt.err (!%p9326_p9)
}
 0x176   : > { %s9330_s9 = scalar_lea.vmem %s887_s21, 384  ;;  %p9338_p4 = scmp.lt.s32.totalorder %s887_s21, %s887_s21 }
 0x177   : > { %p9331_p10 = scmp.ne.s32.totalorder %s887_s21, %s9330_s9  ;;  %p9339_p7 = scmp.lt.s32.totalorder %s9330_s9, %s9330_s9 }
 0x179   : > { %p9333_p2 = pnand %p9331_p10, %p9977_p0  ;;  %p9340_p8 = por %p9339_p7, %p9338_p4 }
 0x17b   : > { %p9334_p3 = pneg %p9333_p2 }
 0x17d   : > { %p9341_p11 = pnand %p9340_p8, %p9334_p3 }
 0x17f   : > { %9344 = shalt.err (!%p9341_p11)
}
 0x180   : > { %8791 = dma.hbm_to_vmem [thread:$0]  (!%p9967_p12), %s10895_s3, 384, %s887_s21, [#allocation9], %s10912_s28, %s10912_s28, %s10911_s2  }
 0x181   : > { %s9345_s10 = scalar_lea.hbm %s9793_s14, 32 }
 0x182   : > { %p9346_p13 = scmp.ne.s32.totalorder %s9793_s14, %s9345_s10  ;;  %p9352_p5 = scmp.lt.u32.totalorder %s9345_s10, %s9793_s14 }
 0x184   : > { %p9348_p1 = pnand %p9346_p13, %p9977_p0 }
 0x186   : > { %p9349_p6 = pneg %p9348_p1 }
 0x188   : > { %p9354_p9 = pnand %p9352_p5, %p9349_p6 }
 0x18a   : > { %9357 = shalt.err (!%p9354_p9)
}
 0x18b   : > { %s9358_s9 = scalar_lea.vmem %s10169_s4, 32  ;;  %p9366_p4 = scmp.lt.s32.totalorder %s10169_s4, %s10169_s4 }
 0x18c   : > { %p9359_p10 = scmp.ne.s32.totalorder %s10169_s4, %s9358_s9  ;;  %p9367_p7 = scmp.lt.s32.totalorder %s9358_s9, %s9358_s9 }
 0x18e   : > { %p9361_p2 = pnand %p9359_p10, %p9977_p0  ;;  %p9368_p8 = por %p9367_p7, %p9366_p4 }
 0x190   : > { %p9362_p3 = pneg %p9361_p2 }
 0x192   : > { %p9369_p11 = pnand %p9368_p8, %p9362_p3 }
 0x194   : > { %9372 = shalt.err (!%p9369_p11)
}
 0x195   : > { %s10915_s8 = sld [smem:[#allocation56_spill]]  ;;  %s9729_s18 = smov [#allocation16]  }
 0x196   : > { %8797 = dma.hbm_to_vmem [thread:$0]  (!%p9967_p12), %s9793_s14, 32, %s10169_s4, [#allocation12]  }
 0x197   : > { %s936_s15 = sshll.u32 %s9729_s18, 4  ;;  %s9730_s21 = smov [#allocation19]   ;;  %s937_s15 = int_to_ptr.vmem [resolvable:$true] %s936_s15 }
 0x198   : > { %s960_s29 = sshll.u32 %s9730_s21, 4  ;;  %s10199_s29 = int_to_ptr.vmem [resolvable:$true] %s960_s29 }
 0x19b   : > { %s9373_s11 = scalar_lea.hbm %s10915_s8, 9216 }
 0x19c   : > { %p9374_p13 = scmp.ne.s32.totalorder %s10915_s8, %s9373_s11  ;;  %p9380_p5 = scmp.lt.u32.totalorder %s9373_s11, %s10915_s8 }
 0x19e   : > { %p9376_p1 = pnand %p9374_p13, %p9977_p0 }
 0x1a0   : > { %p9377_p6 = pneg %p9376_p1 }
 0x1a2   : > { %p9382_p9 = pnand %p9380_p5, %p9377_p6 }
 0x1a4   : > { %9385 = shalt.err (!%p9382_p9)
}
 0x1a5   : > { %s9386_s10 = scalar_lea.vmem %s937_s15, 9216  ;;  %p9394_p4 = scmp.lt.s32.totalorder %s937_s15, %s937_s15 }
 0x1a6   : > { %p9387_p10 = scmp.ne.s32.totalorder %s937_s15, %s9386_s10  ;;  %p9395_p7 = scmp.lt.s32.totalorder %s9386_s10, %s9386_s10 }
 0x1a8   : > { %p9389_p2 = pnand %p9387_p10, %p9977_p0  ;;  %p9396_p8 = por %p9395_p7, %p9394_p4 }
 0x1aa   : > { %p9390_p3 = pneg %p9389_p2 }
 0x1ac   : > { %p9397_p11 = pnand %p9396_p8, %p9390_p3 }
 0x1ae   : > { %9400 = shalt.err (!%p9397_p11)
}
 0x1af   : > { %s10916_s4 = sld [smem:[#allocation57_spill]] }
 0x1b0   : > { %8803 = dma.hbm_to_vmem [thread:$0]  (!%p9967_p12), %s10915_s8, 9216, %s937_s15, [#allocation15], %s10912_s28, %s10912_s28, %s10911_s2  }
 0x1b5   : > { %s9401_s9 = scalar_lea.hbm %s10916_s4, 192 }
 0x1b6   : > { %p9402_p13 = scmp.ne.s32.totalorder %s10916_s4, %s9401_s9  ;;  %p9408_p5 = scmp.lt.u32.totalorder %s9401_s9, %s10916_s4 }
 0x1b8   : > { %p9404_p1 = pnand %p9402_p13, %p9977_p0 }
 0x1ba   : > { %p9405_p6 = pneg %p9404_p1 }
 0x1bc   : > { %p9410_p9 = pnand %p9408_p5, %p9405_p6 }
 0x1be   : > { %9413 = shalt.err (!%p9410_p9)
}
 0x1bf   : > { %s9414_s18 = scalar_lea.vmem %s10199_s29, 192  ;;  %p9422_p4 = scmp.lt.s32.totalorder %s10199_s29, %s10199_s29 }
 0x1c0   : > { %p9415_p10 = scmp.ne.s32.totalorder %s10199_s29, %s9414_s18  ;;  %p9423_p7 = scmp.lt.s32.totalorder %s9414_s18, %s9414_s18 }
 0x1c2   : > { %p9417_p2 = pnand %p9415_p10, %p9977_p0  ;;  %p9424_p8 = por %p9423_p7, %p9422_p4 }
 0x1c4   : > { %p9418_p3 = pneg %p9417_p2 }
 0x1c6   : > { %p9425_p11 = pnand %p9424_p8, %p9418_p3 }
 0x1c8   : > { %9428 = shalt.err (!%p9425_p11)
}
 0x1c9   : > { %s10917_s2 = smov 4   ;;  %s10918_s28 = smov 64  }
 0x1ca   : > { %s10919_s15 = sld [smem:[#allocation58_spill]]  ;;  %s9731_s21 = smov [#allocation22]  }
 0x1cb   : > { %8809 = dma.hbm_to_vmem [thread:$0]  (!%p9967_p12), %s10916_s4, 192, %s10199_s29, [#allocation18], %s10918_s28, %s10918_s28, %s10917_s2  }
 0x1cc   : > { %s987_s11 = sshll.u32 %s9731_s21, 4  ;;  %s9732_s10 = smov [#allocation25]   ;;  %s988_s11 = int_to_ptr.vmem [resolvable:$true] %s987_s11 }
 0x1cd   : > { %s1014_s9 = sshll.u32 %s9732_s10, 4  ;;  %s10232_s9 = int_to_ptr.vmem [resolvable:$true] %s1014_s9 }
 0x1d0   : > { %s9429_s18 = scalar_lea.hbm %s10919_s15, 16 }
 0x1d1   : > { %p9430_p13 = scmp.ne.s32.totalorder %s10919_s15, %s9429_s18  ;;  %p9436_p5 = scmp.lt.u32.totalorder %s9429_s18, %s10919_s15 }
 0x1d3   : > { %p9432_p1 = pnand %p9430_p13, %p9977_p0 }
 0x1d5   : > { %p9433_p6 = pneg %p9432_p1 }
 0x1d7   : > { %p9438_p9 = pnand %p9436_p5, %p9433_p6 }
 0x1d9   : > { %9441 = shalt.err (!%p9438_p9)
}
 0x1da   : > { %s9442_s3 = scalar_lea.vmem %s988_s11, 16  ;;  %s9449_s29 = scalar_lea.vmem %s988_s11, 32 }
 0x1db   : > { %p9443_p10 = scmp.ne.s32.totalorder %s988_s11, %s9442_s3  ;;  %p9450_p4 = scmp.lt.s32.totalorder %s988_s11, %s988_s11 }
 0x1dc   : > { %p9451_p7 = scmp.lt.s32.totalorder %s9449_s29, %s9442_s3 }
 0x1dd   : > { %p9445_p2 = pnand %p9443_p10, %p9977_p0 }
 0x1de   : > { %p9452_p8 = por %p9451_p7, %p9450_p4 }
 0x1df   : > { %p9446_p3 = pneg %p9445_p2 }
 0x1e1   : > { %p9453_p11 = pnand %p9452_p8, %p9446_p3 }
 0x1e3   : > { %9456 = shalt.err (!%p9453_p11)
}
 0x1e4   : > { %s10920_s2 = sld [smem:[#allocation61_spill]] }
 0x1e5   : > { %8815 = dma.hbm_to_vmem [thread:$0]  (!%p9967_p12), %s10919_s15, 16, %s988_s11, [#allocation21]  }
 0x1ea   : > { %s10921_s21 = smov %s10920_s2  ;;  %s9457_s28 = scalar_lea.hbm %s10920_s2, 16 }
 0x1eb   : > { %p9458_p13 = scmp.ne.s32.totalorder %s10921_s21, %s9457_s28  ;;  %p9464_p5 = scmp.lt.u32.totalorder %s9457_s28, %s10921_s21 }
 0x1ed   : > { %p9460_p1 = pnand %p9458_p13, %p9977_p0 }
 0x1ef   : > { %p9461_p6 = pneg %p9460_p1 }
 0x1f1   : > { %p9466_p9 = pnand %p9464_p5, %p9461_p6 }
 0x1f3   : > { %9469 = shalt.err (!%p9466_p9)
}
 0x1f4   : > { %s9470_s3 = scalar_lea.vmem %s10232_s9, 16  ;;  %s9477_s10 = scalar_lea.vmem %s10232_s9, 32 }
 0x1f5   : > { %p9471_p10 = scmp.ne.s32.totalorder %s10232_s9, %s9470_s3  ;;  %p9478_p4 = scmp.lt.s32.totalorder %s10232_s9, %s10232_s9 }
 0x1f6   : > { %p9479_p7 = scmp.lt.s32.totalorder %s9477_s10, %s9470_s3 }
 0x1f7   : > { %p9473_p2 = pnand %p9471_p10, %p9977_p0 }
 0x1f8   : > { %p9480_p8 = por %p9479_p7, %p9478_p4 }
 0x1f9   : > { %p9474_p3 = pneg %p9473_p2 }
 0x1fb   : > { %p9481_p11 = pnand %p9480_p8, %p9474_p3 }
 0x1fd   : > { %9484 = shalt.err (!%p9481_p11)
}
 0x1fe   : > { %s10922_s11 = sld [smem:[#allocation63_spill]]  ;;  %s9733_s18 = smov [#allocation28]  }
 0x1ff   : > { %8821 = dma.hbm_to_vmem [thread:$0]  (!%p9967_p12), %s10921_s21, 16, %s10232_s9, [#allocation24]  }
 0x200   : > { %s1041_s29 = sshll.u32 %s9733_s18, 4  ;;  %s9734_s2 = smov [#allocation31]   ;;  %s1042_s29 = int_to_ptr.vmem [resolvable:$true] %s1041_s29 }
 0x201   : > { %s1068_s28 = sshll.u32 %s9734_s2, 4  ;;  %s10260_s28 = int_to_ptr.vmem [resolvable:$true] %s1068_s28 }
 0x204   : > { %s9485_s3 = scalar_lea.hbm %s10922_s11, 16 }
 0x205   : > { %p9486_p13 = scmp.ne.s32.totalorder %s10922_s11, %s9485_s3  ;;  %p9492_p5 = scmp.lt.u32.totalorder %s9485_s3, %s10922_s11 }
 0x207   : > { %p9488_p1 = pnand %p9486_p13, %p9977_p0 }
 0x209   : > { %p9489_p6 = pneg %p9488_p1 }
 0x20b   : > { %p9494_p9 = pnand %p9492_p5, %p9489_p6 }
 0x20d   : > { %9497 = shalt.err (!%p9494_p9)
}
 0x20e   : > { %s9498_s10 = scalar_lea.vmem %s1042_s29, 16  ;;  %s9505_s9 = scalar_lea.vmem %s1042_s29, 32 }
 0x20f   : > { %p9499_p10 = scmp.ne.s32.totalorder %s1042_s29, %s9498_s10  ;;  %p9506_p4 = scmp.lt.s32.totalorder %s1042_s29, %s1042_s29 }
 0x210   : > { %p9507_p7 = scmp.lt.s32.totalorder %s9505_s9, %s9498_s10 }
 0x211   : > { %p9501_p2 = pnand %p9499_p10, %p9977_p0 }
 0x212   : > { %p9508_p8 = por %p9507_p7, %p9506_p4 }
 0x213   : > { %p9502_p3 = pneg %p9501_p2 }
 0x215   : > { %p9509_p11 = pnand %p9508_p8, %p9502_p3 }
 0x217   : > { %9512 = shalt.err (!%p9509_p11)
}
 0x218   : > { %s10923_s18 = sld [smem:[#allocation65_spill]] }
 0x219   : > { %8827 = dma.hbm_to_vmem [thread:$0]  (!%p9967_p12), %s10922_s11, 16, %s1042_s29, [#allocation27]  }
 0x21e   : > { %s9513_s2 = scalar_lea.hbm %s10923_s18, 16 }
 0x21f   : > { %p9514_p13 = scmp.ne.s32.totalorder %s10923_s18, %s9513_s2  ;;  %p9520_p5 = scmp.lt.u32.totalorder %s9513_s2, %s10923_s18 }
 0x221   : > { %p9516_p1 = pnand %p9514_p13, %p9977_p0 }
 0x223   : > { %p9517_p6 = pneg %p9516_p1 }
 0x225   : > { %p9522_p9 = pnand %p9520_p5, %p9517_p6 }
 0x227   : > { %9525 = shalt.err (!%p9522_p9)
}
 0x228   : > { %s9526_s3 = scalar_lea.vmem %s10260_s28, 16  ;;  %s9533_s10 = scalar_lea.vmem %s10260_s28, 32 }
 0x229   : > { %p9527_p10 = scmp.ne.s32.totalorder %s10260_s28, %s9526_s3  ;;  %p9534_p4 = scmp.lt.s32.totalorder %s10260_s28, %s10260_s28 }
 0x22a   : > { %p9535_p7 = scmp.lt.s32.totalorder %s9533_s10, %s9526_s3 }
 0x22b   : > { %p9529_p2 = pnand %p9527_p10, %p9977_p0 }
 0x22c   : > { %p9536_p8 = por %p9535_p7, %p9534_p4 }
 0x22d   : > { %p9530_p3 = pneg %p9529_p2 }
 0x22f   : > { %p9537_p11 = pnand %p9536_p8, %p9530_p3 }
 0x231   : > { %9540 = shalt.err (!%p9537_p11)
}
 0x232   : > { %s10924_s29 = sld [smem:[#allocation67_spill]]  ;;  %s9735_s9 = smov [#allocation34]  }
 0x233   : > { %8833 = dma.hbm_to_vmem [thread:$0]  (!%p9967_p12), %s10923_s18, 16, %s10260_s28, [#allocation30]  }
 0x234   : > { %s1095_s2 = sshll.u32 %s9735_s9, 4  ;;  %s1096_s2 = int_to_ptr.vmem [resolvable:$true] %s1095_s2 }
 0x238   : > { %s9541_s4 = scalar_lea.hbm %s10924_s29, 16 }
 0x239   : > { %p9542_p13 = scmp.ne.s32.totalorder %s10924_s29, %s9541_s4  ;;  %p9548_p5 = scmp.lt.u32.totalorder %s9541_s4, %s10924_s29 }
 0x23b   : > { %p9544_p1 = pnand %p9542_p13, %p9977_p0 }
 0x23d   : > { %p9545_p6 = pneg %p9544_p1 }
 0x23f   : > { %p9550_p9 = pnand %p9548_p5, %p9545_p6 }
 0x241   : > { %9553 = shalt.err (!%p9550_p9)
}
 0x242   : > { %s9554_s3 = scalar_lea.vmem %s1096_s2, 16  ;;  %s9561_s10 = scalar_lea.vmem %s1096_s2, 32 }
 0x243   : > { %p9555_p10 = scmp.ne.s32.totalorder %s1096_s2, %s9554_s3  ;;  %p9562_p4 = scmp.lt.s32.totalorder %s1096_s2, %s1096_s2 }
 0x244   : > { %p9563_p7 = scmp.lt.s32.totalorder %s9561_s10, %s9554_s3 }
 0x245   : > { %p9557_p2 = pnand %p9555_p10, %p9977_p0 }
 0x246   : > { %p9564_p8 = por %p9563_p7, %p9562_p4 }
 0x247   : > { %p9558_p3 = pneg %p9557_p2 }
 0x249   : > { %p9565_p11 = pnand %p9564_p8, %p9558_p3 }
 0x24b   : > { %9568 = shalt.err (!%p9565_p11)
}
 0x24c   : > { %8839 = dma.hbm_to_vmem [thread:$0]  (!%p9967_p12), %s10924_s29, 16, %s1096_s2, [#allocation33]  }
 0x24d   : > { %p10925_p13 = scmp.ne.s32.totalorder %s10908_s26, 0 }
 0x24e   : > { %p10926_p1 = scmp.eq.s32.totalorder (!%p10925_p13), %s9931_s7, 0 }
 0x24f   : > { %1116 = sbr.rel (%p10925_p13) target bundleno = 6342 (0x18c6), region = 132 }
 0x256   : > { %9614 = dma.done.wait (%p10926_p1), [#allocation3], 1280   ;;  %p10927_p6 = pmov %p10926_p1 }
 0x257   : > { %p10928_p0 = pmov %p10926_p1 }
 0x258   : > { %9616 = vsyncadd (%p10927_p6), [#allocation3], 4294966016 }
 0x259   : > { %9618 = dma.done.wait (%p10928_p0), [#allocation6], 18816   ;;  %p10929_p5 = pmov %p10928_p0 }
 0x25a   : > { %p10930_p9 = pmov %p10928_p0 }
 0x25b   : > { %9620 = vsyncadd (%p10929_p5), [#allocation6], 4294948480 }
 0x25c   : > { %9622 = dma.done.wait (%p10930_p9), [#allocation9], 416   ;;  %p10931_p12 = pmov %p10928_p0 }
 0x25d   : > { %p10932_p10 = pmov %p10928_p0 }
 0x25e   : > { %9624 = vsyncadd (%p10931_p12), [#allocation9], 4294966880 }
 0x25f   : > { %9626 = dma.done.wait (%p10932_p10), [#allocation12], 18464   ;;  %p10933_p2 = pmov %p10928_p0 }
 0x260   : > { %p10934_p3 = pmov %p10928_p0 }
 0x261   : > { %9628 = vsyncadd (%p10933_p2), [#allocation12], 4294948832 }
 0x262   : > { %9630 = dma.done.wait (%p10934_p3), [#allocation15], 9408   ;;  %p10935_p4 = pmov %p10928_p0 }
 0x263   : > { %p10936_p7 = pmov %p10928_p0 }
 0x264   : > { %9632 = vsyncadd (%p10935_p4), [#allocation15], 4294957888 }
 0x265   : > { %9634 = dma.done.wait (%p10936_p7), [#allocation18], 208   ;;  %p10937_p8 = pmov %p10928_p0 }
 0x266   : > { %p10938_p11 = pmov %p10928_p0 }
 0x267   : > { %9636 = vsyncadd (%p10937_p8), [#allocation18], 4294967088 }
 0x268   : > { %9638 = dma.done.wait (%p10938_p11), [#allocation21], 4624   ;;  %p10939_p13 = pmov %p10928_p0 }
 0x269   : > { %p10940_p1 = pmov %p10928_p0 }
 0x26a   : > { %9640 = vsyncadd (%p10939_p13), [#allocation21], 4294962672 }
 0x26b   : > { %9642 = dma.done.wait (%p10940_p1), [#allocation24], 4624   ;;  %p10941_p6 = pmov %p10928_p0 }
 0x26d   : > { %9644 = vsyncadd (%p10941_p6), [#allocation24], 4294962672 }
 0x26e   : > { %9646 = dma.done.wait (%p10928_p0), [#allocation27], 4624   ;;  %p10942_p5 = pmov %p10928_p0 }
 0x26f   : > { %p10943_p9 = pmov %p10928_p0 }
 0x270   : > { %9648 = vsyncadd (%p10942_p5), [#allocation27], 4294962672 }
 0x271   : > { %9650 = dma.done.wait (%p10943_p9), [#allocation30], 4624   ;;  %p10944_p12 = pmov %p10928_p0 }
 0x272   : > { %p10945_p10 = pmov %p10928_p0 }
 0x273   : > { %9652 = vsyncadd (%p10944_p12), [#allocation30], 4294962672 }
 0x274   : > { %9654 = dma.done.wait (%p10945_p10), [#allocation33], 4624   ;;  %p10946_p2 = pmov %p10928_p0 }
 0x275   : > { %s10947_s23 = sld [smem:[#allocation48_spill]]  ;;  %s10948_s26 = sld [smem:[#allocation50_spill]]  ;;  %vm1322_vm0 = vcmask 130048   ;;  %v1320_v2 = vld [vmem:[#allocation2] sm:$0xff]  ;;  %v1321_v6 = vld [vmem:[#allocation2 + $0x8] sm:$0xff]  ;;  %v1417_v7 = vld [vmem:[#allocation2 + $0x10] sm:$0xff] }
 0x276   : > { %9656 = vsyncadd (%p10946_p2), [#allocation33], 4294962672  ;;  %p1295_p3 = scmp.lt.s32.totalorder %s9931_s7, 1  ;;  %7397 = vmatprep.mubr.msk.f32.mxu0 %vm1322_vm0, %v1320_v2  ;;  %v1418_v13 = vld [vmem:[#allocation2 + $0x18] sm:$0xff]  ;;  %v9736_v28 = vmov 0.0   ;;  %v1865_v29 = vld [vmem:[#allocation2 + $0x30] sm:$0xff] }
 0x277   : > { %v1866_v30 = vld [vmem:[#allocation2 + $0x38] sm:$0xff]  ;;  %v2049_v31 = vld [vmem:[#allocation2 + $0x40] sm:$0xff]  ;;  %7418 = vmatprep.mubr.msk.f32.mxu1 %vm1322_vm0, %v1865_v29  ;;  %v2050_v32 = vld [vmem:[#allocation2 + $0x48] sm:$0xff]  ;;  %vm1513_vm1 = vcmask 392192   ;;  %s10949_s9 = sld [smem:[#allocation51_spill]]  ;;  %s10950_s2 = sld [smem:[#allocation68_spill]] }
 0x278   : > { %s10346_s16 = scalar_select %p1295_p3, %s9931_s7, 1  ;;  %v1681_v55 = vld [vmem:[#allocation2 + $0x20] sm:$0xff]  ;;  %v1682_v60 = vld [vmem:[#allocation2 + $0x28] sm:$0xff]  ;;  %vm2261_vm4 = vcmask 523264   ;;  %vm2883_vm9 = vcmask 64512   ;;  %vm9738_vm12 = vmmov 0  }
 0x279   : > { %s10951_s5 = sld [smem:[#allocation69_spill]]  ;;  %vm4039_vm14 = vcmask 1043456   ;;  %vm4035_vm15 = vcmask 31744   ;;  %s10955_s6 = sld [smem:[#allocation70_spill]] }
 0x27a   : > { %s7145_s4 = sshll.u32 %s10346_s16, 4  ;;  %s7146_s3 = sshll.u32 %s10346_s16, 5 }
 0x27b   : > { %s1299_s28 = scalar_lea.vmem %s10947_s23, %s7145_s4  ;;  %v7004_v4 = vld [vmem:[%s10948_s26 + $0x68] sm:$0xff]  ;;  %v7006_v5 = vld [vmem:[%s10948_s26 + $0x78] sm:$0xff]  ;;  %v7003_v9 = vld [vmem:[%s10948_s26 + $0x60] sm:$0xff]  ;;  %p10958_p7 = scmp.ne.s32.totalorder %s10905_s22, 0 }
 0x27c   : > { %v1318_v0 = vld [vmem:[%s1299_s28] sm:$0xff]  ;;  %v1319_v1 = vld [vmem:[%s1299_s28 + $0x8] sm:$0xff]  ;;  %v7916_v8 = vpack.c.bf16 %v7006_v5, %v7004_v4  ;;  %v7005_v10 = vld [vmem:[%s10948_s26 + $0x70] sm:$0xff]  ;;  %s6997_s28 = sshll.u32 %s10346_s16, 2 }
 0x27d   : > { %v10352_v3 = vpack.c.bf16 %v1319_v1, %v1318_v0  ;;  %v7008_v11 = vld [vmem:[%s10948_s26 + $0x88] sm:$0xff]  ;;  %v7010_v12 = vld [vmem:[%s10948_s26 + $0x98] sm:$0xff]  ;;  %v7918_v14 = vpack.c.bf16 %v7005_v10, %v7003_v9  ;;  %v7007_v16 = vld [vmem:[%s10948_s26 + $0x80] sm:$0xff]  ;;  %s1304_s10 = scalar_lea.vmem %s10950_s2, %s7146_s3  ;;  %s10953_s2 = sld [smem:[#allocation62_spill]] }
 0x27e   : > { %v7920_v15 = vpack.c.bf16 %v7010_v12, %v7008_v11  ;;  %v7009_v17 = vld [vmem:[%s10948_s26 + $0x90] sm:$0xff]  ;;  %v7012_v19 = vld [vmem:[%s10948_s26 + $0xa8] sm:$0xff]  ;;  %v7014_v20 = vld [vmem:[%s10948_s26 + $0xb8] sm:$0xff] }
 0x27f   : > { %7909 = vmatprep.subr.bf16.mxu0 %v10352_v3  ;;  %7957 = vmatprep.subr.bf16.mxu1 %v10352_v3  ;;  %v7922_v18 = vpack.c.bf16 %v7009_v17, %v7007_v16  ;;  %v7924_v21 = vpack.c.bf16 %v7014_v20, %v7012_v19  ;;  %v7011_v22 = vld [vmem:[%s10948_s26 + $0xa0] sm:$0xff]  ;;  %v7013_v23 = vld [vmem:[%s10948_s26 + $0xb0] sm:$0xff]  ;;  %v1405_v25 = vld [vmem:[%s10948_s26 + $0x8] sm:$0xff]  ;;  %s1309_s23 = scalar_lea.vmem %s10951_s5, %s7145_s4  ;;  %s10952_s4 = sld [smem:[#allocation59_spill]] }
 0x280   : > { %7911 = vmatpush3.bf16.msra.mxu0 %v10352_v3  ;;  %7959 = vmatpush3.bf16.msra.mxu1 %v10352_v3  ;;  %v7926_v24 = vpack.c.bf16 %v7013_v23, %v7011_v22  ;;  %v1407_v26 = vld [vmem:[%s10948_s26 + $0x18] sm:$0xff]  ;;  %v1404_v34 = vld [vmem:[%s10948_s26] sm:$0xff]  ;;  %v1406_v35 = vld [vmem:[%s10948_s26 + $0x10] sm:$0xff] }
 0x281   : > { %7913 = vmatprep.subr.bf16.mxu0 %v10352_v3  ;;  %7973 = vmatprep.subr.bf16.mxu1 %v10352_v3  ;;  %v7928_v27 = vpack.c.bf16 %v1407_v26, %v1405_v25  ;;  %v1409_v37 = vld [vmem:[%s10948_s26 + $0x28] sm:$0xff]  ;;  %v1411_v38 = vld [vmem:[%s10948_s26 + $0x38] sm:$0xff]  ;;  %v7930_v39 = vpack.c.bf16 %v1406_v35, %v1404_v34  ;;  %v1408_v42 = vld [vmem:[%s10948_s26 + $0x20] sm:$0xff] }
 0x282   : > { %v7932_v41 = vpack.c.bf16 %v1411_v38, %v1409_v37  ;;  %v1410_v43 = vld [vmem:[%s10948_s26 + $0x30] sm:$0xff]  ;;  %v1413_v45 = vld [vmem:[%s10948_s26 + $0x48] sm:$0xff]  ;;  %v1415_v46 = vld [vmem:[%s10948_s26 + $0x58] sm:$0xff] }
 0x283   : > { %7398 = vmatmul.mubr.msk.f32.vlgmr.msra.gmra.mrb[0].mxu0 %vm1322_vm0, %v1321_v6  ;;  %7419 = vmatmul.mubr.msk.f32.vlgmr.msra.gmra.mrb[0].mxu1 %vm1322_vm0, %v1866_v30  ;;  %v7934_v47 = vpack.c.bf16 %v1410_v43, %v1408_v42  ;;  %v7936_v48 = vpack.c.bf16 %v1415_v46, %v1413_v45  ;;  %v1412_v49 = vld [vmem:[%s10948_s26 + $0x40] sm:$0xff]  ;;  %v1414_v50 = vld [vmem:[%s10948_s26 + $0x50] sm:$0xff]  ;;  %v7022_v52 = vld [vmem:[%s10948_s26 + $0xc8] sm:$0xff]  ;;  %s10954_s3 = smov %s10953_s2 }
 0x284   : > { %7915 = vmatpush3.bf16.msra.mxu0 %v10352_v3  ;;  %7404 = vmatprep.mubr.msk.f32.mxu0 %vm1322_vm0, %v1417_v7  ;;  %v7938_v51 = vpack.c.bf16 %v1414_v50, %v1412_v49  ;;  %v7024_v53 = vld [vmem:[%s10948_s26 + $0xd8] sm:$0xff]  ;;  %v7021_v56 = vld [vmem:[%s10948_s26 + $0xc0] sm:$0xff]  ;;  %v7023_v57 = vld [vmem:[%s10948_s26 + $0xd0] sm:$0xff] }
 0x285   : > { %7917 = vmatprep.subr.bf16.mxu0 %v7916_v8  ;;  %7975 = vmatpush3.bf16.msra.mxu1 %v10352_v3  ;;  %v7944_v54 = vpack.c.bf16 %v7024_v53, %v7022_v52  ;;  %v7026_v58 = vld [vmem:[%s10948_s26 + $0xe8] sm:$0xff]  ;;  %v7028_v59 = vld [vmem:[%s10948_s26 + $0xf8] sm:$0xff]  ;;  %v7946_v61 = vpack.c.bf16 %v7023_v57, %v7021_v56  ;;  %v7025_v63 = vld [vmem:[%s10948_s26 + $0xe0] sm:$0xff] }
 0x286   : > { %7425 = vmatprep.mubr.msk.f32.mxu1 %vm1322_vm0, %v2049_v31  ;;  %v7948_v62 = vpack.c.bf16 %v7028_v59, %v7026_v58  ;;  %v7027_v0 = vld [vmem:[%s10948_s26 + $0xf0] sm:$0xff]  ;;  %v7030_v1 = vld [vmem:[%s10948_s26 + $0x108] sm:$0xff]  ;;  %v7032_v2 = vld [vmem:[%s10948_s26 + $0x118] sm:$0xff] }
 0x287   : > { %7405 = vmatmul.mubr.msk.f32.vlgmr.msra.gmra.mrb[2].mxu0 %vm1322_vm0, %v1418_v13  ;;  %v7952_v4 = vpack.c.bf16 %v7032_v2, %v7030_v1  ;;  %v7029_v5 = vld [vmem:[%s10948_s26 + $0x100] sm:$0xff]  ;;  %v7031_v6 = vld [vmem:[%s10948_s26 + $0x110] sm:$0xff]  ;;  %v7038_v8 = vld [vmem:[%s10948_s26 + $0x128] sm:$0xff] }
 0x288   : > { %7919 = vmatpush1.bf16.msra.mxu0 %v7918_v14  ;;  %1584 = vmatprep.mubr.f32.mxu0 %v9736_v28  ;;  %v7954_v7 = vpack.c.bf16 %v7031_v6, %v7029_v5  ;;  %v7040_v9 = vld [vmem:[%s10948_s26 + $0x138] sm:$0xff]  ;;  %v7039_v16 = vld [vmem:[%s10948_s26 + $0x130] sm:$0xff]  ;;  %v7042_v17 = vld [vmem:[%s10948_s26 + $0x148] sm:$0xff] }
 0x289   : > { %7921 = vmatprep.subr.bf16.mxu0 %v7920_v15  ;;  %7426 = vmatmul.mubr.msk.f32.vlgmr.msra.gmra.mrb[2].mxu1 %vm1322_vm0, %v2050_v32  ;;  %v7960_v10 = vpack.c.bf16 %v7040_v9, %v7038_v8  ;;  %v7037_v15 = vld [vmem:[%s10948_s26 + $0x120] sm:$0xff]  ;;  %v7043_v23 = vld [vmem:[%s10948_s26 + $0x150] sm:$0xff]  ;;  %v7046_v25 = vld [vmem:[%s10948_s26 + $0x168] sm:$0xff] }
 0x28a   : > { %2333 = vmatprep.mubr.f32.mxu1 %v9736_v28  ;;  %v7962_v19 = vpack.c.bf16 %v7039_v16, %v7037_v15  ;;  %v7041_v22 = vld [vmem:[%s10948_s26 + $0x140] sm:$0xff]  ;;  %v7048_v26 = vld [vmem:[%s10948_s26 + $0x178] sm:$0xff]  ;;  %v7047_v31 = vld [vmem:[%s10948_s26 + $0x170] sm:$0xff] }
 0x28b   : > { %v7968_v29 = vpack.c.bf16 %v7048_v26, %v7046_v25  ;;  %v7045_v30 = vld [vmem:[%s10948_s26 + $0x160] sm:$0xff]  ;;  %v7054_v32 = vld [vmem:[%s10948_s26 + $0x188] sm:$0xff]  ;;  %v7055_v37 = vld [vmem:[%s10948_s26 + $0x190] sm:$0xff] }
 0x28c   : > { %7923 = vmatpush1.bf16.msra.mxu0 %v7922_v18  ;;  %v7044_v18 = vld [vmem:[%s10948_s26 + $0x158] sm:$0xff]  ;;  %v7970_v34 = vpack.c.bf16 %v7047_v31, %v7045_v30  ;;  %v7058_v38 = vld [vmem:[%s10948_s26 + $0x1a8] sm:$0xff]  ;;  %v7057_v42 = vld [vmem:[%s10948_s26 + $0x1a0] sm:$0xff] }
 0x28d   : > { %7925 = vmatprep.subr.bf16.mxu0 %v7924_v21  ;;  %v7964_v21 = vpack.c.bf16 %v7044_v18, %v7042_v17  ;;  %v7059_v43 = vld [vmem:[%s10948_s26 + $0x1b0] sm:$0xff]  ;;  %v7064_v45 = vld [vmem:[%s10948_s26 + $0x1d8] sm:$0xff]  ;;  %v2662_v15 = vld [vmem:[#allocation5 + $0x10] sm:$0xff] }
 0x28e   : > { %v7982_v46 = vpack.c.bf16 %v7059_v43, %v7057_v42  ;;  %v7063_v49 = vld [vmem:[%s10948_s26 + $0x1d0] sm:$0xff]  ;;  %v2465_v17 = vld [vmem:[#allocation7 + $0x180] sm:$0xff]  ;;  %v2467_v18 = vld [vmem:[#allocation7 + $0x190] sm:$0xff] }
 0x28f   : > { %v2471_v25 = vld [vmem:[#allocation7 + $0x1b0] sm:$0xff]  ;;  %v2474_v26 = vld [vmem:[#allocation7 + $0x1c8] sm:$0xff]  ;;  %v2473_v31 = vld [vmem:[#allocation7 + $0x1c0] sm:$0xff] }
 0x290   : > { %7927 = vmatpush1.bf16.msra.mxu0 %v7926_v24  ;;  %v2481_v43 = vld [vmem:[#allocation7 + $0x200] sm:$0xff] }
 0x291   : > { %7929 = vmatprep.subr.bf16.mxu0 %v7928_v27  ;;  %v7966_v27 = vpack.c.bf16 %v7043_v23, %v7041_v22  ;;  %v7998_v22 = vpack.c.bf16 %v2467_v18, %v2465_v17  ;;  %v2505_v17 = vld [vmem:[#allocation7 + $0x2c0] sm:$0xff]  ;;  %v2507_v18 = vld [vmem:[#allocation7 + $0x2d0] sm:$0xff] }
 0x356   : > { %v7399_v33 = vpop.f32.mrb[0].mxu0  ;;  %v7420_v11 = vpop.f32.mrb[0].mxu1 }
 0x357   : > { %v1395_v36 = vpop.f32.mrb[1].mxu0  ;;  %v1939_v12 = vpop.f32.mrb[1].mxu1 }
 0x35a   : > { %v7406_v40 = vpop.f32.mrb[2].mxu0 }
 0x35b   : > { %v1491_v44 = vpop.f32.mrb[3].mxu0 }
 0x35c   : > { %7015 = vmatmul.mubr.msk.f32.vlgmr.msra.gmra.mrb[4].mxu0 %vm1513_vm1, %v1491_v44  ;;  %v7427_v13 = vpop.f32.mrb[2].mxu1  ;;  %v7062_v44 = vld [vmem:[%s10948_s26 + $0x1c8] sm:$0xff] }
 0x35d   : > { %7931 = vmatpush1.bf16.msra.mxu0 %v7930_v39  ;;  %1590 = vmatprep.mubr.f32.mxu0 %v9736_v28  ;;  %v2123_v14 = vpop.f32.mrb[3].mxu1  ;;  %v7060_v39 = vld [vmem:[%s10948_s26 + $0x1b8] sm:$0xff] }
 0x35e   : > { %7933 = vmatprep.subr.bf16.mxu0 %v7932_v41  ;;  %v7980_v41 = vpack.c.bf16 %v7060_v39, %v7058_v38  ;;  %v2479_v38 = vld [vmem:[#allocation7 + $0x1f0] sm:$0xff]  ;;  %v2482_v39 = vld [vmem:[#allocation7 + $0x208] sm:$0xff] }
 0x360   : > { %7016 = vmatmul.mubr.msk.f32.gmra.mrb[6].mxu0 %vm1513_vm1, %v7406_v40 }
 0x361   : > { %7935 = vmatpush1.bf16.msra.mxu0 %v7934_v47  ;;  %1667 = vmatprep.mubr.f32.mxu0 %v9736_v28  ;;  %v7984_v47 = vpack.c.bf16 %v7064_v45, %v7062_v44  ;;  %v2483_v44 = vld [vmem:[#allocation7 + $0x210] sm:$0xff]  ;;  %v2486_v45 = vld [vmem:[#allocation7 + $0x228] sm:$0xff] }
 0x362   : > { %7937 = vmatprep.subr.bf16.mxu0 %v7936_v48  ;;  %v7061_v48 = vld [vmem:[%s10948_s26 + $0x1c0] sm:$0xff] }
 0x363   : > { %v7986_v50 = vpack.c.bf16 %v7063_v49, %v7061_v48  ;;  %v2485_v49 = vld [vmem:[#allocation7 + $0x220] sm:$0xff] }
 0x365   : > { %7939 = vmatpush1.bf16.msra.mxu0 %v7938_v51  ;;  %v2234_v51 = vlaneseq }
 0x366   : > { %7941 = vmatprep.subr.bf16.mxu0 %v10352_v3 }
 0x367   : > { %v2235_v52 = vshrl.u32 %v2234_v51, 7  ;;  %v2490_v51 = vld [vmem:[#allocation7 + $0x248] sm:$0xff] }
 0x368   : > { %7017 = vmatmul.mubr.msk.f32.vlgmr.msra.gmra.mrb[4].mxu0 %vm1513_vm1, %v1395_v36  ;;  %v7053_v36 = vld [vmem:[%s10948_s26 + $0x180] sm:$0xff] }
 0x369   : > { %1673 = vmatprep.mubr.f32.mxu0 %v9736_v28  ;;  %7943 = vmatpush3.bf16.msra.mxu0 %v10352_v3  ;;  %v7950_v3 = vpack.c.bf16 %v7027_v0, %v7025_v63  ;;  %v7978_v40 = vpack.c.bf16 %v7055_v37, %v7053_v36  ;;  %v10456_v53 = vsub.s32 0, %v2235_v52  ;;  %v2477_v37 = vld [vmem:[#allocation7 + $0x1e0] sm:$0xff] }
 0x36a   : > { %7945 = vmatprep.subr.bf16.mxu0 %v7944_v54  ;;  %v2232_v54 = vld [vmem:[%s10949_s9] sm:$0x3]  ;;  %s1313_s9 = scalar_lea.vmem %s9898_s24, %s6997_s28 }
 0x36b   : > { %v2237_v56 = vrot.slane %v2232_v54, %v10456_v53 }
 0x36c   : > { %7018 = vmatmul.mubr.msk.f32.gmra.mrb[6].mxu0 %vm1513_vm1, %v7399_v33  ;;  %v7056_v33 = vld [vmem:[%s10948_s26 + $0x198] sm:$0xff] }
 0x36d   : > { %7411 = vmatprep.mubr.msk.f32.mxu0 %vm1322_vm0, %v1681_v55  ;;  %v7976_v35 = vpack.c.bf16 %v7056_v33, %v7054_v32  ;;  %v10459_v55 = vsub.s32 1, %v2235_v52  ;;  %v2475_v32 = vld [vmem:[#allocation7 + $0x1d0] sm:$0xff]  ;;  %v2478_v33 = vld [vmem:[#allocation7 + $0x1e8] sm:$0xff]  ;;  %v2492_v52 = vld [vmem:[#allocation7 + $0x258] sm:$0xff] }
 0x36f   : > { %v2241_v57 = vrot.slane %v2232_v54, %v10459_v55 }
 0x370   : > { %7412 = vmatmul.mubr.msk.f32.vlgmr.msra.gmra.mrb[8].mxu0 %vm1322_vm0, %v1682_v60 }
 0x371   : > { %7947 = vmatpush1.bf16.msra.mxu0 %v7946_v61  ;;  %1847 = vmatprep.mubr.f32.mxu0 %v9736_v28 }
 0x372   : > { %7949 = vmatprep.subr.bf16.mxu0 %v7948_v62 }
 0x375   : > { %7951 = vmatpush1.bf16.msra.mxu0 %v7950_v3 }
 0x376   : > { %7953 = vmatprep.subr.bf16.mxu0 %v7952_v4 }
 0x379   : > { %7955 = vmatpush1.bf16.msra.mxu0 %v7954_v7 }
 0x37a   : > { %7961 = vmatprep.subr.bf16.mxu0 %v7960_v10 }
 0x443   : > { %v7413_v20 = vpop.f32.mrb[8].mxu0 }
 0x444   : > { %v1755_v24 = vpop.f32.mrb[9].mxu0 }
 0x445   : > { %7033 = vmatmul.mubr.msk.f32.vlgmr.msra.gmra.mrb[4].mxu0 %vm1513_vm1, %v1755_v24  ;;  %v2469_v24 = vld [vmem:[#allocation7 + $0x1a0] sm:$0xff] }
 0x446   : > { %7963 = vmatpush1.bf16.msra.mxu0 %v7962_v19  ;;  %1853 = vmatprep.mubr.f32.mxu0 %v9736_v28  ;;  %v2470_v19 = vld [vmem:[#allocation7 + $0x1a8] sm:$0xff] }
 0x447   : > { %7965 = vmatprep.subr.bf16.mxu0 %v7964_v21  ;;  %v2389_v21 = vld [vmem:[#allocation5 + $0x8] sm:$0xff] }
 0x449   : > { %7034 = vmatmul.mubr.msk.f32.gmra.mrb[6].mxu0 %vm1513_vm1, %v7413_v20  ;;  %v2472_v20 = vld [vmem:[#allocation7 + $0x1b8] sm:$0xff] }
 0x44a   : > { %7967 = vmatpush1.bf16.msra.mxu0 %v7966_v27  ;;  %2031 = vmatprep.mubr.f32.mxu0 %v9736_v28  ;;  %v8000_v23 = vpack.c.bf16 %v2472_v20, %v2470_v19  ;;  %v2476_v27 = vld [vmem:[#allocation7 + $0x1d8] sm:$0xff]  ;;  %v8038_v19 = vpack.c.bf16 %v2507_v18, %v2505_v17  ;;  %v2510_v20 = vld [vmem:[#allocation7 + $0x2e8] sm:$0xff]  ;;  %v2370_v17 = vld [vmem:[#allocation7 + $0xf0] sm:$0xff] }
 0x44b   : > { %7969 = vmatprep.subr.bf16.mxu0 %v7968_v29  ;;  %v8002_v29 = vpack.c.bf16 %v2471_v25, %v2469_v24  ;;  %v8004_v30 = vpack.c.bf16 %v2476_v27, %v2474_v26  ;;  %v2511_v24 = vld [vmem:[#allocation7 + $0x2f0] sm:$0xff]  ;;  %v2341_v26 = vld [vmem:[#allocation7 + $0x8] sm:$0xff]  ;;  %v2343_v27 = vld [vmem:[#allocation7 + $0x18] sm:$0xff] }
 0x44c   : > { %v2373_v18 = vld [vmem:[#allocation7 + $0x108] sm:$0xff] }
 0x44e   : > { %7971 = vmatpush1.bf16.msra.mxu0 %v7970_v34  ;;  %v2480_v34 = vld [vmem:[#allocation7 + $0x1f8] sm:$0xff] }
 0x44f   : > { %7977 = vmatprep.subr.bf16.mxu0 %v7976_v35  ;;  %v8006_v35 = vpack.c.bf16 %v2475_v32, %v2473_v31  ;;  %v8008_v36 = vpack.c.bf16 %v2480_v34, %v2478_v33  ;;  %v2340_v33 = vld [vmem:[#allocation7] sm:$0xff]  ;;  %v2342_v34 = vld [vmem:[#allocation7 + $0x10] sm:$0xff] }
 0x451   : > { %7049 = vmatmul.mubr.msk.f32.vlgmr.msra.gmra.mrb[4].mxu0 %vm1513_vm1, %v1939_v12  ;;  %v2466_v12 = vld [vmem:[#allocation7 + $0x188] sm:$0xff] }
 0x452   : > { %7979 = vmatpush1.bf16.msra.mxu0 %v7978_v40  ;;  %2037 = vmatprep.mubr.f32.mxu0 %v9736_v28  ;;  %v2484_v40 = vld [vmem:[#allocation7 + $0x218] sm:$0xff] }
 0x453   : > { %7981 = vmatprep.subr.bf16.mxu0 %v7980_v41  ;;  %v8010_v41 = vpack.c.bf16 %v2479_v38, %v2477_v37  ;;  %v8012_v42 = vpack.c.bf16 %v2484_v40, %v2482_v39  ;;  %v2347_v37 = vld [vmem:[#allocation7 + $0x38] sm:$0xff]  ;;  %v8046_v39 = vpack.c.bf16 %v2342_v34, %v2340_v33  ;;  %v2381_v33 = vld [vmem:[#allocation7 + $0x148] sm:$0xff] }
 0x454   : > { %v2383_v34 = vld [vmem:[#allocation7 + $0x158] sm:$0xff] }
 0x455   : > { %7050 = vmatmul.mubr.msk.f32.gmra.mrb[6].mxu0 %vm1513_vm1, %v7420_v11 }
 0x456   : > { %7983 = vmatpush1.bf16.msra.mxu0 %v7982_v46  ;;  %2215 = vmatprep.mubr.f32.mxu0 %v9736_v28  ;;  %v2488_v46 = vld [vmem:[#allocation7 + $0x238] sm:$0xff] }
 0x457   : > { %7985 = vmatprep.subr.bf16.mxu0 %v7984_v47  ;;  %v8014_v47 = vpack.c.bf16 %v2483_v44, %v2481_v43  ;;  %v8016_v48 = vpack.c.bf16 %v2488_v46, %v2486_v45  ;;  %v2346_v43 = vld [vmem:[#allocation7 + $0x30] sm:$0xff]  ;;  %v2349_v44 = vld [vmem:[#allocation7 + $0x48] sm:$0xff]  ;;  %v2351_v45 = vld [vmem:[#allocation7 + $0x58] sm:$0xff] }
 0x45a   : > { %7987 = vmatpush1.bf16.msra.mxu0 %v7986_v50  ;;  %v2487_v50 = vld [vmem:[#allocation7 + $0x230] sm:$0xff] }
 0x45b   : > { %v8018_v54 = vpack.c.bf16 %v2487_v50, %v2485_v49  ;;  %v2350_v49 = vld [vmem:[#allocation7 + $0x50] sm:$0xff]  ;;  %v2353_v50 = vld [vmem:[#allocation7 + $0x68] sm:$0xff] }
 0x45d   : > { %7065 = vmatmul.mubr.msk.f32.vlgmr.msra.gmra.mrb[4].mxu0 %vm1513_vm1, %v2123_v14  ;;  %v2265_v14 = vld [vmem:[#allocation5] sm:$0xff] }
 0x45e   : > { %2221 = vmatprep.mubr.f32.mxu0 %v9736_v28 }
 0x461   : > { %7066 = vmatmul.mubr.msk.f32.gmra.mrb[6].mxu0 %vm1513_vm1, %v7427_v13  ;;  %v2468_v13 = vld [vmem:[#allocation7 + $0x198] sm:$0xff] }
 0x462   : > { %2730 = vmatprep.mubr.f32.mxu0 %v9736_v28  ;;  %v7996_v16 = vpack.c.bf16 %v2468_v13, %v2466_v12  ;;  %v2503_v12 = vld [vmem:[#allocation7 + $0x2b0] sm:$0xff]  ;;  %v2506_v13 = vld [vmem:[#allocation7 + $0x2c8] sm:$0xff] }
 0x530   : > { %v2217_v58 = vpop.f32.mrb[4].mxu0 }
 0x531   : > { %v2244_v59 = vadd.f32 %v2237_v56, %v2217_v58  ;;  %v2219_v60 = vpop.f32.mrb[5].mxu0  ;;  %v2491_v58 = vld [vmem:[#allocation7 + $0x250] sm:$0xff] }
 0x532   : > { %v2245_v61 = vadd.f32 %v2241_v57, %v2219_v60  ;;  %v2496_v60 = vld [vmem:[#allocation7 + $0x278] sm:$0xff] }
 0x533   : > { %vm2248_vm2 = vcmp.gt.f32.partialorder %v2244_v59, 0.0  ;;  %v2252_v62 = vmul.f32 0.2, %v2244_v59 }
 0x534   : > { %vm2249_vm3 = vcmp.gt.f32.partialorder %v2245_v61, 0.0  ;;  %v2253_v63 = vmul.f32 0.2, %v2245_v61  ;;  %v2223_v0 = vpop.f32.mrb[6].mxu0 }
 0x535   : > { %v2256_v1 = vsel %vm2248_vm2, %v2244_v59, %v2252_v62  ;;  %v2246_v2 = vadd.f32 %v2237_v56, %v2223_v0  ;;  %v2225_v3 = vpop.f32.mrb[7].mxu0  ;;  %v8020_v56 = vpack.c.bf16 %v2492_v52, %v2490_v51  ;;  %v2494_v59 = vld [vmem:[#allocation7 + $0x268] sm:$0xff]  ;;  %v2495_v0 = vld [vmem:[#allocation7 + $0x270] sm:$0xff]  ;;  %v2355_v51 = vld [vmem:[#allocation7 + $0x78] sm:$0xff]  ;;  %vm4533_vm2 = vcmask 781312  }
 0x536   : > { %2260 = vst [vmem:[%s1304_s10] sm:$0xff] %v2256_v1  ;;  %v2247_v4 = vadd.f32 %v2241_v57, %v2225_v3  ;;  %v2257_v5 = vsel %vm2249_vm3, %v2245_v61, %v2253_v63  ;;  %v2489_v57 = vld [vmem:[#allocation7 + $0x240] sm:$0xff]  ;;  %v8024_v62 = vpack.c.bf16 %v2496_v60, %v2494_v59  ;;  %v2359_v59 = vld [vmem:[#allocation7 + $0x98] sm:$0xff] }
 0x537   : > { %vm2250_vm5 = vcmp.gt.f32.partialorder %v2246_v2, 0.0  ;;  %v2254_v6 = vmul.f32 0.2, %v2246_v2  ;;  %2262 = vst.msk [vmem:[%s1304_s10 + $0x8] sm:$0xff] %vm2261_vm4, %v2257_v5  ;;  %v8022_v61 = vpack.c.bf16 %v2491_v58, %v2489_v57  ;;  %v2493_v63 = vld [vmem:[#allocation7 + $0x260] sm:$0xff]  ;;  %v2354_v57 = vld [vmem:[#allocation7 + $0x70] sm:$0xff] }
 0x538   : > { %vm2251_vm6 = vcmp.gt.f32.partialorder %v2247_v4, 0.0  ;;  %v2255_v7 = vmul.f32 0.2, %v2247_v4  ;;  %v8026_v3 = vpack.c.bf16 %v2495_v0, %v2493_v63  ;;  %v2357_v58 = vld [vmem:[#allocation7 + $0x88] sm:$0xff]  ;;  %v2358_v63 = vld [vmem:[#allocation7 + $0x90] sm:$0xff] }
 0x539   : > { %v2258_v8 = vsel %vm2250_vm5, %v2246_v2, %v2254_v6  ;;  %v2500_v2 = vld [vmem:[#allocation7 + $0x298] sm:$0xff]  ;;  %v2499_v6 = vld [vmem:[#allocation7 + $0x290] sm:$0xff]  ;;  %v2361_v0 = vld [vmem:[#allocation7 + $0xa8] sm:$0xff]  ;;  %vm5032_vm5 = vcmask 15360  }
 0x53a   : > { %2263 = vst [vmem:[%s1304_s10 + $0x10] sm:$0xff] %v2258_v8  ;;  %v7990_v9 = vpack.c.bf16 %v2258_v8, %v2256_v1  ;;  %v2259_v10 = vsel %vm2251_vm6, %v2247_v4, %v2255_v7  ;;  %v2498_v1 = vld [vmem:[#allocation7 + $0x288] sm:$0xff]  ;;  %v2504_v8 = vld [vmem:[#allocation7 + $0x2b8] sm:$0xff] }
 0x53b   : > { %2264 = vst.msk [vmem:[%s1304_s10 + $0x18] sm:$0xff] %vm2261_vm4, %v2259_v10  ;;  %v7988_v11 = vpack.c.bf16 %v2259_v10, %v2257_v5  ;;  %v8028_v4 = vpack.c.bf16 %v2500_v2, %v2498_v1  ;;  %v2497_v5 = vld [vmem:[#allocation7 + $0x280] sm:$0xff]  ;;  %v2502_v7 = vld [vmem:[#allocation7 + $0x2a8] sm:$0xff]  ;;  %v2363_v1 = vld [vmem:[#allocation7 + $0xb8] sm:$0xff]  ;;  %s10956_s10 = sld [smem:[#allocation64_spill]] }
 0x53c   : > { %v8032_v10 = vpack.c.bf16 %v2504_v8, %v2502_v7  ;;  %v2367_v7 = vld [vmem:[#allocation7 + $0xd8] sm:$0xff] }
 0x53d   : > { %7989 = vmatprep.subr.bf16.mxu1 %v7988_v11  ;;  %8093 = vmatprep.subr.bf16.mxu0 %v7988_v11 }
 0x53e   : > { %7991 = vmatpush1.bf16.msra.mxu1 %v7990_v9  ;;  %8095 = vmatpush1.bf16.msra.mxu0 %v7990_v9 }
 0x53f   : > { %7993 = vmatprep.subr.bf16.mxu1 %v7988_v11  ;;  %v2501_v11 = vld [vmem:[#allocation7 + $0x2a0] sm:$0xff] }
 0x541   : > { %7067 = vmatmul.mubr.msk.f32.vlgmr.msra.gmra.mrb[4].mxu1 %vm1322_vm0, %v2265_v14  ;;  %7071 = vmatmul.mubr.msk.f32.vlgmr.msra.gmra.mrb[10].mxu0 %vm1322_vm0, %v2662_v15  ;;  %v2508_v14 = vld [vmem:[#allocation7 + $0x2d8] sm:$0xff]  ;;  %v8034_v15 = vpack.c.bf16 %v2503_v12, %v2501_v11  ;;  %v2366_v11 = vld [vmem:[#allocation7 + $0xd0] sm:$0xff]  ;;  %v2369_v12 = vld [vmem:[#allocation7 + $0xe8] sm:$0xff] }
 0x542   : > { %7995 = vmatpush1.bf16.msra.mxu1 %v7990_v9  ;;  %2457 = vmatprep.mubr.f32.mxu1 %v9736_v28  ;;  %v8030_v9 = vpack.c.bf16 %v2499_v6, %v2497_v5  ;;  %v2362_v5 = vld [vmem:[#allocation7 + $0xb0] sm:$0xff]  ;;  %v2365_v6 = vld [vmem:[#allocation7 + $0xc8] sm:$0xff] }
 0x543   : > { %7997 = vmatprep.subr.bf16.mxu1 %v7996_v16  ;;  %2951 = vmatprep.mubr.f32.mxu0 %v9736_v28  ;;  %v8036_v16 = vpack.c.bf16 %v2508_v14, %v2506_v13  ;;  %v2371_v13 = vld [vmem:[#allocation7 + $0xf8] sm:$0xff] }
 0x545   : > { %7068 = vmatmul.mubr.msk.f32.vlgmr.msra.gmra.mrb[6].mxu1 %vm1322_vm0, %v2389_v21  ;;  %v2512_v21 = vld [vmem:[#allocation7 + $0x2f8] sm:$0xff]  ;;  %vm4213_vm0 = vcmask 785408  }
 0x546   : > { %7999 = vmatpush1.bf16.msra.mxu1 %v7998_v22  ;;  %v8040_v22 = vpack.c.bf16 %v2512_v21, %v2510_v20 }
 0x547   : > { %8001 = vmatprep.subr.bf16.mxu1 %v8000_v23  ;;  %v2509_v23 = vld [vmem:[#allocation7 + $0x2e0] sm:$0xff] }
 0x548   : > { %v8042_v25 = vpack.c.bf16 %v2511_v24, %v2509_v23  ;;  %v2374_v23 = vld [vmem:[#allocation7 + $0x110] sm:$0xff]  ;;  %v2377_v24 = vld [vmem:[#allocation7 + $0x128] sm:$0xff] }
 0x54a   : > { %8003 = vmatpush1.bf16.msra.mxu1 %v8002_v29  ;;  %v8044_v29 = vpack.c.bf16 %v2343_v27, %v2341_v26 }
 0x54b   : > { %8005 = vmatprep.subr.bf16.mxu1 %v8004_v30 }
 0x54e   : > { %8007 = vmatpush1.bf16.msra.mxu1 %v8006_v35 }
 0x54f   : > { %8009 = vmatprep.subr.bf16.mxu1 %v8008_v36  ;;  %v2345_v36 = vld [vmem:[#allocation7 + $0x28] sm:$0xff] }
 0x552   : > { %8011 = vmatpush1.bf16.msra.mxu1 %v8010_v41  ;;  %v8048_v41 = vpack.c.bf16 %v2347_v37, %v2345_v36  ;;  %v8084_v37 = vpack.c.bf16 %v2383_v34, %v2381_v33  ;;  %v2771_v33 = vld [vmem:[#allocation7 + $0x408] sm:$0xff]  ;;  %v2773_v34 = vld [vmem:[#allocation7 + $0x418] sm:$0xff] }
 0x553   : > { %8013 = vmatprep.subr.bf16.mxu1 %v8012_v42  ;;  %v2344_v42 = vld [vmem:[#allocation7 + $0x20] sm:$0xff] }
 0x554   : > { %v8050_v46 = vpack.c.bf16 %v2346_v43, %v2344_v42 }
 0x556   : > { %8015 = vmatpush1.bf16.msra.mxu1 %v8014_v47  ;;  %v8052_v47 = vpack.c.bf16 %v2351_v45, %v2349_v44  ;;  %v2384_v44 = vld [vmem:[#allocation7 + $0x160] sm:$0xff]  ;;  %v2386_v45 = vld [vmem:[#allocation7 + $0x170] sm:$0xff] }
 0x557   : > { %8017 = vmatprep.subr.bf16.mxu1 %v8016_v48  ;;  %v2348_v48 = vld [vmem:[#allocation7 + $0x40] sm:$0xff] }
 0x558   : > { %v8054_v52 = vpack.c.bf16 %v2350_v49, %v2348_v48  ;;  %v8090_v48 = vpack.c.bf16 %v2386_v45, %v2384_v44  ;;  %v2774_v44 = vld [vmem:[#allocation7 + $0x420] sm:$0xff]  ;;  %v2776_v45 = vld [vmem:[#allocation7 + $0x430] sm:$0xff] }
 0x55a   : > { %8019 = vmatpush1.bf16.msra.mxu1 %v8018_v54  ;;  %v8056_v54 = vpack.c.bf16 %v2355_v51, %v2353_v50  ;;  %v2738_v50 = vld [vmem:[#allocation7 + $0x300] sm:$0xff]  ;;  %v2740_v51 = vld [vmem:[#allocation7 + $0x310] sm:$0xff] }
 0x55b   : > { %8021 = vmatprep.subr.bf16.mxu1 %v8020_v56  ;;  %v2352_v56 = vld [vmem:[#allocation7 + $0x60] sm:$0xff] }
 0x55c   : > { %v8058_v60 = vpack.c.bf16 %v2354_v57, %v2352_v56  ;;  %v8098_v56 = vpack.c.bf16 %v2740_v51, %v2738_v50  ;;  %v2778_v50 = vld [vmem:[#allocation7 + $0x440] sm:$0xff]  ;;  %v2780_v51 = vld [vmem:[#allocation7 + $0x450] sm:$0xff] }
 0x55e   : > { %8023 = vmatpush1.bf16.msra.mxu1 %v8022_v61  ;;  %v8060_v61 = vpack.c.bf16 %v2359_v59, %v2357_v58  ;;  %v2742_v58 = vld [vmem:[#allocation7 + $0x320] sm:$0xff]  ;;  %v2744_v59 = vld [vmem:[#allocation7 + $0x330] sm:$0xff] }
 0x55f   : > { %8025 = vmatprep.subr.bf16.mxu1 %v8024_v62  ;;  %v2356_v62 = vld [vmem:[#allocation7 + $0x80] sm:$0xff] }
 0x560   : > { %v8062_v2 = vpack.c.bf16 %v2358_v63, %v2356_v62  ;;  %v8102_v62 = vpack.c.bf16 %v2744_v59, %v2742_v58  ;;  %v2782_v58 = vld [vmem:[#allocation7 + $0x460] sm:$0xff]  ;;  %v2784_v59 = vld [vmem:[#allocation7 + $0x470] sm:$0xff] }
 0x562   : > { %8027 = vmatpush1.bf16.msra.mxu1 %v8026_v3  ;;  %v8064_v3 = vpack.c.bf16 %v2363_v1, %v2361_v0  ;;  %v2746_v0 = vld [vmem:[#allocation7 + $0x340] sm:$0xff]  ;;  %v2748_v1 = vld [vmem:[#allocation7 + $0x350] sm:$0xff] }
 0x563   : > { %8029 = vmatprep.subr.bf16.mxu1 %v8028_v4  ;;  %v2360_v4 = vld [vmem:[#allocation7 + $0xa0] sm:$0xff] }
 0x564   : > { %v8066_v8 = vpack.c.bf16 %v2362_v5, %v2360_v4  ;;  %v8106_v4 = vpack.c.bf16 %v2748_v1, %v2746_v0 }
 0x566   : > { %8031 = vmatpush1.bf16.msra.mxu1 %v8030_v9  ;;  %v8068_v9 = vpack.c.bf16 %v2367_v7, %v2365_v6  ;;  %v2750_v6 = vld [vmem:[#allocation7 + $0x360] sm:$0xff]  ;;  %v2752_v7 = vld [vmem:[#allocation7 + $0x370] sm:$0xff] }
 0x567   : > { %8033 = vmatprep.subr.bf16.mxu1 %v8032_v10  ;;  %v2364_v10 = vld [vmem:[#allocation7 + $0xc0] sm:$0xff] }
 0x568   : > { %v8070_v14 = vpack.c.bf16 %v2366_v11, %v2364_v10  ;;  %v2754_v11 = vld [vmem:[#allocation7 + $0x380] sm:$0xff] }
 0x56a   : > { %8035 = vmatpush1.bf16.msra.mxu1 %v8034_v15  ;;  %v8072_v15 = vpack.c.bf16 %v2371_v13, %v2369_v12  ;;  %v2759_v12 = vld [vmem:[#allocation7 + $0x3a8] sm:$0xff]  ;;  %v2761_v13 = vld [vmem:[#allocation7 + $0x3b8] sm:$0xff] }
 0x56b   : > { %8037 = vmatprep.subr.bf16.mxu1 %v8036_v16  ;;  %v2368_v16 = vld [vmem:[#allocation7 + $0xe0] sm:$0xff] }
 0x56c   : > { %v8074_v20 = vpack.c.bf16 %v2370_v17, %v2368_v16  ;;  %v2758_v16 = vld [vmem:[#allocation7 + $0x3a0] sm:$0xff]  ;;  %v2760_v17 = vld [vmem:[#allocation7 + $0x3b0] sm:$0xff] }
 0x56e   : > { %8039 = vmatpush1.bf16.msra.mxu1 %v8038_v19  ;;  %v2375_v19 = vld [vmem:[#allocation7 + $0x118] sm:$0xff] }
 0x56f   : > { %8041 = vmatprep.subr.bf16.mxu1 %v8040_v22  ;;  %v8076_v21 = vpack.c.bf16 %v2375_v19, %v2373_v18  ;;  %v2372_v22 = vld [vmem:[#allocation7 + $0x100] sm:$0xff]  ;;  %v2763_v18 = vld [vmem:[#allocation7 + $0x3c8] sm:$0xff]  ;;  %v2765_v19 = vld [vmem:[#allocation7 + $0x3d8] sm:$0xff] }
 0x570   : > { %v8078_v26 = vpack.c.bf16 %v2374_v23, %v2372_v22  ;;  %v2762_v22 = vld [vmem:[#allocation7 + $0x3c0] sm:$0xff]  ;;  %v2764_v23 = vld [vmem:[#allocation7 + $0x3d0] sm:$0xff] }
 0x572   : > { %8043 = vmatpush1.bf16.msra.mxu1 %v8042_v25  ;;  %v2379_v25 = vld [vmem:[#allocation7 + $0x138] sm:$0xff] }
 0x573   : > { %8045 = vmatprep.subr.bf16.mxu1 %v8044_v29  ;;  %v8080_v27 = vpack.c.bf16 %v2379_v25, %v2377_v24  ;;  %v2376_v29 = vld [vmem:[#allocation7 + $0x120] sm:$0xff]  ;;  %v2767_v24 = vld [vmem:[#allocation7 + $0x3e8] sm:$0xff]  ;;  %v2769_v25 = vld [vmem:[#allocation7 + $0x3f8] sm:$0xff] }
 0x614   : > { %v10472_v30 = vpop.f32.mrb[4].mxu1  ;;  %v10474_v31 = vpop.f32.mrb[10].mxu0 }
 0x615   : > { %v2337_v32 = vpop.f32.mrb[5].mxu1  ;;  %v10476_v35 = vpop.f32.mrb[11].mxu0 }
 0x618   : > { %v2459_v38 = vpop.f32.mrb[6].mxu1 }
 0x619   : > { %v2461_v40 = vpop.f32.mrb[7].mxu1 }
 0x61a   : > { %7069 = vmatprep.mubr.msk.f32.mxu1 %vm2261_vm4, %v2461_v40  ;;  %v2385_v40 = vld [vmem:[#allocation7 + $0x168] sm:$0xff] }
 0x61b   : > { %2581 = vmatmul.mubr.f32.vlgmr.msra.gmra.mrb[8].mxu1 %v2459_v38  ;;  %v2380_v38 = vld [vmem:[#allocation7 + $0x140] sm:$0xff] }
 0x61c   : > { %8047 = vmatpush1.bf16.msra.mxu1 %v8046_v39  ;;  %7070 = vmatprep.mubr.msk.f32.mxu1 %vm2261_vm4, %v2337_v32  ;;  %v2378_v32 = vld [vmem:[#allocation7 + $0x130] sm:$0xff] }
 0x61d   : > { %8049 = vmatprep.subr.bf16.mxu1 %v8048_v41  ;;  %v8082_v36 = vpack.c.bf16 %v2378_v32, %v2376_v29  ;;  %v2382_v39 = vld [vmem:[#allocation7 + $0x150] sm:$0xff]  ;;  %v2387_v41 = vld [vmem:[#allocation7 + $0x178] sm:$0xff]  ;;  %v2766_v29 = vld [vmem:[#allocation7 + $0x3e0] sm:$0xff] }
 0x61e   : > { %v8086_v42 = vpack.c.bf16 %v2382_v39, %v2380_v38  ;;  %v8088_v43 = vpack.c.bf16 %v2387_v41, %v2385_v40  ;;  %v2768_v32 = vld [vmem:[#allocation7 + $0x3f0] sm:$0xff]  ;;  %v2770_v38 = vld [vmem:[#allocation7 + $0x400] sm:$0xff]  ;;  %v2775_v40 = vld [vmem:[#allocation7 + $0x428] sm:$0xff] }
 0x61f   : > { %v2772_v39 = vld [vmem:[#allocation7 + $0x410] sm:$0xff]  ;;  %v2777_v41 = vld [vmem:[#allocation7 + $0x438] sm:$0xff] }
 0x620   : > { %8051 = vmatpush1.bf16.msra.mxu1 %v8050_v46  ;;  %v2739_v46 = vld [vmem:[#allocation7 + $0x308] sm:$0xff] }
 0x621   : > { %8053 = vmatprep.subr.bf16.mxu1 %v8052_v47  ;;  %v2741_v47 = vld [vmem:[#allocation7 + $0x318] sm:$0xff] }
 0x622   : > { %v8096_v49 = vpack.c.bf16 %v2741_v47, %v2739_v46  ;;  %v2779_v46 = vld [vmem:[#allocation7 + $0x448] sm:$0xff]  ;;  %v2781_v47 = vld [vmem:[#allocation7 + $0x458] sm:$0xff] }
 0x624   : > { %8055 = vmatpush1.bf16.msra.mxu1 %v8054_v52  ;;  %v2743_v52 = vld [vmem:[#allocation7 + $0x328] sm:$0xff] }
 0x625   : > { %8057 = vmatprep.subr.bf16.mxu1 %v8056_v54  ;;  %v2745_v54 = vld [vmem:[#allocation7 + $0x338] sm:$0xff] }
 0x626   : > { %v8100_v57 = vpack.c.bf16 %v2745_v54, %v2743_v52  ;;  %v2783_v52 = vld [vmem:[#allocation7 + $0x468] sm:$0xff]  ;;  %v2785_v54 = vld [vmem:[#allocation7 + $0x478] sm:$0xff] }
 0x628   : > { %8059 = vmatpush1.bf16.msra.mxu1 %v8058_v60  ;;  %v2747_v60 = vld [vmem:[#allocation7 + $0x348] sm:$0xff] }
 0x629   : > { %8061 = vmatprep.subr.bf16.mxu1 %v8060_v61  ;;  %v2749_v61 = vld [vmem:[#allocation7 + $0x358] sm:$0xff] }
 0x62a   : > { %v8104_v63 = vpack.c.bf16 %v2749_v61, %v2747_v60  ;;  %v8142_v60 = vpack.c.bf16 %v2784_v59, %v2782_v58  ;;  %v2862_v61 = vld [vmem:[#allocation8] sm:$0x3] }
 0x62b   : > { %v3111_v59 = vld [vmem:[#allocation11 + $0x260] sm:$0xff] }
 0x62c   : > { %8063 = vmatpush1.bf16.msra.mxu1 %v8062_v2  ;;  %v2751_v2 = vld [vmem:[#allocation7 + $0x368] sm:$0xff] }
 0x62d   : > { %8065 = vmatprep.subr.bf16.mxu1 %v8064_v3  ;;  %v2753_v3 = vld [vmem:[#allocation7 + $0x378] sm:$0xff] }
 0x62e   : > { %v8108_v5 = vpack.c.bf16 %v2753_v3, %v2751_v2 }
 0x630   : > { %8067 = vmatpush1.bf16.msra.mxu1 %v8066_v8  ;;  %v2755_v8 = vld [vmem:[#allocation7 + $0x388] sm:$0xff] }
 0x631   : > { %8069 = vmatprep.subr.bf16.mxu1 %v8068_v9  ;;  %v2757_v9 = vld [vmem:[#allocation7 + $0x398] sm:$0xff] }
 0x632   : > { %v8112_v10 = vpack.c.bf16 %v2757_v9, %v2755_v8  ;;  %v2882_v9 = vld [vmem:[#allocation10] sm:$0xff] }
 0x634   : > { %8071 = vmatpush1.bf16.msra.mxu1 %v8070_v14 }
 0x635   : > { %8073 = vmatprep.subr.bf16.mxu1 %v8072_v15  ;;  %v8116_v15 = vpack.c.bf16 %v2761_v13, %v2759_v12  ;;  %v3088_v12 = vld [vmem:[#allocation11 + $0x1a8] sm:$0xff]  ;;  %v3090_v13 = vld [vmem:[#allocation11 + $0x1b8] sm:$0xff] }
 0x638   : > { %8075 = vmatpush1.bf16.msra.mxu1 %v8074_v20  ;;  %v8118_v20 = vpack.c.bf16 %v2760_v17, %v2758_v16  ;;  %v8148_v16 = vpack.c.bf16 %v3090_v13, %v3088_v12  ;;  %v3087_v17 = vld [vmem:[#allocation11 + $0x1a0] sm:$0xff]  ;;  %v3128_v13 = vld [vmem:[#allocation11 + $0x2e8] sm:$0xff] }
 0x639   : > { %8077 = vmatprep.subr.bf16.mxu1 %v8076_v21  ;;  %v8120_v21 = vpack.c.bf16 %v2765_v19, %v2763_v18  ;;  %v3089_v18 = vld [vmem:[#allocation11 + $0x1b0] sm:$0xff]  ;;  %v3092_v19 = vld [vmem:[#allocation11 + $0x1c8] sm:$0xff] }
 0x63c   : > { %8079 = vmatpush1.bf16.msra.mxu1 %v8078_v26  ;;  %v8122_v26 = vpack.c.bf16 %v2764_v23, %v2762_v22  ;;  %v3091_v23 = vld [vmem:[#allocation11 + $0x1c0] sm:$0xff] }
 0x63d   : > { %8081 = vmatprep.subr.bf16.mxu1 %v8080_v27  ;;  %v8124_v27 = vpack.c.bf16 %v2769_v25, %v2767_v24  ;;  %v3093_v24 = vld [vmem:[#allocation11 + $0x1d0] sm:$0xff]  ;;  %v3096_v25 = vld [vmem:[#allocation11 + $0x1e8] sm:$0xff] }
 0x640   : > { %8083 = vmatpush1.bf16.msra.mxu1 %v8082_v36  ;;  %v8126_v36 = vpack.c.bf16 %v2768_v32, %v2766_v29  ;;  %v3095_v32 = vld [vmem:[#allocation11 + $0x1e0] sm:$0xff] }
 0x641   : > { %8085 = vmatprep.subr.bf16.mxu1 %v8084_v37  ;;  %v8128_v37 = vpack.c.bf16 %v2773_v34, %v2771_v33  ;;  %v3097_v33 = vld [vmem:[#allocation11 + $0x1f0] sm:$0xff]  ;;  %v3100_v34 = vld [vmem:[#allocation11 + $0x208] sm:$0xff] }
 0x644   : > { %8087 = vmatpush1.bf16.msra.mxu1 %v8086_v42  ;;  %v8130_v42 = vpack.c.bf16 %v2772_v39, %v2770_v38  ;;  %v3099_v39 = vld [vmem:[#allocation11 + $0x200] sm:$0xff] }
 0x645   : > { %8089 = vmatprep.subr.bf16.mxu1 %v8088_v43  ;;  %v8132_v43 = vpack.c.bf16 %v2777_v41, %v2775_v40  ;;  %v3101_v40 = vld [vmem:[#allocation11 + $0x210] sm:$0xff]  ;;  %v3104_v41 = vld [vmem:[#allocation11 + $0x228] sm:$0xff] }
 0x648   : > { %8091 = vmatpush1.bf16.msra.mxu1 %v8090_v48  ;;  %v8134_v48 = vpack.c.bf16 %v2776_v45, %v2774_v44  ;;  %v3103_v45 = vld [vmem:[#allocation11 + $0x220] sm:$0xff] }
 0x649   : > { %8097 = vmatprep.subr.bf16.mxu1 %v8096_v49  ;;  %v8136_v49 = vpack.c.bf16 %v2781_v47, %v2779_v46  ;;  %v3105_v46 = vld [vmem:[#allocation11 + $0x230] sm:$0xff]  ;;  %v3108_v47 = vld [vmem:[#allocation11 + $0x248] sm:$0xff] }
 0x64b   : > { %2655 = vmatmul.mubr.f32.vlgmr.msra.gmra.mrb[8].mxu1 %v10472_v30  ;;  %v8110_v30 = vpack.c.bf16 %v2752_v7, %v2750_v6  ;;  %v3084_v6 = vld [vmem:[#allocation11 + $0x188] sm:$0xff]  ;;  %v3086_v7 = vld [vmem:[#allocation11 + $0x198] sm:$0xff] }
 0x64c   : > { %8099 = vmatpush1.bf16.msra.mxu1 %v8098_v56  ;;  %7072 = vmatprep.mubr.msk.f32.mxu1 %vm2261_vm4, %v10476_v35  ;;  %v2756_v35 = vld [vmem:[#allocation7 + $0x390] sm:$0xff]  ;;  %v8138_v56 = vpack.c.bf16 %v2780_v51, %v2778_v50  ;;  %v3107_v51 = vld [vmem:[#allocation11 + $0x240] sm:$0xff] }
 0x64d   : > { %8101 = vmatprep.subr.bf16.mxu1 %v8100_v57  ;;  %v8114_v14 = vpack.c.bf16 %v2756_v35, %v2754_v11  ;;  %v8140_v57 = vpack.c.bf16 %v2785_v54, %v2783_v52  ;;  %v3085_v11 = vld [vmem:[#allocation11 + $0x190] sm:$0xff]  ;;  %v3280_v35 = vld [vmem:[#allocation10 + $0x10] sm:$0xff]  ;;  %v3112_v54 = vld [vmem:[#allocation11 + $0x268] sm:$0xff] }
 0x64e   : > { %v3109_v52 = vld [vmem:[#allocation11 + $0x250] sm:$0xff] }
 0x650   : > { %8103 = vmatpush1.bf16.msra.mxu1 %v8102_v62  ;;  %v2867_v62 = vrot.slane %v2862_v61, %v10456_v53 }
 0x651   : > { %8105 = vmatprep.subr.bf16.mxu1 %v8104_v63  ;;  %v2871_v63 = vrot.slane %v2862_v61, %v10459_v55  ;;  %v3116_v61 = vld [vmem:[#allocation11 + $0x288] sm:$0xff] }
 0x654   : > { %8107 = vmatpush1.bf16.msra.mxu1 %v8106_v4 }
 0x655   : > { %8109 = vmatprep.subr.bf16.mxu1 %v8108_v5 }
 0x658   : > { %8111 = vmatpush1.bf16.msra.mxu1 %v8110_v30  ;;  %v8144_v30 = vpack.c.bf16 %v3086_v7, %v3084_v6  ;;  %v3119_v7 = vld [vmem:[#allocation11 + $0x2a0] sm:$0xff] }
 0x659   : > { %8113 = vmatprep.subr.bf16.mxu1 %v8112_v10  ;;  %v3083_v10 = vld [vmem:[#allocation11 + $0x180] sm:$0xff] }
 0x65c   : > { %8115 = vmatpush1.bf16.msra.mxu1 %v8114_v14  ;;  %v3007_v14 = vld [vmem:[#allocation10 + $0x8] sm:$0xff] }
 0x65d   : > { %8117 = vmatprep.subr.bf16.mxu1 %v8116_v15  ;;  %v8146_v15 = vpack.c.bf16 %v3085_v11, %v3083_v10  ;;  %v3123_v11 = vld [vmem:[#allocation11 + $0x2c0] sm:$0xff] }
 0x660   : > { %8119 = vmatpush1.bf16.msra.mxu1 %v8118_v20  ;;  %v3094_v20 = vld [vmem:[#allocation11 + $0x1d8] sm:$0xff] }
 0x661   : > { %8121 = vmatprep.subr.bf16.mxu1 %v8120_v21  ;;  %v8150_v21 = vpack.c.bf16 %v3089_v18, %v3087_v17  ;;  %v8152_v22 = vpack.c.bf16 %v3094_v20, %v3092_v19  ;;  %v3129_v17 = vld [vmem:[#allocation11 + $0x2f0] sm:$0xff]  ;;  %v2959_v19 = vld [vmem:[#allocation11 + $0x8] sm:$0xff]  ;;  %v2961_v20 = vld [vmem:[#allocation11 + $0x18] sm:$0xff] }
 0x664   : > { %8123 = vmatpush1.bf16.msra.mxu1 %v8122_v26  ;;  %v3098_v26 = vld [vmem:[#allocation11 + $0x1f8] sm:$0xff] }
 0x665   : > { %8125 = vmatprep.subr.bf16.mxu1 %v8124_v27  ;;  %v8154_v27 = vpack.c.bf16 %v3093_v24, %v3091_v23  ;;  %v8156_v29 = vpack.c.bf16 %v3098_v26, %v3096_v25  ;;  %v2958_v24 = vld [vmem:[#allocation11] sm:$0xff]  ;;  %v2960_v25 = vld [vmem:[#allocation11 + $0x10] sm:$0xff]  ;;  %v2963_v26 = vld [vmem:[#allocation11 + $0x28] sm:$0xff] }
 0x668   : > { %8127 = vmatpush1.bf16.msra.mxu1 %v8126_v36  ;;  %v3102_v36 = vld [vmem:[#allocation11 + $0x218] sm:$0xff] }
 0x669   : > { %8129 = vmatprep.subr.bf16.mxu1 %v8128_v37  ;;  %v8158_v37 = vpack.c.bf16 %v3097_v33, %v3095_v32  ;;  %v8160_v38 = vpack.c.bf16 %v3102_v36, %v3100_v34  ;;  %v8194_v34 = vpack.c.bf16 %v2960_v25, %v2958_v24  ;;  %v2999_v24 = vld [vmem:[#allocation11 + $0x148] sm:$0xff]  ;;  %v3001_v25 = vld [vmem:[#allocation11 + $0x158] sm:$0xff] }
 0x66c   : > { %8131 = vmatpush1.bf16.msra.mxu1 %v8130_v42  ;;  %v3106_v42 = vld [vmem:[#allocation11 + $0x238] sm:$0xff] }
 0x66d   : > { %8133 = vmatprep.subr.bf16.mxu1 %v8132_v43  ;;  %v8162_v43 = vpack.c.bf16 %v3101_v40, %v3099_v39  ;;  %v8164_v44 = vpack.c.bf16 %v3106_v42, %v3104_v41  ;;  %v2964_v39 = vld [vmem:[#allocation11 + $0x30] sm:$0xff]  ;;  %v2967_v40 = vld [vmem:[#allocation11 + $0x48] sm:$0xff]  ;;  %v2969_v41 = vld [vmem:[#allocation11 + $0x58] sm:$0xff] }
 0x670   : > { %8135 = vmatpush1.bf16.msra.mxu1 %v8134_v48  ;;  %v3110_v48 = vld [vmem:[#allocation11 + $0x258] sm:$0xff] }
 0x671   : > { %8137 = vmatprep.subr.bf16.mxu1 %v8136_v49  ;;  %v8166_v49 = vpack.c.bf16 %v3105_v46, %v3103_v45  ;;  %v8168_v50 = vpack.c.bf16 %v3110_v48, %v3108_v47  ;;  %v2968_v45 = vld [vmem:[#allocation11 + $0x50] sm:$0xff]  ;;  %v2971_v46 = vld [vmem:[#allocation11 + $0x68] sm:$0xff]  ;;  %v2973_v47 = vld [vmem:[#allocation11 + $0x78] sm:$0xff] }
 0x674   : > { %8139 = vmatpush1.bf16.msra.mxu1 %v8138_v56  ;;  %v3114_v56 = vld [vmem:[#allocation11 + $0x278] sm:$0xff] }
 0x675   : > { %8141 = vmatprep.subr.bf16.mxu1 %v8140_v57  ;;  %v8170_v57 = vpack.c.bf16 %v3109_v52, %v3107_v51  ;;  %v8172_v58 = vpack.c.bf16 %v3114_v56, %v3112_v54  ;;  %v2972_v51 = vld [vmem:[#allocation11 + $0x70] sm:$0xff]  ;;  %v2975_v52 = vld [vmem:[#allocation11 + $0x88] sm:$0xff]  ;;  %v2977_v54 = vld [vmem:[#allocation11 + $0x98] sm:$0xff] }
 0x678   : > { %8143 = vmatpush1.bf16.msra.mxu1 %v8142_v60  ;;  %v3113_v60 = vld [vmem:[#allocation11 + $0x270] sm:$0xff] }
 0x67b   : > { %2854 = vmatmul.mubr.f32.vlgmr.msra.gmra.mrb[8].mxu1 %v10474_v31 }
 0x67c   : > { %3348 = vmatprep.mubr.f32.mxu1 %v9736_v28 }
 0x74e   : > { %v2855_v0 = vpop.f32.mrb[8].mxu1 }
 0x74f   : > { %v2874_v1 = vadd.f32 %v2867_v62, %v2855_v0  ;;  %v2857_v2 = vpop.f32.mrb[9].mxu1  ;;  %v3118_v62 = vld [vmem:[#allocation11 + $0x298] sm:$0xff] }
 0x750   : > { %v2875_v3 = vadd.f32 %v2871_v63, %v2857_v2  ;;  %v8174_v63 = vpack.c.bf16 %v3113_v60, %v3111_v59  ;;  %v8176_v0 = vpack.c.bf16 %v3118_v62, %v3116_v61  ;;  %v3117_v2 = vld [vmem:[#allocation11 + $0x290] sm:$0xff]  ;;  %v2979_v60 = vld [vmem:[#allocation11 + $0xa8] sm:$0xff]  ;;  %v2981_v61 = vld [vmem:[#allocation11 + $0xb8] sm:$0xff] }
 0x751   : > { %v2878_v4 = vmul.f32 0.2, %v2874_v1  ;;  %vm2876_vm7 = vcmp.gt.f32.partialorder %v2874_v1, 0.0  ;;  %v2976_v59 = vld [vmem:[#allocation11 + $0x90] sm:$0xff] }
 0x752   : > { %v2879_v5 = vmul.f32 0.2, %v2875_v3  ;;  %vm2877_vm8 = vcmp.gt.f32.partialorder %v2875_v3, 0.0 }
 0x753   : > { %v2880_v31 = vsel %vm2876_vm7, %v2874_v1, %v2878_v4  ;;  %v3115_v1 = vld [vmem:[#allocation11 + $0x280] sm:$0xff]  ;;  %v3122_v4 = vld [vmem:[#allocation11 + $0x2b8] sm:$0xff]  ;;  %vm5529_vm7 = vcmask 779264  }
 0x754   : > { %v2881_v8 = vsel %vm2877_vm8, %v2875_v3, %v2879_v5  ;;  %v3120_v3 = vld [vmem:[#allocation11 + $0x2a8] sm:$0xff]  ;;  %v8178_v5 = vpack.c.bf16 %v3117_v2, %v3115_v1  ;;  %v2980_v1 = vld [vmem:[#allocation11 + $0xb0] sm:$0xff] }
 0x755   : > { %2887 = vmatprep.subr.mxu0 %v2881_v8  ;;  %3284 = vmatprep.subr.mxu1 %v2881_v8  ;;  %v8180_v6 = vpack.c.bf16 %v3122_v4, %v3120_v3  ;;  %v2983_v2 = vld [vmem:[#allocation11 + $0xc8] sm:$0xff]  ;;  %v2985_v3 = vld [vmem:[#allocation11 + $0xd8] sm:$0xff] }
 0x756   : > { %2888 = vmatpush1.msra.mxu0 %v2880_v31  ;;  %3285 = vmatpush1.msra.mxu1 %v2880_v31 }
 0x757   : > { %7073 = vmatmul.mubr.msk.f32.vlgmr.msra.gmra.mrb[12].mxu0 %vm2883_vm9, %v2882_v9  ;;  %3011 = vmatprep.subr.mxu0 %v2881_v8  ;;  %v3121_v8 = vld [vmem:[#allocation11 + $0x2b0] sm:$0xff]  ;;  %v3124_v9 = vld [vmem:[#allocation11 + $0x2c8] sm:$0xff] }
 0x758   : > { %3012 = vmatpush1.msra.mxu0 %v2880_v31  ;;  %3075 = vmatprep.mubr.f32.mxu0 %v9736_v28  ;;  %v3126_v31 = vld [vmem:[#allocation11 + $0x2d8] sm:$0xff] }
 0x759   : > { %7077 = vmatmul.mubr.msk.f32.vlgmr.msra.gmra.mrb[10].mxu1 %vm2883_vm9, %v3280_v35  ;;  %8145 = vmatprep.subr.bf16.mxu0 %v8144_v30  ;;  %v8182_v30 = vpack.c.bf16 %v3121_v8, %v3119_v7  ;;  %v8184_v10 = vpack.c.bf16 %v3126_v31, %v3124_v9  ;;  %v3125_v35 = vld [vmem:[#allocation11 + $0x2d0] sm:$0xff]  ;;  %v2987_v8 = vld [vmem:[#allocation11 + $0xe8] sm:$0xff]  ;;  %v2989_v9 = vld [vmem:[#allocation11 + $0xf8] sm:$0xff] }
 0x75a   : > { %3570 = vmatprep.mubr.f32.mxu1 %v9736_v28  ;;  %v8186_v12 = vpack.c.bf16 %v3125_v35, %v3123_v11  ;;  %v2984_v7 = vld [vmem:[#allocation11 + $0xd0] sm:$0xff]  ;;  %v2991_v35 = vld [vmem:[#allocation11 + $0x108] sm:$0xff] }
 0x75b   : > { %7074 = vmatmul.mubr.msk.f32.vlgmr.msra.gmra.mrb[14].mxu0 %vm2883_vm9, %v3007_v14  ;;  %v3130_v14 = vld [vmem:[#allocation11 + $0x2f8] sm:$0xff]  ;;  %v2988_v11 = vld [vmem:[#allocation11 + $0xf0] sm:$0xff] }
 0x75c   : > { %8147 = vmatpush1.bf16.msra.mxu0 %v8146_v15  ;;  %v8188_v15 = vpack.c.bf16 %v3130_v14, %v3128_v13 }
 0x75d   : > { %8149 = vmatprep.subr.bf16.mxu0 %v8148_v16  ;;  %v3127_v16 = vld [vmem:[#allocation11 + $0x2e0] sm:$0xff] }
 0x75e   : > { %v8190_v18 = vpack.c.bf16 %v3129_v17, %v3127_v16  ;;  %v2992_v16 = vld [vmem:[#allocation11 + $0x110] sm:$0xff]  ;;  %v2995_v17 = vld [vmem:[#allocation11 + $0x128] sm:$0xff] }
 0x760   : > { %8151 = vmatpush1.bf16.msra.mxu0 %v8150_v21  ;;  %v8192_v21 = vpack.c.bf16 %v2961_v20, %v2959_v19 }
 0x761   : > { %8153 = vmatprep.subr.bf16.mxu0 %v8152_v22 }
 0x764   : > { %8155 = vmatpush1.bf16.msra.mxu0 %v8154_v27  ;;  %v2965_v27 = vld [vmem:[#allocation11 + $0x38] sm:$0xff] }
 0x765   : > { %8157 = vmatprep.subr.bf16.mxu0 %v8156_v29 }
 0x768   : > { %8159 = vmatpush1.bf16.msra.mxu0 %v8158_v37  ;;  %v8196_v37 = vpack.c.bf16 %v2965_v27, %v2963_v26  ;;  %v8232_v27 = vpack.c.bf16 %v3001_v25, %v2999_v24  ;;  %v3389_v24 = vld [vmem:[#allocation11 + $0x408] sm:$0xff]  ;;  %v3391_v25 = vld [vmem:[#allocation11 + $0x418] sm:$0xff] }
 0x769   : > { %8161 = vmatprep.subr.bf16.mxu0 %v8160_v38  ;;  %v2962_v38 = vld [vmem:[#allocation11 + $0x20] sm:$0xff] }
 0x76a   : > { %v8198_v42 = vpack.c.bf16 %v2964_v39, %v2962_v38 }
 0x76c   : > { %8163 = vmatpush1.bf16.msra.mxu0 %v8162_v43  ;;  %v8200_v43 = vpack.c.bf16 %v2969_v41, %v2967_v40  ;;  %v3002_v40 = vld [vmem:[#allocation11 + $0x160] sm:$0xff]  ;;  %v3004_v41 = vld [vmem:[#allocation11 + $0x170] sm:$0xff] }
 0x76d   : > { %8165 = vmatprep.subr.bf16.mxu0 %v8164_v44  ;;  %v2966_v44 = vld [vmem:[#allocation11 + $0x40] sm:$0xff] }
 0x76e   : > { %v8202_v48 = vpack.c.bf16 %v2968_v45, %v2966_v44  ;;  %v8238_v44 = vpack.c.bf16 %v3004_v41, %v3002_v40  ;;  %v3392_v40 = vld [vmem:[#allocation11 + $0x420] sm:$0xff]  ;;  %v3394_v41 = vld [vmem:[#allocation11 + $0x430] sm:$0xff] }
 0x770   : > { %8167 = vmatpush1.bf16.msra.mxu0 %v8166_v49  ;;  %v8204_v49 = vpack.c.bf16 %v2973_v47, %v2971_v46  ;;  %v3356_v46 = vld [vmem:[#allocation11 + $0x300] sm:$0xff]  ;;  %v3358_v47 = vld [vmem:[#allocation11 + $0x310] sm:$0xff] }
 0x771   : > { %8169 = vmatprep.subr.bf16.mxu0 %v8168_v50  ;;  %v2970_v50 = vld [vmem:[#allocation11 + $0x60] sm:$0xff] }
 0x772   : > { %v8206_v56 = vpack.c.bf16 %v2972_v51, %v2970_v50  ;;  %v8242_v50 = vpack.c.bf16 %v3358_v47, %v3356_v46  ;;  %v3396_v46 = vld [vmem:[#allocation11 + $0x440] sm:$0xff]  ;;  %v3398_v47 = vld [vmem:[#allocation11 + $0x450] sm:$0xff] }
 0x774   : > { %8171 = vmatpush1.bf16.msra.mxu0 %v8170_v57  ;;  %v8208_v57 = vpack.c.bf16 %v2977_v54, %v2975_v52  ;;  %v3360_v52 = vld [vmem:[#allocation11 + $0x320] sm:$0xff]  ;;  %v3362_v54 = vld [vmem:[#allocation11 + $0x330] sm:$0xff] }
 0x775   : > { %8173 = vmatprep.subr.bf16.mxu0 %v8172_v58  ;;  %v2974_v58 = vld [vmem:[#allocation11 + $0x80] sm:$0xff] }
 0x776   : > { %v8210_v62 = vpack.c.bf16 %v2976_v59, %v2974_v58  ;;  %v8246_v58 = vpack.c.bf16 %v3362_v54, %v3360_v52  ;;  %v3400_v52 = vld [vmem:[#allocation11 + $0x460] sm:$0xff]  ;;  %v3402_v54 = vld [vmem:[#allocation11 + $0x470] sm:$0xff] }
 0x778   : > { %8175 = vmatpush1.bf16.msra.mxu0 %v8174_v63  ;;  %v8212_v63 = vpack.c.bf16 %v2981_v61, %v2979_v60  ;;  %v3364_v60 = vld [vmem:[#allocation11 + $0x340] sm:$0xff]  ;;  %v3366_v61 = vld [vmem:[#allocation11 + $0x350] sm:$0xff] }
 0x779   : > { %8177 = vmatprep.subr.bf16.mxu0 %v8176_v0  ;;  %v2978_v0 = vld [vmem:[#allocation11 + $0xa0] sm:$0xff] }
 0x77a   : > { %v8214_v4 = vpack.c.bf16 %v2980_v1, %v2978_v0  ;;  %v8250_v0 = vpack.c.bf16 %v3366_v61, %v3364_v60  ;;  %v3579_v60 = vld [vmem:[#allocation16 + $0x10] sm:$0xff] }
 0x77c   : > { %8179 = vmatpush1.bf16.msra.mxu0 %v8178_v5  ;;  %v8216_v5 = vpack.c.bf16 %v2985_v3, %v2983_v2  ;;  %v3368_v2 = vld [vmem:[#allocation11 + $0x360] sm:$0xff]  ;;  %v3370_v3 = vld [vmem:[#allocation11 + $0x370] sm:$0xff] }
 0x77d   : > { %8181 = vmatprep.subr.bf16.mxu0 %v8180_v6  ;;  %v2982_v6 = vld [vmem:[#allocation11 + $0xc0] sm:$0xff] }
 0x77e   : > { %v8218_v31 = vpack.c.bf16 %v2984_v7, %v2982_v6  ;;  %v3372_v7 = vld [vmem:[#allocation11 + $0x380] sm:$0xff] }
 0x780   : > { %8183 = vmatpush1.bf16.msra.mxu0 %v8182_v30  ;;  %v8220_v30 = vpack.c.bf16 %v2989_v9, %v2987_v8  ;;  %v3377_v8 = vld [vmem:[#allocation11 + $0x3a8] sm:$0xff]  ;;  %v3379_v9 = vld [vmem:[#allocation11 + $0x3b8] sm:$0xff] }
 0x781   : > { %8185 = vmatprep.subr.bf16.mxu0 %v8184_v10  ;;  %v2986_v10 = vld [vmem:[#allocation11 + $0xe0] sm:$0xff] }
 0x782   : > { %v8222_v13 = vpack.c.bf16 %v2988_v11, %v2986_v10  ;;  %v3376_v10 = vld [vmem:[#allocation11 + $0x3a0] sm:$0xff]  ;;  %v3378_v11 = vld [vmem:[#allocation11 + $0x3b0] sm:$0xff] }
 0x784   : > { %8187 = vmatpush1.bf16.msra.mxu0 %v8186_v12  ;;  %v2993_v12 = vld [vmem:[#allocation11 + $0x118] sm:$0xff] }
 0x785   : > { %8189 = vmatprep.subr.bf16.mxu0 %v8188_v15  ;;  %v8224_v14 = vpack.c.bf16 %v2993_v12, %v2991_v35  ;;  %v2990_v15 = vld [vmem:[#allocation11 + $0x100] sm:$0xff]  ;;  %v3381_v35 = vld [vmem:[#allocation11 + $0x3c8] sm:$0xff]  ;;  %v3383_v12 = vld [vmem:[#allocation11 + $0x3d8] sm:$0xff] }
 0x786   : > { %v8226_v19 = vpack.c.bf16 %v2992_v16, %v2990_v15  ;;  %v3380_v15 = vld [vmem:[#allocation11 + $0x3c0] sm:$0xff]  ;;  %v3382_v16 = vld [vmem:[#allocation11 + $0x3d0] sm:$0xff] }
 0x788   : > { %8191 = vmatpush1.bf16.msra.mxu0 %v8190_v18  ;;  %v2997_v18 = vld [vmem:[#allocation11 + $0x138] sm:$0xff] }
 0x789   : > { %8193 = vmatprep.subr.bf16.mxu0 %v8192_v21  ;;  %v8228_v20 = vpack.c.bf16 %v2997_v18, %v2995_v17  ;;  %v2994_v21 = vld [vmem:[#allocation11 + $0x120] sm:$0xff]  ;;  %v3385_v17 = vld [vmem:[#allocation11 + $0x3e8] sm:$0xff]  ;;  %v3387_v18 = vld [vmem:[#allocation11 + $0x3f8] sm:$0xff] }
 0x82a   : > { %v10492_v22 = vpop.f32.mrb[12].mxu0 }
 0x82b   : > { %v2955_v23 = vpop.f32.mrb[13].mxu0 }
 0x82c   : > { %v10494_v29 = vpop.f32.mrb[10].mxu1 }
 0x82d   : > { %v10496_v32 = vpop.f32.mrb[11].mxu1 }
 0x82e   : > { %v3077_v33 = vpop.f32.mrb[14].mxu0 }
 0x82f   : > { %v3079_v36 = vpop.f32.mrb[15].mxu0 }
 0x830   : > { %7075 = vmatprep.mubr.msk.f32.mxu0 %vm2261_vm4, %v3079_v36  ;;  %v3003_v36 = vld [vmem:[#allocation11 + $0x168] sm:$0xff] }
 0x831   : > { %3199 = vmatmul.mubr.f32.vlgmr.msra.gmra.mrb[16].mxu0 %v3077_v33  ;;  %v2998_v33 = vld [vmem:[#allocation11 + $0x140] sm:$0xff] }
 0x832   : > { %8195 = vmatpush1.bf16.msra.mxu0 %v8194_v34  ;;  %7076 = vmatprep.mubr.msk.f32.mxu0 %vm2261_vm4, %v2955_v23  ;;  %v2996_v23 = vld [vmem:[#allocation11 + $0x130] sm:$0xff] }
 0x833   : > { %8197 = vmatprep.subr.bf16.mxu0 %v8196_v37  ;;  %v8230_v26 = vpack.c.bf16 %v2996_v23, %v2994_v21  ;;  %v3000_v34 = vld [vmem:[#allocation11 + $0x150] sm:$0xff]  ;;  %v3005_v37 = vld [vmem:[#allocation11 + $0x178] sm:$0xff]  ;;  %v3384_v21 = vld [vmem:[#allocation11 + $0x3e0] sm:$0xff] }
 0x834   : > { %v8234_v38 = vpack.c.bf16 %v3000_v34, %v2998_v33  ;;  %v8236_v39 = vpack.c.bf16 %v3005_v37, %v3003_v36  ;;  %v3386_v23 = vld [vmem:[#allocation11 + $0x3f0] sm:$0xff]  ;;  %v3388_v33 = vld [vmem:[#allocation11 + $0x400] sm:$0xff]  ;;  %v3393_v36 = vld [vmem:[#allocation11 + $0x428] sm:$0xff] }
 0x835   : > { %v3390_v34 = vld [vmem:[#allocation11 + $0x410] sm:$0xff]  ;;  %v3395_v37 = vld [vmem:[#allocation11 + $0x438] sm:$0xff] }
 0x836   : > { %8199 = vmatpush1.bf16.msra.mxu0 %v8198_v42  ;;  %v3357_v42 = vld [vmem:[#allocation11 + $0x308] sm:$0xff] }
 0x837   : > { %8201 = vmatprep.subr.bf16.mxu0 %v8200_v43  ;;  %v3359_v43 = vld [vmem:[#allocation11 + $0x318] sm:$0xff] }
 0x838   : > { %v8240_v45 = vpack.c.bf16 %v3359_v43, %v3357_v42  ;;  %v3397_v42 = vld [vmem:[#allocation11 + $0x448] sm:$0xff]  ;;  %v3399_v43 = vld [vmem:[#allocation11 + $0x458] sm:$0xff] }
 0x83a   : > { %8203 = vmatpush1.bf16.msra.mxu0 %v8202_v48  ;;  %v3361_v48 = vld [vmem:[#allocation11 + $0x328] sm:$0xff] }
 0x83b   : > { %8205 = vmatprep.subr.bf16.mxu0 %v8204_v49  ;;  %v3363_v49 = vld [vmem:[#allocation11 + $0x338] sm:$0xff] }
 0x83c   : > { %v8244_v51 = vpack.c.bf16 %v3363_v49, %v3361_v48  ;;  %v3401_v48 = vld [vmem:[#allocation11 + $0x468] sm:$0xff]  ;;  %v3403_v49 = vld [vmem:[#allocation11 + $0x478] sm:$0xff] }
 0x83e   : > { %8207 = vmatpush1.bf16.msra.mxu0 %v8206_v56  ;;  %v3365_v56 = vld [vmem:[#allocation11 + $0x348] sm:$0xff] }
 0x83f   : > { %8209 = vmatprep.subr.bf16.mxu0 %v8208_v57  ;;  %v3367_v57 = vld [vmem:[#allocation11 + $0x358] sm:$0xff] }
 0x840   : > { %v8248_v59 = vpack.c.bf16 %v3367_v57, %v3365_v56  ;;  %v8286_v56 = vpack.c.bf16 %v3402_v54, %v3400_v52  ;;  %v9737_v57 = vmov 0.0|0.0   ;;  %v3687_v52 = vld [vmem:[#allocation16 + $0x108] sm:$0xff] }
 0x842   : > { %8211 = vmatpush1.bf16.msra.mxu0 %v8210_v62  ;;  %v3369_v62 = vld [vmem:[#allocation11 + $0x368] sm:$0xff] }
 0x843   : > { %8213 = vmatprep.subr.bf16.mxu0 %v8212_v63  ;;  %v3371_v63 = vld [vmem:[#allocation11 + $0x378] sm:$0xff] }
 0x844   : > { %v8252_v1 = vpack.c.bf16 %v3371_v63, %v3369_v62  ;;  %v3580_v62 = vld [vmem:[#allocation16 + $0x18] sm:$0xff] }
 0x845   : > { %v8328_v63 = vpack.c.bf16 %v3580_v62, %v3579_v60  ;;  %v3690_v60 = vld [vmem:[#allocation16 + $0x120] sm:$0xff] }
 0x846   : > { %8215 = vmatpush1.bf16.msra.mxu0 %v8214_v4  ;;  %v3373_v4 = vld [vmem:[#allocation11 + $0x388] sm:$0xff] }
 0x847   : > { %8217 = vmatprep.subr.bf16.mxu0 %v8216_v5  ;;  %v3375_v5 = vld [vmem:[#allocation11 + $0x398] sm:$0xff] }
 0x848   : > { %v8256_v6 = vpack.c.bf16 %v3375_v5, %v3373_v4  ;;  %v3585_v5 = vld [vmem:[#allocation16 + $0x40] sm:$0xff] }
 0x84a   : > { %8219 = vmatpush1.bf16.msra.mxu0 %v8218_v31 }
 0x84b   : > { %8221 = vmatprep.subr.bf16.mxu0 %v8220_v30  ;;  %v8260_v30 = vpack.c.bf16 %v3379_v9, %v3377_v8  ;;  %v3589_v9 = vld [vmem:[#allocation16 + $0x60] sm:$0xff] }
 0x84e   : > { %8223 = vmatpush1.bf16.msra.mxu0 %v8222_v13  ;;  %v8262_v13 = vpack.c.bf16 %v3378_v11, %v3376_v10  ;;  %v3591_v10 = vld [vmem:[#allocation16 + $0x70] sm:$0xff]  ;;  %v3592_v11 = vld [vmem:[#allocation16 + $0x78] sm:$0xff] }
 0x84f   : > { %8225 = vmatprep.subr.bf16.mxu0 %v8224_v14  ;;  %v8264_v14 = vpack.c.bf16 %v3383_v12, %v3381_v35  ;;  %v8346_v35 = vpack.c.bf16 %v3592_v11, %v3591_v10  ;;  %v3593_v12 = vld [vmem:[#allocation16 + $0x80] sm:$0xff]  ;;  %v3600_v10 = vld [vmem:[#allocation16 + $0xb8] sm:$0xff] }
 0x852   : > { %8227 = vmatpush1.bf16.msra.mxu0 %v8226_v19  ;;  %v8266_v19 = vpack.c.bf16 %v3382_v16, %v3380_v15  ;;  %v3595_v15 = vld [vmem:[#allocation16 + $0x90] sm:$0xff]  ;;  %v3596_v16 = vld [vmem:[#allocation16 + $0x98] sm:$0xff] }
 0x853   : > { %8229 = vmatprep.subr.bf16.mxu0 %v8228_v20  ;;  %v8268_v20 = vpack.c.bf16 %v3387_v18, %v3385_v17  ;;  %v8352_v17 = vpack.c.bf16 %v3596_v16, %v3595_v15  ;;  %v3597_v18 = vld [vmem:[#allocation16 + $0xa0] sm:$0xff]  ;;  %v3926_v16 = vld [vmem:[#allocation16 + $0x188] sm:$0xff] }
 0x854   : > { %v3925_v15 = vld [vmem:[#allocation16 + $0x180] sm:$0xff] }
 0x856   : > { %8231 = vmatpush1.bf16.msra.mxu0 %v8230_v26  ;;  %v8270_v26 = vpack.c.bf16 %v3386_v23, %v3384_v21  ;;  %v3480_v21 = vld [vmem:[#allocation13] sm:$0x3] }
 0x857   : > { %8233 = vmatprep.subr.bf16.mxu0 %v8232_v27  ;;  %v8272_v27 = vpack.c.bf16 %v3391_v25, %v3389_v24  ;;  %v3485_v23 = vrot.slane %v3480_v21, %v10456_v53  ;;  %v3489_v24 = vrot.slane %v3480_v21, %v10459_v55  ;;  %v3678_v53 = vld [vmem:[#allocation16 + $0xc0] sm:$0xff]  ;;  %v3679_v55 = vld [vmem:[#allocation16 + $0xc8] sm:$0xff] }
 0x85a   : > { %8235 = vmatpush1.bf16.msra.mxu0 %v8234_v38  ;;  %v8274_v38 = vpack.c.bf16 %v3390_v34, %v3388_v33 }
 0x85b   : > { %8237 = vmatprep.subr.bf16.mxu0 %v8236_v39  ;;  %v8276_v39 = vpack.c.bf16 %v3395_v37, %v3393_v36 }
 0x85e   : > { %8239 = vmatpush1.bf16.msra.mxu0 %v8238_v44  ;;  %v8278_v44 = vpack.c.bf16 %v3394_v41, %v3392_v40  ;;  %v3602_v40 = vld [vmem:[#allocation14 + $0x4] sm:$0xf]  ;;  %v8289_v41 = vpack.c.bf16 %v3679_v55, %v3678_v53  ;;  %v3937_v55 = vld [vmem:[#allocation16 + $0x1e0] sm:$0xff] }
 0x85f   : > { %8241 = vmatprep.subr.bf16.mxu0 %v8240_v45  ;;  %v8280_v45 = vpack.c.bf16 %v3399_v43, %v3397_v42  ;;  %v3680_v42 = vld [vmem:[#allocation16 + $0xd0] sm:$0xff]  ;;  %v3681_v43 = vld [vmem:[#allocation16 + $0xd8] sm:$0xff] }
 0x861   : > { %3273 = vmatmul.mubr.f32.vlgmr.msra.gmra.mrb[16].mxu0 %v10492_v22  ;;  %v8254_v22 = vpack.c.bf16 %v3370_v3, %v3368_v2  ;;  %v3583_v3 = vld [vmem:[#allocation16 + $0x30] sm:$0xff] }
 0x862   : > { %8243 = vmatpush1.bf16.msra.mxu0 %v8242_v50  ;;  %7078 = vmatprep.mubr.msk.f32.mxu0 %vm2261_vm4, %v10496_v32  ;;  %v3374_v32 = vld [vmem:[#allocation11 + $0x390] sm:$0xff]  ;;  %v8282_v50 = vpack.c.bf16 %v3398_v47, %v3396_v46 }
 0x863   : > { %8245 = vmatprep.subr.bf16.mxu0 %v8244_v51  ;;  %v8258_v31 = vpack.c.bf16 %v3374_v32, %v3372_v7  ;;  %v8284_v51 = vpack.c.bf16 %v3403_v49, %v3401_v48  ;;  %v3587_v7 = vld [vmem:[#allocation16 + $0x50] sm:$0xff]  ;;  %v3588_v32 = vld [vmem:[#allocation16 + $0x58] sm:$0xff]  ;;  %v3683_v46 = vld [vmem:[#allocation16 + $0xe8] sm:$0xff] }
 0x864   : > { %v8340_v8 = vpack.c.bf16 %v3588_v32, %v3587_v7  ;;  %v3684_v48 = vld [vmem:[#allocation16 + $0xf0] sm:$0xff]  ;;  %v3685_v49 = vld [vmem:[#allocation16 + $0xf8] sm:$0xff]  ;;  %v3699_v7 = vld [vmem:[#allocation16 + $0x168] sm:$0xff] }
 0x866   : > { %8247 = vmatpush1.bf16.msra.mxu0 %v8246_v58  ;;  %v3577_v58 = vld [vmem:[#allocation16] sm:$0xff] }
 0x867   : > { %8249 = vmatprep.subr.bf16.mxu0 %v8248_v59  ;;  %v3578_v59 = vld [vmem:[#allocation16 + $0x8] sm:$0xff] }
 0x868   : > { %v8325_v61 = vpack.c.bf16 %v3578_v59, %v3577_v58  ;;  %v3689_v58 = vld [vmem:[#allocation16 + $0x118] sm:$0xff] }
 0x86a   : > { %8251 = vmatpush1.bf16.msra.mxu0 %v8250_v0  ;;  %v3581_v0 = vld [vmem:[#allocation16 + $0x20] sm:$0xff] }
 0x86b   : > { %8253 = vmatprep.subr.bf16.mxu0 %v8252_v1  ;;  %v3582_v1 = vld [vmem:[#allocation16 + $0x28] sm:$0xff] }
 0x86c   : > { %v8331_v2 = vpack.c.bf16 %v3582_v1, %v3581_v0  ;;  %v3693_v0 = vld [vmem:[#allocation16 + $0x138] sm:$0xff] }
 0x86e   : > { %8255 = vmatpush1.bf16.msra.mxu0 %v8254_v22  ;;  %v3586_v22 = vld [vmem:[#allocation16 + $0x48] sm:$0xff] }
 0x86f   : > { %8257 = vmatprep.subr.bf16.mxu0 %v8256_v6  ;;  %v8337_v6 = vpack.c.bf16 %v3586_v22, %v3585_v5  ;;  %v3697_v5 = vld [vmem:[#allocation16 + $0x158] sm:$0xff] }
 0x872   : > { %8259 = vmatpush1.bf16.msra.mxu0 %v8258_v31  ;;  %v3590_v31 = vld [vmem:[#allocation16 + $0x68] sm:$0xff] }
 0x873   : > { %8261 = vmatprep.subr.bf16.mxu0 %v8260_v30  ;;  %v8343_v30 = vpack.c.bf16 %v3590_v31, %v3589_v9  ;;  %v3701_v9 = vld [vmem:[#allocation16 + $0x178] sm:$0xff] }
 0x876   : > { %8263 = vmatpush1.bf16.msra.mxu0 %v8262_v13  ;;  %v3594_v13 = vld [vmem:[#allocation16 + $0x88] sm:$0xff] }
 0x877   : > { %8265 = vmatprep.subr.bf16.mxu0 %v8264_v14  ;;  %v8349_v14 = vpack.c.bf16 %v3594_v13, %v3593_v12 }
 0x87a   : > { %8267 = vmatpush1.bf16.msra.mxu0 %v8266_v19  ;;  %v3598_v19 = vld [vmem:[#allocation16 + $0xa8] sm:$0xff] }
 0x87b   : > { %8269 = vmatprep.subr.bf16.mxu0 %v8268_v20  ;;  %v8355_v20 = vpack.c.bf16 %v3598_v19, %v3597_v18  ;;  %v8361_v18 = vpack.c.bf16 %v3926_v16, %v3925_v15  ;;  %v3927_v19 = vld [vmem:[#allocation16 + $0x190] sm:$0xff]  ;;  %v7085_v16 = vld [vmem:[#allocation17] ss:$0 sm:$0xff] }
 0x87e   : > { %8271 = vmatpush1.bf16.msra.mxu0 %v8270_v26 }
 0x87f   : > { %8273 = vmatprep.subr.bf16.mxu0 %v8272_v27 }
 0x882   : > { %8275 = vmatpush1.bf16.msra.mxu0 %v8274_v38 }
 0x883   : > { %8277 = vmatprep.subr.bf16.mxu0 %v8276_v39  ;;  %v3502_v39 = vld [vmem:[#allocation14] sm:$0xf] }
 0x886   : > { %8279 = vmatpush1.bf16.msra.mxu0 %v8278_v44  ;;  %v8292_v44 = vpack.c.bf16 %v3681_v43, %v3680_v42  ;;  %v3939_v42 = vld [vmem:[#allocation16 + $0x1f0] sm:$0xff]  ;;  %v3940_v43 = vld [vmem:[#allocation16 + $0x1f8] sm:$0xff] }
 0x887   : > { %8281 = vmatprep.subr.bf16.mxu0 %v8280_v45  ;;  %v3682_v45 = vld [vmem:[#allocation16 + $0xe0] sm:$0xff] }
 0x888   : > { %v8295_v47 = vpack.c.bf16 %v3683_v46, %v3682_v45  ;;  %v3941_v45 = vld [vmem:[#allocation16 + $0x200] sm:$0xff]  ;;  %v3942_v46 = vld [vmem:[#allocation16 + $0x208] sm:$0xff] }
 0x88a   : > { %8283 = vmatpush1.bf16.msra.mxu0 %v8282_v50  ;;  %v8298_v50 = vpack.c.bf16 %v3685_v49, %v3684_v48  ;;  %v3943_v48 = vld [vmem:[#allocation16 + $0x210] sm:$0xff]  ;;  %v3944_v49 = vld [vmem:[#allocation16 + $0x218] sm:$0xff] }
 0x88b   : > { %8285 = vmatprep.subr.bf16.mxu0 %v8284_v51  ;;  %v3686_v51 = vld [vmem:[#allocation16 + $0x100] sm:$0xff] }
 0x88c   : > { %v8301_v54 = vpack.c.bf16 %v3687_v52, %v3686_v51  ;;  %v3945_v51 = vld [vmem:[#allocation16 + $0x220] sm:$0xff]  ;;  %v3946_v52 = vld [vmem:[#allocation16 + $0x228] sm:$0xff] }
 0x88e   : > { %8287 = vmatpush1.bf16.msra.mxu0 %v8286_v56  ;;  %v3688_v56 = vld [vmem:[#allocation16 + $0x110] sm:$0xff] }
 0x88f   : > { %8324 = vmatprep.subr.bf16.mxu0 %v9737_v57  ;;  %v8304_v59 = vpack.c.bf16 %v3689_v58, %v3688_v56  ;;  %v3947_v56 = vld [vmem:[#allocation16 + $0x230] sm:$0xff]  ;;  %v3948_v58 = vld [vmem:[#allocation16 + $0x238] sm:$0xff] }
 0x891   : > { %3472 = vmatmul.mubr.f32.vlgmr.msra.gmra.mrb[16].mxu0 %v10494_v29  ;;  %v3584_v29 = vld [vmem:[#allocation16 + $0x38] sm:$0xff] }
 0x892   : > { %8326 = vmatpush1.bf16.msra.mxu0 %v8325_v61  ;;  %v8334_v4 = vpack.c.bf16 %v3584_v29, %v3583_v3  ;;  %v3691_v61 = vld [vmem:[#allocation16 + $0x128] sm:$0xff] }
 0x893   : > { %8327 = vmatprep.subr.bf16.mxu0 %v9737_v57  ;;  %v8307_v62 = vpack.c.bf16 %v3691_v61, %v3690_v60  ;;  %v3695_v3 = vld [vmem:[#allocation16 + $0x148] sm:$0xff] }
 0x896   : > { %8329 = vmatpush1.bf16.msra.mxu0 %v8328_v63  ;;  %v3692_v63 = vld [vmem:[#allocation16 + $0x130] sm:$0xff] }
 0x897   : > { %8330 = vmatprep.subr.bf16.mxu0 %v9737_v57  ;;  %v8310_v1 = vpack.c.bf16 %v3693_v0, %v3692_v63 }
 0x89a   : > { %8332 = vmatpush1.bf16.msra.mxu0 %v8331_v2  ;;  %v3694_v2 = vld [vmem:[#allocation16 + $0x140] sm:$0xff] }
 0x89b   : > { %8333 = vmatprep.subr.bf16.mxu0 %v9737_v57  ;;  %v8313_v29 = vpack.c.bf16 %v3695_v3, %v3694_v2  ;;  %v4113_v3 = vld [vmem:[#allocation20] sm:$0xff] }
 0x89e   : > { %8335 = vmatpush1.bf16.msra.mxu0 %v8334_v4  ;;  %v3696_v4 = vld [vmem:[#allocation16 + $0x150] sm:$0xff] }
 0x89f   : > { %8336 = vmatprep.subr.bf16.mxu0 %v9737_v57  ;;  %v8316_v22 = vpack.c.bf16 %v3697_v5, %v3696_v4  ;;  %v4115_v5 = vld [vmem:[#allocation20 + $0x10] sm:$0xff] }
 0x8a2   : > { %8338 = vmatpush1.bf16.msra.mxu0 %v8337_v6  ;;  %v3698_v6 = vld [vmem:[#allocation16 + $0x160] sm:$0xff] }
 0x8a3   : > { %8339 = vmatprep.subr.bf16.mxu0 %v9737_v57  ;;  %v8319_v32 = vpack.c.bf16 %v3699_v7, %v3698_v6  ;;  %v4117_v7 = vld [vmem:[#allocation20 + $0x20] sm:$0xff] }
 0x8a6   : > { %8341 = vmatpush1.bf16.msra.mxu0 %v8340_v8  ;;  %v3700_v8 = vld [vmem:[#allocation16 + $0x170] sm:$0xff] }
 0x8a7   : > { %8342 = vmatprep.subr.bf16.mxu0 %v9737_v57  ;;  %v8322_v31 = vpack.c.bf16 %v3701_v9, %v3700_v8  ;;  %v4119_v9 = vld [vmem:[#allocation20 + $0x30] sm:$0xff] }
 0x8aa   : > { %8344 = vmatpush1.bf16.msra.mxu0 %v8343_v30  ;;  %v3599_v30 = vld [vmem:[#allocation16 + $0xb0] sm:$0xff] }
 0x8ab   : > { %8345 = vmatprep.subr.bf16.mxu0 %v9737_v57  ;;  %v8358_v11 = vpack.c.bf16 %v3600_v10, %v3599_v30  ;;  %v4121_v10 = vld [vmem:[#allocation20 + $0x40] sm:$0xff] }
 0x8ae   : > { %8347 = vmatpush1.bf16.msra.mxu0 %v8346_v35 }
 0x8af   : > { %8348 = vmatprep.subr.bf16.mxu0 %v9737_v57 }
 0x8b2   : > { %8350 = vmatpush1.bf16.msra.mxu0 %v8349_v14 }
 0x8b3   : > { %8351 = vmatprep.subr.bf16.mxu0 %v9737_v57 }
 0x8b6   : > { %8353 = vmatpush1.bf16.msra.mxu0 %v8352_v17  ;;  %v3849_v17 = vld [vmem:[#allocation14 + $0x8] sm:$0xf] }
 0x8b7   : > { %8354 = vmatprep.subr.bf16.mxu0 %v9737_v57 }
 0x8ba   : > { %8356 = vmatpush1.bf16.msra.mxu0 %v8355_v20  ;;  %v3928_v20 = vld [vmem:[#allocation16 + $0x198] sm:$0xff] }
 0x8bb   : > { %8357 = vmatprep.subr.bf16.mxu0 %v9737_v57  ;;  %v8364_v21 = vpack.c.bf16 %v3928_v20, %v3927_v19 }
 0x8be   : > { %8359 = vmatpush1.bf16.msra.mxu0 %v8358_v11  ;;  %v4122_v11 = vld [vmem:[#allocation20 + $0x48] sm:$0xff] }
 0x8bf   : > { %7428 = vmatprep.subr.mxu0 %v9736_v28 }
 0x964   : > { %v3473_v25 = vpop.f32.mrb[16].mxu0 }
 0x965   : > { %v3492_v26 = vadd.f32 %v3485_v23, %v3473_v25  ;;  %v3475_v27 = vpop.f32.mrb[17].mxu0  ;;  %v3929_v23 = vld [vmem:[#allocation16 + $0x1a0] sm:$0xff] }
 0x966   : > { %v3493_v33 = vadd.f32 %v3489_v24, %v3475_v27  ;;  %v3930_v24 = vld [vmem:[#allocation16 + $0x1a8] sm:$0xff]  ;;  %v3932_v27 = vld [vmem:[#allocation16 + $0x1b8] sm:$0xff] }
 0x967   : > { %vm3494_vm10 = vcmp.gt.f32.partialorder %v3492_v26, 0.0  ;;  %v3496_v34 = vmul.f32 0.2, %v3492_v26  ;;  %v8367_v25 = vpack.c.bf16 %v3930_v24, %v3929_v23  ;;  %v4201_v24 = vld [vmem:[#allocation20 + $0x60] sm:$0xff] }
 0x968   : > { %vm3495_vm11 = vcmp.gt.f32.partialorder %v3493_v33, 0.0  ;;  %v3497_v36 = vmul.f32 0.2, %v3493_v33 }
 0x969   : > { %v10521_v37 = vsel %vm3494_vm10, %v3492_v26, %v3496_v34  ;;  %v3931_v26 = vld [vmem:[#allocation16 + $0x1b0] sm:$0xff]  ;;  %v3933_v34 = vld [vmem:[#allocation16 + $0x1c0] sm:$0xff]  ;;  %vm6022_vm10 = vcmask 7168  }
 0x96a   : > { %v10523_v38 = vsel %vm3495_vm11, %v3493_v33, %v3497_v36  ;;  %3500 = vst [vmem:[%s1309_s23] sm:$0xff] %v10521_v37  ;;  %v8370_v33 = vpack.c.bf16 %v3932_v27, %v3931_v26  ;;  %v3934_v36 = vld [vmem:[#allocation16 + $0x1c8] sm:$0xff] }
 0x96b   : > { %3501 = vst.msk [vmem:[%s1309_s23 + $0x8] sm:$0xff] %vm2261_vm4, %v10523_v38  ;;  %3506 = vmatprep.subr.mxu1 %v10523_v38  ;;  %v4126_v26 = vld [vmem:[#allocation19 + $0x4] sm:$0xf]  ;;  %s6998_s23 = sshll.u32 %s10346_s16, 1  ;;  %s10957_s16 = sld [smem:[#allocation66_spill]] }
 0x96c   : > { %3507 = vmatpush1.msra.mxu1 %v10521_v37  ;;  %s1317_s28 = scalar_lea.vmem %s10955_s6, %s6998_s23 }
 0x96d   : > { %7079 = vmatmul.mubr.msk.f32.vlgmr.msra.gmra.mrb[12].mxu1 %vm2883_vm9, %v3502_v39  ;;  %3606 = vmatprep.subr.mxu1 %v10523_v38  ;;  %v3936_v39 = vld [vmem:[#allocation16 + $0x1d8] sm:$0xff] }
 0x96e   : > { %3607 = vmatpush1.msra.mxu1 %v10521_v37  ;;  %3670 = vmatprep.mubr.f32.mxu1 %v9736_v28 }
 0x96f   : > { %8288 = vmatprep.subr.bf16.mxu1 %v9737_v57 }
 0x971   : > { %7080 = vmatmul.mubr.msk.f32.vlgmr.msra.gmra.mrb[14].mxu1 %vm2883_vm9, %v3602_v40  ;;  %v3938_v40 = vld [vmem:[#allocation16 + $0x1e8] sm:$0xff] }
 0x972   : > { %8290 = vmatpush1.bf16.msra.mxu1 %v8289_v41  ;;  %v8379_v41 = vpack.c.bf16 %v3938_v40, %v3937_v55  ;;  %v4208_v55 = vld [vmem:[#allocation20 + $0x98] sm:$0xff] }
 0x973   : > { %8291 = vmatprep.subr.bf16.mxu1 %v9737_v57 }
 0x976   : > { %8293 = vmatpush1.bf16.msra.mxu1 %v8292_v44  ;;  %v8382_v44 = vpack.c.bf16 %v3940_v43, %v3939_v42  ;;  %v4210_v42 = vld [vmem:[#allocation20 + $0xa8] sm:$0xff] }
 0x977   : > { %8294 = vmatprep.subr.bf16.mxu1 %v9737_v57 }
 0x97a   : > { %8296 = vmatpush1.bf16.msra.mxu1 %v8295_v47  ;;  %v8385_v47 = vpack.c.bf16 %v3942_v46, %v3941_v45  ;;  %v4212_v45 = vld [vmem:[#allocation20 + $0xb8] sm:$0xff] }
 0x97b   : > { %8297 = vmatprep.subr.bf16.mxu1 %v9737_v57 }
 0x97e   : > { %8299 = vmatpush1.bf16.msra.mxu1 %v8298_v50  ;;  %v8388_v50 = vpack.c.bf16 %v3944_v49, %v3943_v48  ;;  %v4437_v48 = vld [vmem:[#allocation20 + $0xc8] sm:$0xff] }
 0x97f   : > { %8300 = vmatprep.subr.bf16.mxu1 %v9737_v57 }
 0x982   : > { %8302 = vmatpush1.bf16.msra.mxu1 %v8301_v54  ;;  %v8391_v54 = vpack.c.bf16 %v3946_v52, %v3945_v51  ;;  %v4438_v51 = vld [vmem:[#allocation20 + $0xd0] sm:$0xff]  ;;  %v4439_v52 = vld [vmem:[#allocation20 + $0xd8] sm:$0xff] }
 0x983   : > { %8303 = vmatprep.subr.bf16.mxu1 %v9737_v57 }
 0x986   : > { %8305 = vmatpush1.bf16.msra.mxu1 %v8304_v59  ;;  %v8394_v59 = vpack.c.bf16 %v3948_v58, %v3947_v56  ;;  %v8436_v56 = vpack.c.bf16 %v4439_v52, %v4438_v51  ;;  %v4706_v51 = vld [vmem:[#allocation23 + $0x90] sm:$0xff]  ;;  %v4707_v52 = vld [vmem:[#allocation23 + $0x98] sm:$0xff] }
 0x987   : > { %8306 = vmatprep.subr.bf16.mxu1 %v9737_v57 }
 0x98a   : > { %8308 = vmatpush1.bf16.msra.mxu1 %v8307_v62 }
 0x98b   : > { %8309 = vmatprep.subr.bf16.mxu1 %v9737_v57 }
 0x98e   : > { %8311 = vmatpush1.bf16.msra.mxu1 %v8310_v1 }
 0x98f   : > { %8312 = vmatprep.subr.bf16.mxu1 %v9737_v57 }
 0x992   : > { %8314 = vmatpush1.bf16.msra.mxu1 %v8313_v29  ;;  %v4114_v29 = vld [vmem:[#allocation20 + $0x8] sm:$0xff] }
 0x993   : > { %8315 = vmatprep.subr.bf16.mxu1 %v9737_v57  ;;  %v8415_v4 = vpack.c.bf16 %v4114_v29, %v4113_v3  ;;  %v4444_v3 = vld [vmem:[#allocation20 + $0x100] sm:$0xff]  ;;  %v4445_v29 = vld [vmem:[#allocation20 + $0x108] sm:$0xff] }
 0x996   : > { %8317 = vmatpush1.bf16.msra.mxu1 %v8316_v22  ;;  %v4116_v22 = vld [vmem:[#allocation20 + $0x18] sm:$0xff] }
 0x997   : > { %8318 = vmatprep.subr.bf16.mxu1 %v9737_v57  ;;  %v8418_v6 = vpack.c.bf16 %v4116_v22, %v4115_v5  ;;  %v4446_v5 = vld [vmem:[#allocation20 + $0x110] sm:$0xff]  ;;  %v4447_v22 = vld [vmem:[#allocation20 + $0x118] sm:$0xff] }
 0x99a   : > { %8320 = vmatpush1.bf16.msra.mxu1 %v8319_v32  ;;  %v4118_v32 = vld [vmem:[#allocation20 + $0x28] sm:$0xff] }
 0x99b   : > { %8321 = vmatprep.subr.bf16.mxu1 %v9737_v57  ;;  %v8421_v8 = vpack.c.bf16 %v4118_v32, %v4117_v7 }
 0x99e   : > { %8323 = vmatpush1.bf16.msra.mxu1 %v8322_v31  ;;  %v4120_v31 = vld [vmem:[#allocation20 + $0x38] sm:$0xff] }
 0x99f   : > { %3853 = vmatprep.subr.mxu1 %v10523_v38  ;;  %v3935_v38 = vld [vmem:[#allocation16 + $0x1d0] sm:$0xff]  ;;  %v8424_v30 = vpack.c.bf16 %v4120_v31, %v4119_v9 }
 0x9a0   : > { %v8376_v53 = vpack.c.bf16 %v3936_v39, %v3935_v38  ;;  %v4206_v38 = vld [vmem:[#allocation20 + $0x88] sm:$0xff] }
 0xa40   : > { %v3572_v35 = vpop.f32.mrb[12].mxu1 }
 0xa41   : > { %v3574_v12 = vpop.f32.mrb[13].mxu1 }
 0xa42   : > { %7082 = vmatprep.mubr.msk.f32.mxu0 %vm2261_vm4, %v3574_v12  ;;  %v4123_v12 = vld [vmem:[#allocation20 + $0x50] sm:$0xff] }
 0xa43   : > { %3843 = vmatmul.mubr.f32.vlgmr.msra.gmra.mrb[18].mxu0 %v3572_v35  ;;  %v8427_v35 = vpack.c.bf16 %v4122_v11, %v4121_v10  ;;  %v4612_v11 = vld [vmem:[#allocation23] sm:$0xff] }
 0xa44   : > { %v3672_v13 = vpop.f32.mrb[14].mxu1  ;;  %7430 = vmatprep.mubr.msk.f32.mxu0 %vm9738_vm12, %v9736_v28 }
 0xa45   : > { %v3674_v14 = vpop.f32.mrb[15].mxu1 }
 0xa46   : > { %7081 = vmatprep.mubr.msk.f32.mxu1 %vm2261_vm4, %v3674_v14 }
 0xa47   : > { %3770 = vmatmul.mubr.f32.vlgmr.msra.gmra.mrb[16].mxu1 %v3672_v13  ;;  %v4124_v13 = vld [vmem:[#allocation20 + $0x58] sm:$0xff] }
 0xa48   : > { %3854 = vmatpush1.msra.mxu1 %v10521_v37  ;;  %3917 = vmatprep.mubr.f32.mxu1 %v9736_v28  ;;  %v8373_v37 = vpack.c.bf16 %v3934_v36, %v3933_v34  ;;  %v8430_v14 = vpack.c.bf16 %v4124_v13, %v4123_v12  ;;  %v4204_v34 = vld [vmem:[#allocation20 + $0x78] sm:$0xff] }
 0xa49   : > { %8360 = vmatprep.subr.bf16.mxu1 %v9737_v57  ;;  %v4614_v13 = vld [vmem:[#allocation23 + $0x10] sm:$0xff] }
 0xa4b   : > { %7083 = vmatmul.mubr.msk.f32.vlgmr.msra.gmra.mrb[18].mxu1 %vm2883_vm9, %v3849_v17  ;;  %vm6026_vm9 = vcmask 1040384  }
 0xa4c   : > { %8362 = vmatpush1.bf16.msra.mxu1 %v8361_v18 }
 0xa4d   : > { %8363 = vmatprep.subr.bf16.mxu1 %v9737_v57 }
 0xa50   : > { %8365 = vmatpush1.bf16.msra.mxu1 %v8364_v21  ;;  %v4034_v21 = vld [vmem:[#allocation19] sm:$0xf] }
 0xa51   : > { %8366 = vmatprep.subr.bf16.mxu1 %v9737_v57 }
 0xa54   : > { %8368 = vmatpush1.bf16.msra.mxu1 %v8367_v25  ;;  %v4202_v25 = vld [vmem:[#allocation20 + $0x68] sm:$0xff] }
 0xa55   : > { %8369 = vmatprep.subr.bf16.mxu1 %v9737_v57  ;;  %v8397_v27 = vpack.c.bf16 %v4202_v25, %v4201_v24  ;;  %v4621_v24 = vld [vmem:[#allocation23 + $0x48] sm:$0xff] }
 0xa58   : > { %8371 = vmatpush1.bf16.msra.mxu1 %v8370_v33  ;;  %v4203_v33 = vld [vmem:[#allocation20 + $0x70] sm:$0xff] }
 0xa59   : > { %8372 = vmatprep.subr.bf16.mxu1 %v9737_v57  ;;  %v8400_v36 = vpack.c.bf16 %v4204_v34, %v4203_v33 }
 0xa5c   : > { %8374 = vmatpush1.bf16.msra.mxu1 %v8373_v37  ;;  %v4205_v37 = vld [vmem:[#allocation20 + $0x80] sm:$0xff] }
 0xa5d   : > { %8375 = vmatprep.subr.bf16.mxu1 %v9737_v57  ;;  %v8403_v39 = vpack.c.bf16 %v4206_v38, %v4205_v37 }
 0xa60   : > { %8377 = vmatpush1.bf16.msra.mxu1 %v8376_v53  ;;  %v4207_v53 = vld [vmem:[#allocation20 + $0x90] sm:$0xff] }
 0xa61   : > { %8378 = vmatprep.subr.bf16.mxu1 %v9737_v57  ;;  %v8406_v40 = vpack.c.bf16 %v4208_v55, %v4207_v53  ;;  %v4535_v55 = vld [vmem:[%s10952_s4] sm:$0x3] }
 0xa64   : > { %8380 = vmatpush1.bf16.msra.mxu1 %v8379_v41  ;;  %v4209_v41 = vld [vmem:[#allocation20 + $0xa0] sm:$0xff] }
 0xa65   : > { %8381 = vmatprep.subr.bf16.mxu1 %v9737_v57  ;;  %v8409_v43 = vpack.c.bf16 %v4210_v42, %v4209_v41  ;;  %v4700_v41 = vld [vmem:[#allocation23 + $0x60] sm:$0xff]  ;;  %v4701_v42 = vld [vmem:[#allocation23 + $0x68] sm:$0xff] }
 0xa68   : > { %8383 = vmatpush1.bf16.msra.mxu1 %v8382_v44  ;;  %v4211_v44 = vld [vmem:[#allocation20 + $0xb0] sm:$0xff] }
 0xa69   : > { %8384 = vmatprep.subr.bf16.mxu1 %v9737_v57  ;;  %v8412_v46 = vpack.c.bf16 %v4212_v45, %v4211_v44  ;;  %v8451_v44 = vpack.c.bf16 %v4701_v42, %v4700_v41  ;;  %v4702_v45 = vld [vmem:[#allocation23 + $0x70] sm:$0xff] }
 0xa6a   : > { %v5119_v41 = vld [vmem:[#allocation26 + $0x48] sm:$0xff] }
 0xa6c   : > { %8386 = vmatpush1.bf16.msra.mxu1 %v8385_v47  ;;  %v4436_v47 = vld [vmem:[#allocation20 + $0xc0] sm:$0xff] }
 0xa6d   : > { %8387 = vmatprep.subr.bf16.mxu1 %v9737_v57  ;;  %v8433_v49 = vpack.c.bf16 %v4437_v48, %v4436_v47  ;;  %v4704_v48 = vld [vmem:[#allocation23 + $0x80] sm:$0xff] }
 0xa70   : > { %8389 = vmatpush1.bf16.msra.mxu1 %v8388_v50 }
 0xa71   : > { %8390 = vmatprep.subr.bf16.mxu1 %v9737_v57 }
 0xa74   : > { %8392 = vmatpush1.bf16.msra.mxu1 %v8391_v54 }
 0xa75   : > { %8393 = vmatprep.subr.bf16.mxu1 %v9737_v57 }
 0xa78   : > { %8395 = vmatpush1.bf16.msra.mxu1 %v8394_v59  ;;  %v4440_v59 = vld [vmem:[#allocation20 + $0xe0] sm:$0xff] }
 0xa79   : > { %8414 = vmatprep.subr.bf16.mxu1 %v9737_v57 }
 0xb16   : > { %v3844_v60 = vpop.f32.mrb[18].mxu0 }
 0xb17   : > { %v3846_v61 = vpop.f32.mrb[19].mxu0 }
 0xb1a   : > { %v3771_v62 = vpop.f32.mrb[16].mxu1 }
 0xb1b   : > { %v3845_v63 = vadd.f32 %v3844_v60, %v3771_v62  ;;  %v3773_v0 = vpop.f32.mrb[17].mxu1  ;;  %v4441_v60 = vld [vmem:[#allocation20 + $0xe8] sm:$0xff]  ;;  %v4361_v62 = vld [vmem:[#allocation19 + $0x8] sm:$0xf] }
 0xb1c   : > { %v4442_v0 = vld [vmem:[#allocation20 + $0xf0] sm:$0xff] }
 0xb1e   : > { %v3919_v1 = vpop.f32.mrb[18].mxu1 }
 0xb1f   : > { %v3921_v2 = vpop.f32.mrb[19].mxu1 }
 0xb20   : > { %7084 = vmatprep.mubr.msk.f32.mxu1 %vm2261_vm4, %v3921_v2  ;;  %vm5036_vm4 = vcmask 1041408  }
 0xb21   : > { %4017 = vmatmul.mubr.f32.vlgmr.msra.gmra.mrb[20].mxu1 %v3919_v1  ;;  %v4443_v1 = vld [vmem:[#allocation20 + $0xf8] sm:$0xff] }
 0xb22   : > { %7489 = vmatprep.mubr.msk.f32.mxu1 %vm9738_vm12, %v9736_v28  ;;  %8416 = vmatpush3.bf16.msra.mxu1 %v8415_v4  ;;  %v8442_v2 = vpack.c.bf16 %v4443_v1, %v4442_v0  ;;  %v8445_v4 = vpack.c.bf16 %v4445_v29, %v4444_v3  ;;  %v4934_v1 = vld [vmem:[#allocation23 + $0xc0] sm:$0xff] }
 0xb23   : > { %8417 = vmatprep.subr.bf16.mxu1 %v9737_v57 }
 0xb26   : > { %8419 = vmatpush3.bf16.msra.mxu1 %v8418_v6  ;;  %v8448_v6 = vpack.c.bf16 %v4447_v22, %v4446_v5  ;;  %v4936_v22 = vld [vmem:[#allocation23 + $0xd0] sm:$0xff] }
 0xb27   : > { %8420 = vmatprep.subr.bf16.mxu1 %v9737_v57 }
 0xb2a   : > { %8422 = vmatpush3.bf16.msra.mxu1 %v8421_v8 }
 0xb2b   : > { %8423 = vmatprep.subr.bf16.mxu1 %v9737_v57 }
 0xb2e   : > { %8425 = vmatpush3.bf16.msra.mxu1 %v8424_v30 }
 0xb2f   : > { %8426 = vmatprep.subr.bf16.mxu1 %v9737_v57 }
 0xb32   : > { %8428 = vmatpush3.bf16.msra.mxu1 %v8427_v35  ;;  %v4613_v35 = vld [vmem:[#allocation23 + $0x8] sm:$0xff] }
 0xb33   : > { %8429 = vmatprep.subr.bf16.mxu1 %v9737_v57  ;;  %v8469_v12 = vpack.c.bf16 %v4613_v35, %v4612_v11  ;;  %v4942_v11 = vld [vmem:[#allocation23 + $0x100] sm:$0xff]  ;;  %v4943_v35 = vld [vmem:[#allocation23 + $0x108] sm:$0xff] }
 0xb36   : > { %8431 = vmatpush3.bf16.msra.mxu1 %v8430_v14  ;;  %v4615_v14 = vld [vmem:[#allocation23 + $0x18] sm:$0xff] }
 0xb37   : > { %8432 = vmatprep.subr.bf16.mxu1 %v9737_v57 }
 0xbf4   : > { %v4018_v15 = vpop.f32.mrb[20].mxu1 }
 0xbf5   : > { %v4022_v17 = vadd.f32 %v4018_v15, %v3845_v63  ;;  %v4020_v18 = vpop.f32.mrb[21].mxu1  ;;  %v8439_v63 = vpack.c.bf16 %v4441_v60, %v4440_v59  ;;  %v8472_v15 = vpack.c.bf16 %v4615_v14, %v4614_v13  ;;  %v4710_v60 = vld [vmem:[#allocation23 + $0xb0] sm:$0xff]  ;;  %v4945_v14 = vld [vmem:[#allocation23 + $0x118] sm:$0xff] }
 0xbf6   : > { %v4944_v13 = vld [vmem:[#allocation23 + $0x110] sm:$0xff] }
 0xbf7   : > { %v4030_v19 = vadd.f32 %v7085_v16, %v4022_v17  ;;  %v4616_v16 = vld [vmem:[#allocation23 + $0x20] sm:$0xff]  ;;  %v4617_v17 = vld [vmem:[#allocation23 + $0x28] sm:$0xff] }
 0xbf8   : > { %v8475_v18 = vpack.c.bf16 %v4617_v17, %v4616_v16 }
 0xbf9   : > { %vm4031_vm13 = vcmp.gt.f32.partialorder %v4030_v19, 0.0  ;;  %v4032_v20 = vmul.f32 0.2, %v4030_v19 }
 0xbfb   : > { %v4033_v23 = vsel %vm4031_vm13, %v4030_v19, %v4032_v20  ;;  %v4618_v19 = vld [vmem:[#allocation23 + $0x30] sm:$0xff]  ;;  %v4619_v20 = vld [vmem:[#allocation23 + $0x38] sm:$0xff] }
 0xbfc   : > { %7429 = vmatpush3.msk.msra.mxu0 %vm4039_vm14, %v4033_v23 }
 0xbfd   : > { %7431 = vmatmul.mubr.msk.f32.vlgmr.msra.gmra.mrb[20].mxu0 %vm4035_vm15, %v4034_v21  ;;  %7433 = vmatprep.subr.mxu0 %v9736_v28  ;;  %v8478_v21 = vpack.c.bf16 %v4619_v20, %v4618_v19 }
 0xbfe   : > { %7434 = vmatpush3.msk.msra.mxu0 %vm4039_vm14, %v4033_v23  ;;  %7435 = vmatprep.mubr.msk.f32.mxu0 %vm9738_vm12, %v9736_v28 }
 0xbff   : > { %8396 = vmatprep.subr.bf16.mxu0 %v9737_v57 }
 0xc01   : > { %7436 = vmatmul.mubr.msk.f32.vlgmr.msra.gmra.mrb[22].mxu0 %vm4035_vm15, %v4126_v26  ;;  %v4622_v26 = vld [vmem:[#allocation23 + $0x50] sm:$0xff] }
 0xc02   : > { %8398 = vmatpush3.bf16.msra.mxu0 %v8397_v27  ;;  %7462 = vmatprep.mubr.msk.f32.mxu0 %vm9738_vm12, %v9736_v28  ;;  %v4623_v27 = vld [vmem:[#allocation23 + $0x58] sm:$0xff] }
 0xc03   : > { %8399 = vmatprep.subr.bf16.mxu0 %v9737_v57  ;;  %v8484_v33 = vpack.c.bf16 %v4623_v27, %v4622_v26  ;;  %v5112_v27 = vld [vmem:[#allocation26 + $0x10] sm:$0xff] }
 0xc06   : > { %8401 = vmatpush3.bf16.msra.mxu0 %v8400_v36  ;;  %v7095_v36 = vld [vmem:[#allocation22] ss:$0 sm:$0xff] }
 0xc07   : > { %8402 = vmatprep.subr.bf16.mxu0 %v9737_v57 }
 0xc0a   : > { %8404 = vmatpush3.bf16.msra.mxu0 %v8403_v39 }
 0xc0b   : > { %8405 = vmatprep.subr.bf16.mxu0 %v9737_v57 }
 0xc0e   : > { %8407 = vmatpush3.bf16.msra.mxu0 %v8406_v40 }
 0xc0f   : > { %8408 = vmatprep.subr.bf16.mxu0 %v9737_v57 }
 0xc12   : > { %8410 = vmatpush3.bf16.msra.mxu0 %v8409_v43  ;;  %v7098_v43 = vld [vmem:[%s10952_s4 + $0x2] sm:$0x3] }
 0xc13   : > { %8411 = vmatprep.subr.bf16.mxu0 %v9737_v57 }
 0xc16   : > { %8413 = vmatpush3.bf16.msra.mxu0 %v8412_v46  ;;  %v4703_v46 = vld [vmem:[#allocation23 + $0x78] sm:$0xff] }
 0xc17   : > { %7492 = vmatprep.subr.mxu0 %v9736_v28  ;;  %v8454_v47 = vpack.c.bf16 %v4703_v46, %v4702_v45 }
 0xcd0   : > { %v4109_v50 = vpop.f32.mrb[20].mxu0 }
 0xcd1   : > { %v7432_v54 = vpop.f32.mrb[21].mxu0  ;;  %7490 = vmatmul.mubr.msk.f32.vlgmr.msra.gmra.mrb[22].mxu1 %vm4213_vm0, %v4109_v50 }
 0xcd2   : > { %8434 = vmatpush3.bf16.msra.mxu1 %v8433_v49  ;;  %7521 = vmatprep.mubr.msk.f32.mxu1 %vm9738_vm12, %v9736_v28  ;;  %v4705_v49 = vld [vmem:[#allocation23 + $0x88] sm:$0xff]  ;;  %v8460_v54 = vpack.c.bf16 %v4707_v52, %v4706_v51  ;;  %v5031_v52 = vld [vmem:[%s10953_s2] sm:$0x3]  ;;  %s7142_s2 = sshll.u32 %s9931_s7, 4  ;;  %s9739_s7 = smov [#allocation35]  }
 0xcd3   : > { %8435 = vmatprep.subr.bf16.mxu1 %v9737_v57  ;;  %v8457_v50 = vpack.c.bf16 %v4705_v49, %v4704_v48  ;;  %s9573_s6 = sshll.u32 %s9739_s7, 4  ;;  %s9574_s6 = int_to_ptr.vmem [resolvable:$false] %s9573_s6 }
 0xcd4   : > { %v4196_v58 = vpop.f32.mrb[22].mxu0  ;;  %s9575_s8 = scalar_lea.vmem %s9574_s6, 32 }
 0xcd5   : > { %v7437_v61 = vpop.f32.mrb[23].mxu0  ;;  %7463 = vmatmul.mubr.msk.f32.vlgmr.msra.gmra.mrb[24].mxu0 %vm4213_vm0, %v4196_v58  ;;  %v4709_v58 = vld [vmem:[#allocation23 + $0xa8] sm:$0xff] }
 0xcd6   : > { %7493 = vmatpush3.msk.msra.mxu0 %vm4039_vm14, %v4033_v23  ;;  %7494 = vmatprep.mubr.msk.f32.mxu0 %vm9738_vm12, %v9736_v28  ;;  %v4620_v23 = vld [vmem:[#allocation23 + $0x40] sm:$0xff]  ;;  %v4711_v61 = vld [vmem:[#allocation23 + $0xb8] sm:$0xff] }
 0xcd7   : > { %8437 = vmatpush3.bf16.msra.mxu1 %v8436_v56  ;;  %7524 = vmatprep.subr.mxu0 %v9736_v28  ;;  %v8481_v25 = vpack.c.bf16 %v4621_v24, %v4620_v23  ;;  %v4708_v56 = vld [vmem:[#allocation23 + $0xa0] sm:$0xff] }
 0xcd8   : > { %8438 = vmatprep.subr.bf16.mxu1 %v9737_v57  ;;  %v8463_v59 = vpack.c.bf16 %v4709_v58, %v4708_v56  ;;  %v5110_v24 = vld [vmem:[#allocation26] sm:$0xff]  ;;  %v5199_v58 = vld [vmem:[#allocation26 + $0x68] sm:$0xff] }
 0xcd9   : > { %7495 = vmatmul.mubr.msk.f32.vlgmr.msra.gmra.mrb[26].mxu0 %vm4035_vm15, %v4361_v62  ;;  %v8466_v62 = vpack.c.bf16 %v4711_v61, %v4710_v60  ;;  %v5198_v56 = vld [vmem:[#allocation26 + $0x60] sm:$0xff]  ;;  %v5200_v61 = vld [vmem:[#allocation26 + $0x70] sm:$0xff] }
 0xcda   : > { %7526 = vmatprep.mubr.msk.f32.mxu0 %vm9738_vm12, %v9736_v28  ;;  %v8505_v60 = vpack.c.bf16 %v5199_v58, %v5198_v56  ;;  %v5617_v56 = vld [vmem:[#allocation29 + $0x48] sm:$0xff] }
 0xcdb   : > { %8440 = vmatpush3.bf16.msra.mxu1 %v8439_v63 }
 0xcdc   : > { %8441 = vmatprep.subr.bf16.mxu1 %v9737_v57 }
 0xcdf   : > { %8443 = vmatpush3.bf16.msra.mxu1 %v8442_v2  ;;  %v4935_v2 = vld [vmem:[#allocation23 + $0xc8] sm:$0xff] }
 0xce0   : > { %8444 = vmatprep.subr.bf16.mxu1 %v9737_v57  ;;  %v8487_v5 = vpack.c.bf16 %v4935_v2, %v4934_v1  ;;  %v5203_v1 = vld [vmem:[#allocation26 + $0x88] sm:$0xff] }
 0xce3   : > { %8446 = vmatpush3.bf16.msra.mxu1 %v8445_v4  ;;  %v7103_v4 = vld [vmem:[%s10952_s4 + $0x4] sm:$0x3] }
 0xce4   : > { %8447 = vmatprep.subr.bf16.mxu1 %v9737_v57 }
 0xce7   : > { %8449 = vmatpush3.bf16.msra.mxu1 %v8448_v6  ;;  %v4937_v6 = vld [vmem:[#allocation23 + $0xd8] sm:$0xff] }
 0xce8   : > { %8468 = vmatprep.subr.bf16.mxu1 %v9737_v57 }
 0xda4   : > { %v4356_v7 = vpop.f32.mrb[22].mxu1 }
 0xda5   : > { %v7491_v32 = vpop.f32.mrb[23].mxu1 }
 0xda6   : > { %v4938_v32 = vld [vmem:[#allocation23 + $0xe0] sm:$0xff] }
 0xda8   : > { %v4283_v8 = vpop.f32.mrb[24].mxu0 }
 0xda9   : > { %v4357_v9 = vadd.f32 %v4356_v7, %v4283_v8  ;;  %v7464_v31 = vpop.f32.mrb[25].mxu0  ;;  %v8490_v7 = vpack.c.bf16 %v4937_v6, %v4936_v22  ;;  %v4939_v8 = vld [vmem:[#allocation23 + $0xe8] sm:$0xff] }
 0xdaa   : > { %v4940_v31 = vld [vmem:[#allocation23 + $0xf0] sm:$0xff] }
 0xdab   : > { %v5207_v22 = vld [vmem:[#allocation26 + $0xa8] sm:$0xff] }
 0xdac   : > { %v4431_v30 = vpop.f32.mrb[26].mxu0 }
 0xdad   : > { %v7496_v10 = vpop.f32.mrb[27].mxu0  ;;  %7522 = vmatmul.mubr.msk.f32.vlgmr.msra.gmra.mrb[24].mxu1 %vm4213_vm0, %v4431_v30  ;;  %v4941_v30 = vld [vmem:[#allocation23 + $0xf8] sm:$0xff] }
 0xdae   : > { %7585 = vmatprep.mubr.msk.f32.mxu1 %vm9738_vm12, %v9736_v28  ;;  %8470 = vmatpush3.bf16.msra.mxu1 %v8469_v12  ;;  %v8496_v10 = vpack.c.bf16 %v4941_v30, %v4940_v31  ;;  %v8499_v12 = vpack.c.bf16 %v4943_v35, %v4942_v11  ;;  %v5432_v30 = vld [vmem:[#allocation26 + $0xc0] sm:$0xff] }
 0xdaf   : > { %8471 = vmatprep.subr.bf16.mxu1 %v9737_v57 }
 0xdb2   : > { %8473 = vmatpush3.bf16.msra.mxu1 %v8472_v15  ;;  %v8502_v15 = vpack.c.bf16 %v4945_v14, %v4944_v13  ;;  %v5434_v14 = vld [vmem:[#allocation26 + $0xd0] sm:$0xff] }
 0xdb3   : > { %8474 = vmatprep.subr.bf16.mxu1 %v9737_v57 }
 0xdb6   : > { %8476 = vmatpush3.bf16.msra.mxu1 %v8475_v18 }
 0xdb7   : > { %8477 = vmatprep.subr.bf16.mxu1 %v9737_v57 }
 0xdba   : > { %8479 = vmatpush3.bf16.msra.mxu1 %v8478_v21 }
 0xdbb   : > { %8480 = vmatprep.subr.bf16.mxu1 %v9737_v57 }
 0xdbe   : > { %8482 = vmatpush3.bf16.msra.mxu1 %v8481_v25  ;;  %v5111_v25 = vld [vmem:[#allocation26 + $0x8] sm:$0xff] }
 0xdbf   : > { %8483 = vmatprep.subr.bf16.mxu1 %v9737_v57  ;;  %v8523_v26 = vpack.c.bf16 %v5111_v25, %v5110_v24  ;;  %v5440_v24 = vld [vmem:[#allocation26 + $0x100] sm:$0xff]  ;;  %v5441_v25 = vld [vmem:[#allocation26 + $0x108] sm:$0xff] }
 0xdc2   : > { %8485 = vmatpush3.bf16.msra.mxu1 %v8484_v33  ;;  %v5113_v33 = vld [vmem:[#allocation26 + $0x18] sm:$0xff] }
 0xdc3   : > { %7620 = vmatprep.subr.mxu1 %v9736_v28 }
 0xe80   : > { %v4517_v34 = vpop.f32.mrb[24].mxu1 }
 0xe81   : > { %v4521_v37 = vadd.f32 %v4517_v34, %v4357_v9  ;;  %v7523_v38 = vpop.f32.mrb[25].mxu1  ;;  %v8493_v9 = vpack.c.bf16 %v4939_v8, %v4938_v32  ;;  %v8526_v34 = vpack.c.bf16 %v5113_v33, %v5112_v27  ;;  %v5209_v32 = vld [vmem:[#allocation26 + $0xb8] sm:$0xff]  ;;  %v5442_v27 = vld [vmem:[#allocation26 + $0x110] sm:$0xff] }
 0xe82   : > { %v5443_v33 = vld [vmem:[#allocation26 + $0x118] sm:$0xff] }
 0xe83   : > { %v4529_v39 = vadd.f32 %v7095_v36, %v4521_v37  ;;  %v5114_v36 = vld [vmem:[#allocation26 + $0x20] sm:$0xff]  ;;  %v5115_v37 = vld [vmem:[#allocation26 + $0x28] sm:$0xff] }
 0xe84   : > { %v8529_v38 = vpack.c.bf16 %v5115_v37, %v5114_v36 }
 0xe85   : > { %vm4530_vm1 = vcmp.gt.f32.partialorder %v4529_v39, 0.0  ;;  %v4531_v53 = vmul.f32 0.2, %v4529_v39 }
 0xe87   : > { %v4532_v40 = vsel %vm4530_vm1, %v4529_v39, %v4531_v53  ;;  %v5116_v39 = vld [vmem:[#allocation26 + $0x30] sm:$0xff]  ;;  %v5117_v53 = vld [vmem:[#allocation26 + $0x38] sm:$0xff] }
 0xe88   : > { %4534 = vst.msk [vmem:[%s1313_s9] sm:$0xf] %vm4533_vm2, %v4532_v40  ;;  %7525 = vmatpush3.msk.msra.mxu0 %vm4039_vm14, %v4532_v40  ;;  %s1293_s9 = sand.u32 1, %s9667_s1  }
 0xe89   : > { %7527 = vmatmul.mubr.msk.f32.vlgmr.msra.gmra.mrb[28].mxu0 %vm4035_vm15, %v4535_v55  ;;  %7529 = vmatprep.subr.mxu0 %v9736_v28  ;;  %v8532_v55 = vpack.c.bf16 %v5117_v53, %v5116_v39  ;;  %s1294_s23 = scalar_lea.vmem [#allocation35], %s1293_s9  ;;  %s6534_s4 = scalar_lea.sflag [#allocation4], %s1293_s9 }
 0xe8a   : > { %7530 = vmatpush3.msk.msra.mxu0 %vm4039_vm14, %v4532_v40  ;;  %7531 = vmatprep.mubr.msk.f32.mxu0 %vm9738_vm12, %v9736_v28 }
 0xe8b   : > { %8450 = vmatprep.subr.bf16.mxu0 %v9737_v57 }
 0xe8d   : > { %7532 = vmatmul.mubr.msk.f32.vlgmr.msra.gmra.mrb[30].mxu0 %vm4035_vm15, %v7098_v43  ;;  %v5120_v43 = vld [vmem:[#allocation26 + $0x50] sm:$0xff] }
 0xe8e   : > { %8452 = vmatpush3.bf16.msra.mxu0 %v8451_v44  ;;  %7558 = vmatprep.mubr.msk.f32.mxu0 %vm9738_vm12, %v9736_v28  ;;  %v5121_v44 = vld [vmem:[#allocation26 + $0x58] sm:$0xff] }
 0xe8f   : > { %8453 = vmatprep.subr.bf16.mxu0 %v9737_v57  ;;  %v8538_v45 = vpack.c.bf16 %v5121_v44, %v5120_v43  ;;  %v5610_v44 = vld [vmem:[#allocation29 + $0x10] sm:$0xff] }
 0xe92   : > { %8455 = vmatpush3.bf16.msra.mxu0 %v8454_v47  ;;  %v7107_v47 = vld [vmem:[#allocation25] ss:$0 sm:$0xff] }
 0xe93   : > { %8456 = vmatprep.subr.bf16.mxu0 %v9737_v57 }
 0xe96   : > { %8458 = vmatpush3.bf16.msra.mxu0 %v8457_v50 }
 0xe97   : > { %8459 = vmatprep.subr.bf16.mxu0 %v9737_v57 }
 0xe9a   : > { %8461 = vmatpush3.bf16.msra.mxu0 %v8460_v54 }
 0xe9b   : > { %8462 = vmatprep.subr.bf16.mxu0 %v9737_v57 }
 0xe9e   : > { %8464 = vmatpush3.bf16.msra.mxu0 %v8463_v59  ;;  %v7110_v59 = vld [vmem:[%s10954_s3 + $0x2] sm:$0x3] }
 0xe9f   : > { %8465 = vmatprep.subr.bf16.mxu0 %v9737_v57 }
 0xea2   : > { %8467 = vmatpush3.bf16.msra.mxu0 %v8466_v62  ;;  %v5201_v62 = vld [vmem:[#allocation26 + $0x78] sm:$0xff] }
 0xea3   : > { %7588 = vmatprep.subr.mxu0 %v9736_v28 }
 0xf5c   : > { %v4608_v63 = vpop.f32.mrb[28].mxu0 }
 0xf5d   : > { %v7528_v0 = vpop.f32.mrb[29].mxu0  ;;  %7586 = vmatmul.mubr.msk.f32.vlgmr.msra.gmra.mrb[26].mxu1 %vm4213_vm0, %v4608_v63  ;;  %v8508_v63 = vpack.c.bf16 %v5201_v62, %v5200_v61 }
 0xf5e   : > { %7622 = vmatprep.mubr.msk.f32.mxu1 %vm9738_vm12, %v9736_v28  ;;  %v5202_v0 = vld [vmem:[#allocation26 + $0x80] sm:$0xff] }
 0xf5f   : > { %v8511_v2 = vpack.c.bf16 %v5203_v1, %v5202_v0 }
 0xf60   : > { %v4695_v3 = vpop.f32.mrb[30].mxu0 }
 0xf61   : > { %v7533_v29 = vpop.f32.mrb[31].mxu0  ;;  %7559 = vmatmul.mubr.msk.f32.vlgmr.msra.gmra.mrb[32].mxu0 %vm4213_vm0, %v4695_v3  ;;  %v5204_v3 = vld [vmem:[#allocation26 + $0x90] sm:$0xff] }
 0xf62   : > { %7589 = vmatpush3.msk.msra.mxu0 %vm4039_vm14, %v4532_v40  ;;  %7590 = vmatprep.mubr.msk.f32.mxu0 %vm9738_vm12, %v9736_v28  ;;  %v5118_v40 = vld [vmem:[#allocation26 + $0x40] sm:$0xff]  ;;  %v5205_v29 = vld [vmem:[#allocation26 + $0x98] sm:$0xff] }
 0xf63   : > { %8486 = vmatprep.subr.bf16.mxu0 %v9737_v57  ;;  %v8535_v42 = vpack.c.bf16 %v5119_v41, %v5118_v40  ;;  %v5608_v41 = vld [vmem:[#allocation29] sm:$0xff] }
 0xf65   : > { %7591 = vmatmul.mubr.msk.f32.vlgmr.msra.gmra.mrb[34].mxu0 %vm4035_vm15, %v7103_v4  ;;  %v8514_v4 = vpack.c.bf16 %v5205_v29, %v5204_v3  ;;  %v5531_v29 = vld [vmem:[%s10956_s10] sm:$0x1] }
 0xf66   : > { %8488 = vmatpush3.bf16.msra.mxu0 %v8487_v5  ;;  %7617 = vmatprep.mubr.msk.f32.mxu0 %vm9738_vm12, %v9736_v28  ;;  %v5206_v5 = vld [vmem:[#allocation26 + $0xa0] sm:$0xff] }
 0xf67   : > { %8489 = vmatprep.subr.bf16.mxu0 %v9737_v57  ;;  %v8517_v6 = vpack.c.bf16 %v5207_v22, %v5206_v5  ;;  %v5696_v5 = vld [vmem:[#allocation29 + $0x60] sm:$0xff]  ;;  %v5697_v22 = vld [vmem:[#allocation29 + $0x68] sm:$0xff] }
 0xf6a   : > { %8491 = vmatpush3.bf16.msra.mxu0 %v8490_v7  ;;  %v5208_v7 = vld [vmem:[#allocation26 + $0xb0] sm:$0xff] }
 0xf6b   : > { %8492 = vmatprep.subr.bf16.mxu0 %v9737_v57  ;;  %v8520_v8 = vpack.c.bf16 %v5209_v32, %v5208_v7  ;;  %v8559_v7 = vpack.c.bf16 %v5697_v22, %v5696_v5  ;;  %v5698_v32 = vld [vmem:[#allocation29 + $0x70] sm:$0xff] }
 0xf6c   : > { %v6109_v5 = vld [vmem:[#allocation32 + $0x48] sm:$0xff] }
 0xf6e   : > { %8494 = vmatpush3.bf16.msra.mxu0 %v8493_v9 }
 0xf6f   : > { %8495 = vmatprep.subr.bf16.mxu0 %v9737_v57 }
 0xf72   : > { %8497 = vmatpush3.bf16.msra.mxu0 %v8496_v10  ;;  %v5433_v10 = vld [vmem:[#allocation26 + $0xc8] sm:$0xff] }
 0xf73   : > { %8498 = vmatprep.subr.bf16.mxu0 %v9737_v57  ;;  %v8541_v13 = vpack.c.bf16 %v5433_v10, %v5432_v30  ;;  %v5701_v30 = vld [vmem:[#allocation29 + $0x88] sm:$0xff] }
 0xf76   : > { %8500 = vmatpush3.bf16.msra.mxu0 %v8499_v12  ;;  %v7115_v12 = vld [vmem:[%s10954_s3 + $0x4] sm:$0x3]  ;;  %s10795_s3 = scalar_lea.hbm %s9908_s20, %s7142_s2 }
 0xf77   : > { %8501 = vmatprep.subr.bf16.mxu0 %v9737_v57 }
 0xf7a   : > { %8503 = vmatpush3.bf16.msra.mxu0 %v8502_v15  ;;  %v5435_v15 = vld [vmem:[#allocation26 + $0xd8] sm:$0xff] }
 0xf7b   : > { %8522 = vmatprep.subr.bf16.mxu0 %v9737_v57 }
0x1030   : > { %v4854_v16 = vpop.f32.mrb[26].mxu1 }
0x1031   : > { %v7587_v17 = vpop.f32.mrb[27].mxu1 }
0x1032   : > { %v5436_v17 = vld [vmem:[#allocation26 + $0xe0] sm:$0xff] }
0x1034   : > { %v4781_v18 = vpop.f32.mrb[32].mxu0 }
0x1035   : > { %v4855_v19 = vadd.f32 %v4854_v16, %v4781_v18  ;;  %v7560_v20 = vpop.f32.mrb[33].mxu0  ;;  %v8544_v16 = vpack.c.bf16 %v5435_v15, %v5434_v14  ;;  %v5437_v18 = vld [vmem:[#allocation26 + $0xe8] sm:$0xff] }
0x1036   : > { %v5438_v20 = vld [vmem:[#allocation26 + $0xf0] sm:$0xff] }
0x1037   : > { %v5705_v14 = vld [vmem:[#allocation29 + $0xa8] sm:$0xff] }
0x1038   : > { %v4929_v21 = vpop.f32.mrb[34].mxu0 }
0x1039   : > { %v7592_v23 = vpop.f32.mrb[35].mxu0  ;;  %7618 = vmatmul.mubr.msk.f32.vlgmr.msra.gmra.mrb[36].mxu0 %vm4213_vm0, %v4929_v21  ;;  %v5439_v21 = vld [vmem:[#allocation26 + $0xf8] sm:$0xff] }
0x103a   : > { %7681 = vmatprep.mubr.msk.f32.mxu0 %vm9738_vm12, %v9736_v28  ;;  %8524 = vmatpush3.bf16.msra.mxu0 %v8523_v26  ;;  %v8550_v23 = vpack.c.bf16 %v5439_v21, %v5438_v20  ;;  %v8553_v26 = vpack.c.bf16 %v5441_v25, %v5440_v24  ;;  %v5930_v21 = vld [vmem:[#allocation29 + $0xc0] sm:$0xff] }
0x103b   : > { %8525 = vmatprep.subr.bf16.mxu0 %v9737_v57 }
0x103e   : > { %8527 = vmatpush3.bf16.msra.mxu0 %v8526_v34  ;;  %v8556_v34 = vpack.c.bf16 %v5443_v33, %v5442_v27  ;;  %v5932_v33 = vld [vmem:[#allocation29 + $0xd0] sm:$0xff] }
0x103f   : > { %8528 = vmatprep.subr.bf16.mxu0 %v9737_v57 }
0x1042   : > { %8530 = vmatpush3.bf16.msra.mxu0 %v8529_v38 }
0x1043   : > { %8531 = vmatprep.subr.bf16.mxu0 %v9737_v57 }
0x1046   : > { %8533 = vmatpush3.bf16.msra.mxu0 %v8532_v55 }
0x1047   : > { %8534 = vmatprep.subr.bf16.mxu0 %v9737_v57 }
0x104a   : > { %8536 = vmatpush3.bf16.msra.mxu0 %v8535_v42  ;;  %v5609_v42 = vld [vmem:[#allocation29 + $0x8] sm:$0xff] }
0x104b   : > { %8537 = vmatprep.subr.bf16.mxu0 %v9737_v57  ;;  %v8577_v43 = vpack.c.bf16 %v5609_v42, %v5608_v41  ;;  %v5938_v41 = vld [vmem:[#allocation29 + $0x100] sm:$0xff]  ;;  %v5939_v42 = vld [vmem:[#allocation29 + $0x108] sm:$0xff] }
0x104e   : > { %8539 = vmatpush3.bf16.msra.mxu0 %v8538_v45  ;;  %v5611_v45 = vld [vmem:[#allocation29 + $0x18] sm:$0xff] }
0x104f   : > { %7716 = vmatprep.subr.mxu0 %v9736_v28 }
0x110c   : > { %v5015_v46 = vpop.f32.mrb[36].mxu0 }
0x110d   : > { %v5019_v48 = vadd.f32 %v5015_v46, %v4855_v19  ;;  %v7619_v49 = vpop.f32.mrb[37].mxu0  ;;  %v8547_v19 = vpack.c.bf16 %v5437_v18, %v5436_v17  ;;  %v8580_v46 = vpack.c.bf16 %v5611_v45, %v5610_v44  ;;  %v5707_v17 = vld [vmem:[#allocation29 + $0xb8] sm:$0xff]  ;;  %v5940_v44 = vld [vmem:[#allocation29 + $0x110] sm:$0xff] }
0x110e   : > { %v5941_v45 = vld [vmem:[#allocation29 + $0x118] sm:$0xff] }
0x110f   : > { %v5027_v50 = vadd.f32 %v7107_v47, %v5019_v48  ;;  %v5612_v47 = vld [vmem:[#allocation29 + $0x20] sm:$0xff]  ;;  %v5613_v48 = vld [vmem:[#allocation29 + $0x28] sm:$0xff] }
0x1110   : > { %v8583_v49 = vpack.c.bf16 %v5613_v48, %v5612_v47 }
0x1111   : > { %vm5028_vm3 = vcmp.gt.f32.partialorder %v5027_v50, 0.0  ;;  %v5029_v51 = vmul.f32 0.2, %v5027_v50 }
0x1113   : > { %v5030_v54 = vsel %vm5028_vm3, %v5027_v50, %v5029_v51  ;;  %v5614_v50 = vld [vmem:[#allocation29 + $0x30] sm:$0xff]  ;;  %v5615_v51 = vld [vmem:[#allocation29 + $0x38] sm:$0xff] }
0x1114   : > { %7621 = vmatpush3.msk.msra.mxu1 %vm5036_vm4, %v5030_v54 }
0x1115   : > { %7623 = vmatmul.mubr.msk.f32.vlgmr.msra.gmra.mrb[28].mxu1 %vm5032_vm5, %v5031_v52  ;;  %7625 = vmatprep.subr.mxu1 %v9736_v28  ;;  %v8586_v52 = vpack.c.bf16 %v5615_v51, %v5614_v50 }
0x1116   : > { %7626 = vmatpush3.msk.msra.mxu1 %vm5036_vm4, %v5030_v54  ;;  %7627 = vmatprep.mubr.msk.f32.mxu1 %vm9738_vm12, %v9736_v28 }
0x1117   : > { %8504 = vmatprep.subr.bf16.mxu1 %v9737_v57 }
0x1119   : > { %7628 = vmatmul.mubr.msk.f32.vlgmr.msra.gmra.mrb[30].mxu1 %vm5032_vm5, %v7110_v59  ;;  %v5618_v59 = vld [vmem:[#allocation29 + $0x50] sm:$0xff] }
0x111a   : > { %8506 = vmatpush3.bf16.msra.mxu1 %v8505_v60  ;;  %7654 = vmatprep.mubr.msk.f32.mxu1 %vm9738_vm12, %v9736_v28  ;;  %v5619_v60 = vld [vmem:[#allocation29 + $0x58] sm:$0xff] }
0x111b   : > { %8507 = vmatprep.subr.bf16.mxu1 %v9737_v57  ;;  %v8592_v61 = vpack.c.bf16 %v5619_v60, %v5618_v59  ;;  %v6102_v60 = vld [vmem:[#allocation32 + $0x10] sm:$0xff] }
0x111e   : > { %8509 = vmatpush3.bf16.msra.mxu1 %v8508_v63  ;;  %v7119_v63 = vld [vmem:[#allocation28] ss:$0 sm:$0xff] }
0x111f   : > { %8510 = vmatprep.subr.bf16.mxu1 %v9737_v57 }
0x1122   : > { %8512 = vmatpush3.bf16.msra.mxu1 %v8511_v2 }
0x1123   : > { %8513 = vmatprep.subr.bf16.mxu1 %v9737_v57 }
0x1126   : > { %8515 = vmatpush3.bf16.msra.mxu1 %v8514_v4 }
0x1127   : > { %8516 = vmatprep.subr.bf16.mxu1 %v9737_v57 }
0x112a   : > { %8518 = vmatpush3.bf16.msra.mxu1 %v8517_v6  ;;  %v7122_v6 = vld [vmem:[%s10956_s10 + $0x1] sm:$0x1] }
0x112b   : > { %8519 = vmatprep.subr.bf16.mxu1 %v9737_v57 }
0x112e   : > { %8521 = vmatpush3.bf16.msra.mxu1 %v8520_v8  ;;  %v5699_v8 = vld [vmem:[#allocation29 + $0x78] sm:$0xff] }
0x112f   : > { %7684 = vmatprep.subr.mxu1 %v9736_v28 }
0x11e8   : > { %v5106_v9 = vpop.f32.mrb[28].mxu1 }
0x11e9   : > { %v7624_v31 = vpop.f32.mrb[29].mxu1  ;;  %7682 = vmatmul.mubr.msk.f32.vlgmr.msra.gmra.mrb[38].mxu0 %vm4213_vm0, %v5106_v9  ;;  %v8562_v9 = vpack.c.bf16 %v5699_v8, %v5698_v32 }
0x11ea   : > { %7718 = vmatprep.mubr.msk.f32.mxu0 %vm9738_vm12, %v9736_v28  ;;  %v5700_v31 = vld [vmem:[#allocation29 + $0x80] sm:$0xff] }
0x11eb   : > { %v8565_v10 = vpack.c.bf16 %v5701_v30, %v5700_v31 }
0x11ec   : > { %v5193_v11 = vpop.f32.mrb[30].mxu1 }
0x11ed   : > { %v7629_v35 = vpop.f32.mrb[31].mxu1  ;;  %7655 = vmatmul.mubr.msk.f32.vlgmr.msra.gmra.mrb[32].mxu1 %vm4213_vm0, %v5193_v11  ;;  %v5702_v11 = vld [vmem:[#allocation29 + $0x90] sm:$0xff] }
0x11ee   : > { %7685 = vmatpush3.msk.msra.mxu1 %vm5036_vm4, %v5030_v54  ;;  %7686 = vmatprep.mubr.msk.f32.mxu1 %vm9738_vm12, %v9736_v28  ;;  %v5616_v54 = vld [vmem:[#allocation29 + $0x40] sm:$0xff]  ;;  %v5703_v35 = vld [vmem:[#allocation29 + $0x98] sm:$0xff] }
0x11ef   : > { %8540 = vmatprep.subr.bf16.mxu1 %v9737_v57  ;;  %v8589_v58 = vpack.c.bf16 %v5617_v56, %v5616_v54  ;;  %v6100_v56 = vld [vmem:[#allocation32] sm:$0xff] }
0x11f1   : > { %7687 = vmatmul.mubr.msk.f32.vlgmr.msra.gmra.mrb[34].mxu1 %vm5032_vm5, %v7115_v12  ;;  %v8568_v12 = vpack.c.bf16 %v5703_v35, %v5702_v11  ;;  %v6021_v35 = vld [vmem:[%s10957_s16] sm:$0x1] }
0x11f2   : > { %8542 = vmatpush3.bf16.msra.mxu1 %v8541_v13  ;;  %7713 = vmatprep.mubr.msk.f32.mxu1 %vm9738_vm12, %v9736_v28  ;;  %v5704_v13 = vld [vmem:[#allocation29 + $0xa0] sm:$0xff] }
0x11f3   : > { %8543 = vmatprep.subr.bf16.mxu1 %v9737_v57  ;;  %v8571_v15 = vpack.c.bf16 %v5705_v14, %v5704_v13  ;;  %v6188_v13 = vld [vmem:[#allocation32 + $0x60] sm:$0xff]  ;;  %v6189_v14 = vld [vmem:[#allocation32 + $0x68] sm:$0xff] }
0x11f6   : > { %8545 = vmatpush3.bf16.msra.mxu1 %v8544_v16  ;;  %v5706_v16 = vld [vmem:[#allocation29 + $0xb0] sm:$0xff] }
0x11f7   : > { %8546 = vmatprep.subr.bf16.mxu1 %v9737_v57  ;;  %v8574_v18 = vpack.c.bf16 %v5707_v17, %v5706_v16  ;;  %v8613_v16 = vpack.c.bf16 %v6189_v14, %v6188_v13  ;;  %v6190_v17 = vld [vmem:[#allocation32 + $0x70] sm:$0xff] }
0x11fa   : > { %8548 = vmatpush3.bf16.msra.mxu1 %v8547_v19 }
0x11fb   : > { %8549 = vmatprep.subr.bf16.mxu1 %v9737_v57 }
0x11fe   : > { %8551 = vmatpush3.bf16.msra.mxu1 %v8550_v23  ;;  %v5931_v23 = vld [vmem:[#allocation29 + $0xc8] sm:$0xff] }
0x11ff   : > { %8552 = vmatprep.subr.bf16.mxu1 %v9737_v57  ;;  %v8595_v27 = vpack.c.bf16 %v5931_v23, %v5930_v21  ;;  %v6193_v21 = vld [vmem:[#allocation32 + $0x88] sm:$0xff] }
0x1202   : > { %8554 = vmatpush3.bf16.msra.mxu1 %v8553_v26  ;;  %v7127_v26 = vld [vmem:[%s10956_s10 + $0x2] sm:$0x1] }
0x1203   : > { %8555 = vmatprep.subr.bf16.mxu1 %v9737_v57 }
0x1206   : > { %8557 = vmatpush3.bf16.msra.mxu1 %v8556_v34  ;;  %v5933_v34 = vld [vmem:[#allocation29 + $0xd8] sm:$0xff] }
0x1207   : > { %8576 = vmatprep.subr.bf16.mxu1 %v9737_v57 }
0x12bc   : > { %v5352_v36 = vpop.f32.mrb[38].mxu0 }
0x12bd   : > { %v7683_v37 = vpop.f32.mrb[39].mxu0 }
0x12be   : > { %v5934_v37 = vld [vmem:[#allocation29 + $0xe0] sm:$0xff] }
0x12c0   : > { %v5279_v38 = vpop.f32.mrb[32].mxu1 }
0x12c1   : > { %v5353_v39 = vadd.f32 %v5352_v36, %v5279_v38  ;;  %v7656_v53 = vpop.f32.mrb[33].mxu1  ;;  %v8598_v36 = vpack.c.bf16 %v5933_v34, %v5932_v33  ;;  %v5935_v38 = vld [vmem:[#allocation29 + $0xe8] sm:$0xff] }
0x12c2   : > { %v5936_v53 = vld [vmem:[#allocation29 + $0xf0] sm:$0xff] }
0x12c3   : > { %v6197_v33 = vld [vmem:[#allocation32 + $0xa8] sm:$0xff] }
0x12c4   : > { %v5427_v55 = vpop.f32.mrb[34].mxu1 }
0x12c5   : > { %v7688_v40 = vpop.f32.mrb[35].mxu1  ;;  %7714 = vmatmul.mubr.msk.f32.vlgmr.msra.gmra.mrb[36].mxu1 %vm4213_vm0, %v5427_v55  ;;  %v5937_v55 = vld [vmem:[#allocation29 + $0xf8] sm:$0xff] }
0x12c6   : > { %7777 = vmatprep.mubr.msk.f32.mxu1 %vm9738_vm12, %v9736_v28  ;;  %8578 = vmatpush3.bf16.msra.mxu1 %v8577_v43  ;;  %v8604_v40 = vpack.c.bf16 %v5937_v55, %v5936_v53  ;;  %v8607_v43 = vpack.c.bf16 %v5939_v42, %v5938_v41  ;;  %v6422_v55 = vld [vmem:[#allocation32 + $0xc0] sm:$0xff] }
0x12c7   : > { %8579 = vmatprep.subr.bf16.mxu1 %v9737_v57 }
0x12ca   : > { %8581 = vmatpush3.bf16.msra.mxu1 %v8580_v46  ;;  %v8610_v46 = vpack.c.bf16 %v5941_v45, %v5940_v44  ;;  %v6424_v45 = vld [vmem:[#allocation32 + $0xd0] sm:$0xff] }
0x12cb   : > { %8582 = vmatprep.subr.bf16.mxu1 %v9737_v57 }
0x12ce   : > { %8584 = vmatpush3.bf16.msra.mxu1 %v8583_v49 }
0x12cf   : > { %8585 = vmatprep.subr.bf16.mxu1 %v9737_v57 }
0x12d2   : > { %8587 = vmatpush3.bf16.msra.mxu1 %v8586_v52 }
0x12d3   : > { %8588 = vmatprep.subr.bf16.mxu1 %v9737_v57 }
0x12d6   : > { %8590 = vmatpush3.bf16.msra.mxu1 %v8589_v58  ;;  %v6101_v58 = vld [vmem:[#allocation32 + $0x8] sm:$0xff] }
0x12d7   : > { %8591 = vmatprep.subr.bf16.mxu1 %v9737_v57  ;;  %v8631_v59 = vpack.c.bf16 %v6101_v58, %v6100_v56  ;;  %v6430_v56 = vld [vmem:[#allocation32 + $0x100] sm:$0xff]  ;;  %v6431_v58 = vld [vmem:[#allocation32 + $0x108] sm:$0xff] }
0x12da   : > { %8593 = vmatpush3.bf16.msra.mxu1 %v8592_v61  ;;  %v6103_v61 = vld [vmem:[#allocation32 + $0x18] sm:$0xff] }
0x12db   : > { %7812 = vmatprep.subr.mxu1 %v9736_v28 }
0x1398   : > { %v5513_v62 = vpop.f32.mrb[36].mxu1 }
0x1399   : > { %v5517_v0 = vadd.f32 %v5513_v62, %v5353_v39  ;;  %v7715_v1 = vpop.f32.mrb[37].mxu1  ;;  %v8601_v39 = vpack.c.bf16 %v5935_v38, %v5934_v37  ;;  %v8634_v62 = vpack.c.bf16 %v6103_v61, %v6102_v60  ;;  %v6199_v37 = vld [vmem:[#allocation32 + $0xb8] sm:$0xff] }
0x139a   : > { %v6433_v60 = vld [vmem:[#allocation32 + $0x118] sm:$0xff] }
0x139b   : > { %v5525_v2 = vadd.f32 %v7119_v63, %v5517_v0  ;;  %v6104_v63 = vld [vmem:[#allocation32 + $0x20] sm:$0xff]  ;;  %v6105_v0 = vld [vmem:[#allocation32 + $0x28] sm:$0xff] }
0x139c   : > { %v8637_v1 = vpack.c.bf16 %v6105_v0, %v6104_v63 }
0x139d   : > { %vm5526_vm6 = vcmp.gt.f32.partialorder %v5525_v2, 0.0  ;;  %v5527_v3 = vmul.f32 0.2, %v5525_v2 }
0x139f   : > { %v5528_v4 = vsel %vm5526_vm6, %v5525_v2, %v5527_v3  ;;  %v6106_v2 = vld [vmem:[#allocation32 + $0x30] sm:$0xff]  ;;  %v6107_v3 = vld [vmem:[#allocation32 + $0x38] sm:$0xff] }
0x13a0   : > { %5530 = vst.msk [vmem:[%s1317_s28] sm:$0x3] %vm5529_vm7, %v5528_v4  ;;  %7717 = vmatpush3.msk.msra.mxu0 %vm5036_vm4, %v5528_v4  ;;  %s6558_s28 = sshll.u32 %s1294_s23, 4  ;;  %s10797_s28 = int_to_ptr.vmem [resolvable:$true] %s6558_s28 }
0x13a1   : > { %7719 = vmatmul.mubr.msk.f32.vlgmr.msra.gmra.mrb[40].mxu0 %vm5032_vm5, %v5531_v29  ;;  %7721 = vmatprep.subr.mxu0 %v9736_v28  ;;  %v8640_v29 = vpack.c.bf16 %v6107_v3, %v6106_v2  ;;  %s9569_s5 = scalar_lea.vmem %s10797_s28, 16  ;;  %p9576_p13 = scmp.lt.s32.totalorder %s10797_s28, %s9574_s6 }
0x13a2   : > { %7722 = vmatpush3.msk.msra.mxu0 %vm5036_vm4, %v5528_v4  ;;  %7723 = vmatprep.mubr.msk.f32.mxu0 %vm9738_vm12, %v9736_v28  ;;  %p9570_p4 = scmp.ne.s32.totalorder %s10797_s28, %s9569_s5  ;;  %p9577_p1 = scmp.lt.s32.totalorder %s9575_s8, %s9569_s5 }
0x13a3   : > { %8558 = vmatprep.subr.bf16.mxu0 %v9737_v57 }
0x13a4   : > { %p9571_p8 = pnand %p9570_p4, %p10958_p7  ;;  %p9578_p6 = por %p9577_p1, %p9576_p13 }
0x13a5   : > { %7724 = vmatmul.mubr.msk.f32.vlgmr.msra.gmra.mrb[42].mxu0 %vm5032_vm5, %v7122_v6  ;;  %v6110_v6 = vld [vmem:[#allocation32 + $0x50] sm:$0xff] }
0x13a6   : > { %8560 = vmatpush3.bf16.msra.mxu0 %v8559_v7  ;;  %7750 = vmatprep.mubr.msk.f32.mxu0 %vm9738_vm12, %v9736_v28  ;;  %v6111_v7 = vld [vmem:[#allocation32 + $0x58] sm:$0xff]  ;;  %p9572_p11 = pneg %p9571_p8 }
0x13a7   : > { %8561 = vmatprep.subr.bf16.mxu0 %v9737_v57  ;;  %v8646_v32 = vpack.c.bf16 %v6111_v7, %v6110_v6 }
0x13a8   : > { %p9579_p0 = pnand %p9578_p6, %p9572_p11 }
0x13aa   : > { %8563 = vmatpush3.bf16.msra.mxu0 %v8562_v9  ;;  %v6016_v9 = vld [vmem:[#allocation31] sm:$0x1] }
0x13ab   : > { %8564 = vmatprep.subr.bf16.mxu0 %v9737_v57 }
0x13ae   : > { %8566 = vmatpush3.bf16.msra.mxu0 %v8565_v10 }
0x13af   : > { %8567 = vmatprep.subr.bf16.mxu0 %v9737_v57 }
0x13b2   : > { %8569 = vmatpush3.bf16.msra.mxu0 %v8568_v12 }
0x13b3   : > { %8570 = vmatprep.subr.bf16.mxu0 %v9737_v57 }
0x13b6   : > { %8572 = vmatpush3.bf16.msra.mxu0 %v8571_v15  ;;  %v7133_v15 = vld [vmem:[%s10957_s16 + $0x1] sm:$0x1] }
0x13b7   : > { %8573 = vmatprep.subr.bf16.mxu0 %v9737_v57 }
0x13ba   : > { %8575 = vmatpush3.bf16.msra.mxu0 %v8574_v18  ;;  %v6191_v18 = vld [vmem:[#allocation32 + $0x78] sm:$0xff] }
0x13bb   : > { %7780 = vmatprep.subr.mxu0 %v9736_v28 }
0x1474   : > { %v5604_v19 = vpop.f32.mrb[40].mxu0 }
0x1475   : > { %v7720_v20 = vpop.f32.mrb[41].mxu0  ;;  %7778 = vmatmul.mubr.msk.f32.vlgmr.msra.gmra.mrb[38].mxu1 %vm4213_vm0, %v5604_v19  ;;  %v8616_v19 = vpack.c.bf16 %v6191_v18, %v6190_v17 }
0x1476   : > { %7814 = vmatprep.mubr.msk.f32.mxu1 %vm9738_vm12, %v9736_v28  ;;  %v6192_v20 = vld [vmem:[#allocation32 + $0x80] sm:$0xff] }
0x1477   : > { %v8619_v23 = vpack.c.bf16 %v6193_v21, %v6192_v20 }
0x1478   : > { %v5691_v24 = vpop.f32.mrb[42].mxu0 }
0x1479   : > { %v7725_v25 = vpop.f32.mrb[43].mxu0  ;;  %7751 = vmatmul.mubr.msk.f32.vlgmr.msra.gmra.mrb[44].mxu0 %vm4213_vm0, %v5691_v24  ;;  %v6194_v24 = vld [vmem:[#allocation32 + $0x90] sm:$0xff] }
0x147a   : > { %7781 = vmatpush3.msk.msra.mxu0 %vm5036_vm4, %v5528_v4  ;;  %7782 = vmatprep.mubr.msk.f32.mxu0 %vm9738_vm12, %v9736_v28  ;;  %v6108_v4 = vld [vmem:[#allocation32 + $0x40] sm:$0xff]  ;;  %v6195_v25 = vld [vmem:[#allocation32 + $0x98] sm:$0xff] }
0x147b   : > { %8594 = vmatprep.subr.bf16.mxu0 %v9737_v57  ;;  %v8643_v22 = vpack.c.bf16 %v6109_v5, %v6108_v4  ;;  %v6508_v5 = vld [vmem:[#allocation34] sm:$0x1] }
0x147d   : > { %7783 = vmatmul.mubr.msk.f32.vlgmr.msra.gmra.mrb[46].mxu0 %vm5032_vm5, %v7127_v26  ;;  %v8622_v26 = vpack.c.bf16 %v6195_v25, %v6194_v24 }
0x147e   : > { %8596 = vmatpush3.bf16.msra.mxu0 %v8595_v27  ;;  %7809 = vmatprep.mubr.msk.f32.mxu0 %vm9738_vm12, %v9736_v28  ;;  %v6196_v27 = vld [vmem:[#allocation32 + $0xa0] sm:$0xff] }
0x147f   : > { %8597 = vmatprep.subr.bf16.mxu0 %v9737_v57  ;;  %v8625_v34 = vpack.c.bf16 %v6197_v33, %v6196_v27 }
0x1482   : > { %8599 = vmatpush3.bf16.msra.mxu0 %v8598_v36  ;;  %v6198_v36 = vld [vmem:[#allocation32 + $0xb0] sm:$0xff] }
0x1483   : > { %8600 = vmatprep.subr.bf16.mxu0 %v9737_v57  ;;  %v8628_v38 = vpack.c.bf16 %v6199_v37, %v6198_v36 }
0x1486   : > { %8602 = vmatpush3.bf16.msra.mxu0 %v8601_v39 }
0x1487   : > { %8603 = vmatprep.subr.bf16.mxu0 %v9737_v57 }
0x148a   : > { %8605 = vmatpush3.bf16.msra.mxu0 %v8604_v40  ;;  %v6423_v40 = vld [vmem:[#allocation32 + $0xc8] sm:$0xff] }
0x148b   : > { %8606 = vmatprep.subr.bf16.mxu0 %v9737_v57  ;;  %v8649_v44 = vpack.c.bf16 %v6423_v40, %v6422_v55 }
0x148e   : > { %8608 = vmatpush3.bf16.msra.mxu0 %v8607_v43  ;;  %v7138_v43 = vld [vmem:[%s10957_s16 + $0x2] sm:$0x1] }
0x148f   : > { %8609 = vmatprep.subr.bf16.mxu0 %v9737_v57 }
0x1492   : > { %8611 = vmatpush3.bf16.msra.mxu0 %v8610_v46  ;;  %v6425_v46 = vld [vmem:[#allocation32 + $0xd8] sm:$0xff] }
0x1493   : > { %8630 = vmatprep.subr.bf16.mxu0 %v9737_v57 }
0x1548   : > { %v5850_v47 = vpop.f32.mrb[38].mxu1 }
0x1549   : > { %v7779_v48 = vpop.f32.mrb[39].mxu1 }
0x154a   : > { %v6426_v48 = vld [vmem:[#allocation32 + $0xe0] sm:$0xff] }
0x154c   : > { %v5777_v49 = vpop.f32.mrb[44].mxu0 }
0x154d   : > { %v5851_v50 = vadd.f32 %v5850_v47, %v5777_v49  ;;  %v7752_v51 = vpop.f32.mrb[45].mxu0  ;;  %v8652_v47 = vpack.c.bf16 %v6425_v46, %v6424_v45  ;;  %v6427_v49 = vld [vmem:[#allocation32 + $0xe8] sm:$0xff] }
0x154e   : > { %v6428_v51 = vld [vmem:[#allocation32 + $0xf0] sm:$0xff] }
0x1550   : > { %v5925_v52 = vpop.f32.mrb[46].mxu0 }
0x1551   : > { %v7784_v54 = vpop.f32.mrb[47].mxu0  ;;  %7810 = vmatmul.mubr.msk.f32.vlgmr.msra.gmra.mrb[48].mxu0 %vm4213_vm0, %v5925_v52  ;;  %v6429_v52 = vld [vmem:[#allocation32 + $0xf8] sm:$0xff] }
0x1552   : > { %7873 = vmatprep.mubr.msk.f32.mxu0 %vm9738_vm12, %v9736_v28  ;;  %8632 = vmatpush3.bf16.msra.mxu0 %v8631_v59  ;;  %v8658_v54 = vpack.c.bf16 %v6429_v52, %v6428_v51  ;;  %v6432_v59 = vld [vmem:[#allocation32 + $0x110] sm:$0xff] }
0x1553   : > { %8633 = vmatprep.subr.bf16.mxu0 %v9737_v57  ;;  %v8664_v61 = vpack.c.bf16 %v6433_v60, %v6432_v59 }
0x1556   : > { %8635 = vmatpush3.bf16.msra.mxu0 %v8634_v62 }
0x1557   : > { %8636 = vmatprep.subr.bf16.mxu0 %v9737_v57 }
0x155a   : > { %8638 = vmatpush3.bf16.msra.mxu0 %v8637_v1 }
0x155b   : > { %8639 = vmatprep.subr.bf16.mxu0 %v9737_v57 }
0x155e   : > { %8641 = vmatpush3.bf16.msra.mxu0 %v8640_v29 }
0x155f   : > { %8642 = vmatprep.subr.bf16.mxu0 %v9737_v57 }
0x1562   : > { %8644 = vmatpush3.bf16.msra.mxu0 %v8643_v22 }
0x1563   : > { %8645 = vmatprep.subr.bf16.mxu0 %v9737_v57 }
0x1566   : > { %8647 = vmatpush3.bf16.msra.mxu0 %v8646_v32 }
0x1624   : > { %v6011_v8 = vpop.f32.mrb[48].mxu0 }
0x1625   : > { %v6015_v31 = vadd.f32 %v6011_v8, %v5851_v50  ;;  %v7811_v30 = vpop.f32.mrb[49].mxu0  ;;  %v8655_v50 = vpack.c.bf16 %v6427_v49, %v6426_v48 }
0x1627   : > { %v6017_v10 = vadd.f32 %v6016_v9, %v6015_v31 }
0x1629   : > { %vm6018_vm8 = vcmp.gt.f32.partialorder %v6017_v10, 0.0  ;;  %v6019_v11 = vmul.f32 0.2, %v6017_v10 }
0x162b   : > { %v6020_v12 = vsel %vm6018_vm8, %v6017_v10, %v6019_v11 }
0x162c   : > { %7813 = vmatpush3.msk.msra.mxu1 %vm6026_vm9, %v6020_v12 }
0x162d   : > { %7815 = vmatmul.mubr.msk.f32.vlgmr.msra.gmra.mrb[40].mxu1 %vm6022_vm10, %v6021_v35  ;;  %7817 = vmatprep.subr.mxu1 %v9736_v28 }
0x162e   : > { %7818 = vmatpush3.msk.msra.mxu1 %vm6026_vm9, %v6020_v12  ;;  %7819 = vmatprep.mubr.msk.f32.mxu1 %vm9738_vm12, %v9736_v28 }
0x162f   : > { %8612 = vmatprep.subr.bf16.mxu1 %v9737_v57 }
0x1631   : > { %7820 = vmatmul.mubr.msk.f32.vlgmr.msra.gmra.mrb[42].mxu1 %vm6022_vm10, %v7133_v15 }
0x1632   : > { %8614 = vmatpush3.bf16.msra.mxu1 %v8613_v16  ;;  %7846 = vmatprep.mubr.msk.f32.mxu1 %vm9738_vm12, %v9736_v28 }
0x1633   : > { %8615 = vmatprep.subr.bf16.mxu1 %v9737_v57 }
0x1636   : > { %8617 = vmatpush3.bf16.msra.mxu1 %v8616_v19 }
0x1637   : > { %8618 = vmatprep.subr.bf16.mxu1 %v9737_v57 }
0x163a   : > { %8620 = vmatpush3.bf16.msra.mxu1 %v8619_v23 }
0x163b   : > { %8621 = vmatprep.subr.bf16.mxu1 %v9737_v57 }
0x163e   : > { %8623 = vmatpush3.bf16.msra.mxu1 %v8622_v26 }
0x163f   : > { %8624 = vmatprep.subr.bf16.mxu1 %v9737_v57 }
0x1642   : > { %8626 = vmatpush3.bf16.msra.mxu1 %v8625_v34 }
0x1643   : > { %8627 = vmatprep.subr.bf16.mxu1 %v9737_v57 }
0x1646   : > { %8629 = vmatpush3.bf16.msra.mxu1 %v8628_v38 }
0x1647   : > { %7876 = vmatprep.subr.mxu1 %v9736_v28 }
0x1700   : > { %v6096_v39 = vpop.f32.mrb[40].mxu1 }
0x1701   : > { %v7816_v53 = vpop.f32.mrb[41].mxu1  ;;  %7874 = vmatmul.mubr.msk.f32.vlgmr.msra.gmra.mrb[50].mxu0 %vm4213_vm0, %v6096_v39 }
0x1704   : > { %v6183_v41 = vpop.f32.mrb[42].mxu1 }
0x1705   : > { %7847 = vmatmul.mubr.msk.f32.vlgmr.msra.gmra.mrb[44].mxu1 %vm4213_vm0, %v6183_v41  ;;  %v7821_v42 = vpop.f32.mrb[43].mxu1 }
0x1706   : > { %7877 = vmatpush3.msk.msra.mxu1 %vm6026_vm9, %v6020_v12  ;;  %7878 = vmatprep.mubr.msk.f32.mxu1 %vm9738_vm12, %v9736_v28 }
0x1707   : > { %8648 = vmatprep.subr.bf16.mxu1 %v9737_v57 }
0x1709   : > { %7879 = vmatmul.mubr.msk.f32.vlgmr.msra.gmra.mrb[46].mxu1 %vm6022_vm10, %v7138_v43 }
0x170a   : > { %8650 = vmatpush3.bf16.msra.mxu1 %v8649_v44  ;;  %7905 = vmatprep.mubr.msk.f32.mxu1 %vm9738_vm12, %v9736_v28  ;;  %v8661_v28 = vpack.c.bf16 %v6431_v58, %v6430_v56  ;;  %vm6513_vm12 = vcmask 778240  }
0x170b   : > { %8651 = vmatprep.subr.bf16.mxu1 %v9737_v57 }
0x170e   : > { %8653 = vmatpush3.bf16.msra.mxu1 %v8652_v47 }
0x170f   : > { %8654 = vmatprep.subr.bf16.mxu1 %v9737_v57 }
0x1712   : > { %8656 = vmatpush3.bf16.msra.mxu1 %v8655_v50 }
0x1713   : > { %8657 = vmatprep.subr.bf16.mxu1 %v9737_v57 }
0x1716   : > { %8659 = vmatpush3.bf16.msra.mxu1 %v8658_v54 }
0x1717   : > { %8660 = vmatprep.subr.bf16.mxu1 %v9737_v57 }
0x171a   : > { %8662 = vmatpush3.bf16.msra.mxu1 %v8661_v28 }
0x171b   : > { %8663 = vmatprep.subr.bf16.mxu1 %v9737_v57 }
0x171e   : > { %8665 = vmatpush3.bf16.msra.mxu1 %v8664_v61 }
0x17d4   : > { %v6342_v62 = vpop.f32.mrb[50].mxu0 }
0x17d5   : > { %v7875_v63 = vpop.f32.mrb[51].mxu0 }
0x17d8   : > { %v6269_v0 = vpop.f32.mrb[44].mxu1 }
0x17d9   : > { %v6343_v1 = vadd.f32 %v6342_v62, %v6269_v0  ;;  %v7848_v2 = vpop.f32.mrb[45].mxu1 }
0x17dc   : > { %v6417_v3 = vpop.f32.mrb[46].mxu1 }
0x17dd   : > { %7906 = vmatmul.mubr.msk.f32.vlgmr.msra.gmra.mrb[48].mxu1 %vm4213_vm0, %v6417_v3  ;;  %v7880_v29 = vpop.f32.mrb[47].mxu1 }
0x18b0   : > { %v6503_v4 = vpop.f32.mrb[48].mxu1 }
0x18b1   : > { %v6507_v22 = vadd.f32 %v6503_v4, %v6343_v1  ;;  %v7907_v57 = vpop.f32.mrb[49].mxu1 }
0x18b3   : > { %v6509_v6 = vadd.f32 %v6508_v5, %v6507_v22 }
0x18b5   : > { %vm6510_vm11 = vcmp.gt.f32.partialorder %v6509_v6, 0.0  ;;  %v6511_v7 = vmul.f32 0.2, %v6509_v6 }
0x18b7   : > { %v6512_v32 = vsel %vm6510_vm11, %v6509_v6, %v6511_v7 }
0x18b8   : > { %6514 = vst.msk [vmem:[%s1294_s23] sm:$0x1] %vm6513_vm12, %v6512_v32 }
0x18b9   : > { %9582 = shalt.err (!%p9579_p0)
}
0x18ba   : > { %s9583_s9 = scalar_lea.hbm %s10795_s3, 16  ;;  %s9587_s2 = scalar_lea.hbm %s9908_s20, 32 }
0x18bb   : > { %p9584_p5 = scmp.ne.s32.totalorder %s10795_s3, %s9583_s9  ;;  %p9588_p10 = scmp.lt.u32.totalorder %s10795_s3, %s9908_s20 }
0x18bc   : > { %p9589_p2 = scmp.lt.u32.totalorder %s9587_s2, %s9583_s9  ;;  %p9591_p4 = scmp.lt.u32.totalorder %s9583_s9, %s10795_s3 }
0x18bd   : > { %p9585_p9 = pnand %p9584_p5, %p10958_p7 }
0x18be   : > { %p9590_p3 = por %p9589_p2, %p9588_p10 }
0x18bf   : > { %p9586_p12 = pneg %p9585_p9 }
0x18c0   : > { %p9592_p8 = por %p9591_p4, %p9590_p3 }
0x18c2   : > { %p9593_p11 = pnand %p9592_p8, %p9586_p12 }
0x18c4   : > { %9596 = shalt.err (!%p9593_p11)
}
0x18c5   : > { %8774 = dma.vmem_to_hbm [thread:$0]  (%p10958_p7), %s10797_s28, 16, %s10795_s3, %s6534_s4  }
0x18c6 PF: > { %s10959_s5 = sld [smem:[#allocation71_spill]]  ;;  %s10960_s6 = sld [smem:[#allocation75_spill]] }
0x18c7   : > { %p8886_p13 = scmp.ge.s32.totalorder %s9675_s0, 2 }
0x18cc   : > { %s6600_s8 = sand.u32 1, %s10959_s5   ;;  %p10961_p1 = scmp.ne.s32.totalorder %s10960_s6, 0 }
0x18cd   : > { %s6601_s23 = scalar_lea.sflag [#allocation4], %s6600_s8 }
0x18ce   : > { %p8841_p6 = pnand %p8886_p13, %p10961_p1 }
0x18d0   : > { %9658 = dma.done.wait (!%p8841_p6), %s6601_s23, 16  }
0x18d1   : > { %9660 = vsyncadd (!%p8841_p6), %s6601_s23, 4294967280  ;;  %s10962_s0 = sld [smem:[#allocation73_spill]]  ;;  %s10963_s7 = sld [smem:[#allocation72_spill]] }
0x18d2   : > { %s10964_s2 = sld [smem:[#allocation74_spill]]  ;;  %s10965_s28 = smov %s9667_s1 }
0x18d7   : > { %p87_p0 = scmp.ge.s32.totalorder %s10962_s0, 4   ;;  %s10966_s1 = smov %s10963_s7 }
0x18d9   :  { %89 = sbr.rel (!%p87_p0) target bundleno = 74 (0x4a), region = 372 }
0x18e0   :  { %6605 = vsyncpa [#allocation3], 1 }
0x18e1   :  { %6607 = vsyncpa [#allocation3 + $0x1], 1 }
0x18e2   :  { %6608 = vsyncpa [#allocation6], 1 }
0x18e3   :  { %6609 = vsyncpa [#allocation9], 1 }
0x18e4   :  { %6610 = vsyncpa [#allocation12], 1 }
0x18e5   :  { %6611 = vsyncpa [#allocation15], 1 }
0x18e6   :  { %6612 = vsyncpa [#allocation18], 1 }
0x18e7   :  { %6613 = vsyncpa [#allocation21], 1 }
0x18e8   :  { %6614 = vsyncpa [#allocation24], 1 }
0x18e9   :  { %6615 = vsyncpa [#allocation27], 1 }
0x18ea   :  { %6616 = vsyncpa [#allocation30], 1 }
0x18eb   :  { %6617 = vsyncpa [#allocation33], 1 }
0x18ec   :  { %6618 = vsyncpa [#allocation4], 1 }
0x18ed   :  { %6620 = vsyncpa [#allocation4 + $0x1], 1 }

</bundles_post_ra>
